<compile_context>
chip_gen: v5e
topology: v5e:2x2
jax: 0.10.0
libtpu: 0.0.40
codegen_flags: <defaults>
</compile_context>

<pallas_src>
from math import sqrt

import jax
import jax.numpy as jnp
import numpy as np
from jax.experimental import pallas as pl
from jax.experimental.pallas import tpu as pltpu

# Module hyper-parameters (match __init__ of _SingleLayerTemporalTSFM).
D_MODEL = 32
DIM_K = 8
DIM_V = 8
N_HEADS = 4
DIM_FC = 128
EPS = 1e-5  # nn.LayerNorm default eps
QKV_DIM = N_HEADS * (DIM_K + DIM_K + DIM_V)  # 96


def _layernorm(x, gamma, beta):
    """One-pass LayerNorm: var = E[x^2] - mean^2 (biased, like torch)."""
    mean = jnp.mean(x, axis=-1, keepdims=True)
    meansq = jnp.mean(x * x, axis=-1, keepdims=True)
    var = meansq - mean * mean
    return (x - mean) * jax.lax.rsqrt(var + EPS) * gamma + beta


def tsfm_kernel(x_ref, wqkv_ref, wo_ref, w1_ref, w2_ref, vec_ref, out_ref):
    f32 = jnp.float32
    bf16 = jnp.bfloat16
    TB, L, D = x_ref.shape
    R = TB * L

    # Flatten (TB, L, D) -> (TB*L, D): leading-dim merge, last dim unchanged
    # (no lane relayout).  Keep an f32 copy for residuals / LN statistics and
    # a bf16 copy for the MXU.
    x = x_ref[...].reshape(R, D)
    x_bf = x.astype(bf16)

    # Packed bias / LayerNorm vectors (single (8, 128) slab, f32).
    bqkv = vec_ref[0:1, 0:QKV_DIM]
    bo = vec_ref[1:2, 0:D_MODEL]
    b1 = vec_ref[2:3, 0:DIM_FC]
    b2 = vec_ref[3:4, 0:D_MODEL]
    g1 = vec_ref[4:5, 0:D_MODEL]
    be1 = vec_ref[5:6, 0:D_MODEL]
    g2 = vec_ref[6:7, 0:D_MODEL]
    be2 = vec_ref[7:8, 0:D_MODEL]

    # --- Fused Q/K/V projection: one (R, 32) @ (32, 96) bf16 matmul, f32 acc.
    qkv = jnp.dot(x_bf, wqkv_ref[...], preferred_element_type=f32) + bqkv
    HK = N_HEADS * DIM_K
    q = qkv[:, 0:HK].astype(bf16).reshape(TB, L, HK)
    k = qkv[:, HK:2 * HK].astype(bf16).reshape(TB, L, HK)
    v = qkv[:, 2 * HK:QKV_DIM].astype(bf16).reshape(TB, L, N_HEADS * DIM_V)

    # --- Multi-head attention (batched over TB per head; static unroll).
    # The output projection is folded into the loop:
    #   concat(o_0..o_{H-1}) @ Wo == sum_h o_h @ Wo[h*dv:(h+1)*dv, :]
    # which removes the 8-lane-wide last-axis concat entirely.
    norm_fact = 1.0 / sqrt(D_MODEL)  # matches the PyTorch module (1/sqrt(d_model))
    attn = jnp.zeros((R, D_MODEL), f32)
    for h in range(N_HEADS):
        qh = q[:, :, h * DIM_K:(h + 1) * DIM_K]          # (TB, L, dk) bf16
        kh = k[:, :, h * DIM_K:(h + 1) * DIM_K]          # (TB, L, dk) bf16
        vh = v[:, :, h * DIM_V:(h + 1) * DIM_V]          # (TB, L, dv) bf16
        s = jnp.einsum('bld,bmd->blm', qh, kh,
                       preferred_element_type=f32) * norm_fact  # (TB, L, L) f32
        s = s - jnp.max(s, axis=-1, keepdims=True)
        p = jnp.exp(s)
        p = p * pl.reciprocal(jnp.sum(p, axis=-1, keepdims=True), approx=True)
        o_h = jnp.einsum('blm,bmd->bld', p.astype(bf16), vh,
                         preferred_element_type=f32)             # (TB, L, dv) f32
        attn = attn + jnp.dot(o_h.reshape(R, DIM_V).astype(bf16),
                              wo_ref[h * DIM_V:(h + 1) * DIM_V, :],
                              preferred_element_type=f32)
    attn = attn + bo

    # TODO(synk): dropout layers are identity here (eval mode / no RNG mask).

    # --- residual + LayerNorm 1 (flattened 2D, f32 statistics) ---
    x1 = _layernorm(x + attn, g1, be1)

    # --- pointwise FFN (conv1d k=1 -> matmul), bf16 MXU inputs, f32 acc ---
    h1 = jnp.dot(x1.astype(bf16), w1_ref[...], preferred_element_type=f32) + b1
    h1 = jnp.maximum(h1, 0.0)
    y = jnp.dot(h1.astype(bf16), w2_ref[...], preferred_element_type=f32) + b2

    # --- residual + LayerNorm 2 ---
    out = _layernorm(x1 + y, g2, be2)
    # (TB*L, D) -> (TB, L, D) is a free leading-dim split (last dim unchanged).
    # A lane-dense (TB, L*D) store would need a minor-dim relayout reshape;
    # deferred pending a bundle-dump check of that reshape's lowering.
    out_ref[...] = out.reshape(TB, L, D)


def _pack_params(params):
    """Fuse QKV weights (bf16) and pack all (1, n) vectors into one (8, 128) slab."""
    bf16 = jnp.bfloat16
    wqkv = jnp.concatenate([params["wq"], params["wk"], params["wv"]],
                           axis=1).astype(bf16)                      # (32, 96)
    wo = params["wo"].astype(bf16)                                    # (32, 32)
    w1 = params["w1"].astype(bf16)                                    # (32, 128)
    w2 = params["w2"].astype(bf16)                                    # (128, 32)
    vec = jnp.zeros((8, 128), jnp.float32)
    bqkv = jnp.concatenate([params["bq"][0], params["bk"][0], params["bv"][0]])
    vec = vec.at[0, :QKV_DIM].set(bqkv)
    vec = vec.at[1, :D_MODEL].set(params["bo"][0])
    vec = vec.at[2, :DIM_FC].set(params["b1"][0])
    vec = vec.at[3, :D_MODEL].set(params["b2"][0])
    vec = vec.at[4, :D_MODEL].set(params["g1"][0])
    vec = vec.at[5, :D_MODEL].set(params["be1"][0])
    vec = vec.at[6, :D_MODEL].set(params["g2"][0])
    vec = vec.at[7, :D_MODEL].set(params["be2"][0])
    return wqkv, wo, w1, w2, vec


def _choose_tb(B, L, target_rows, min_grid):
    """Pick batch-per-step so tb*L ~= target_rows (512-2048 sweet spot).

    min_grid > 1 (e.g. 4 on v7x) shrinks tb to guarantee at least that many
    grid steps for per-core pipelining, but never below ~512 rows/step.
    """
    tb = max(1, min(B, max(1, target_rows // max(L, 1))))
    while (min_grid > 1 and tb > 1
           and -(-B // tb) < min_grid
           and (tb // 2) * L >= 512):
        tb //= 2
    return tb


def single_layer_temporal_tsfm(x, params, tb=None, target_rows=1024, min_grid=1,
                               vmem_limit_bytes=32 * 1024 * 1024):
    """x: (B, L, D) float32 -> (B, L, D) float32.

    Tiling guidance (from the perf review):
      * tb is auto-chosen so tb*L ~= `target_rows` (512-2048 rows/step
        amortizes the ~0.35us per-step overhead and feeds the MXU M>=512).
      * v5e / v6e (single TensorCore, 128 MiB VMEM): maximize rows/step —
        grid=1 is fine; you may raise target_rows toward 16-32k and
        vmem_limit_bytes toward 64-96 MiB.
      * v7x (2 TensorCores, 64 MiB VMEM): pass min_grid=4 (keeps both cores
        busy with double-buffered prefetch), keep rows/step <= ~8-16k and
        vmem_limit_bytes <= ~32-48 MiB.
    """
    B, L, D = x.shape
    assert D == D_MODEL
    if tb is None:
        tb = _choose_tb(B, L, target_rows, min_grid)
    tb = max(1, min(tb, B))

    # Pad batch to a multiple of tb (padded rows compute garbage-free values
    # and are sliced off below).
    Bp = ((B + tb - 1) // tb) * tb
    if Bp != B:
        x = jnp.pad(x, ((0, Bp - B), (0, 0), (0, 0)))
    grid = (Bp // tb,)

    wqkv, wo, w1, w2, vec = _pack_params(params)

    in_specs = [
        pl.BlockSpec((tb, L, D), lambda b: (b, 0, 0)),
        pl.BlockSpec(wqkv.shape, lambda b: (0, 0)),
        pl.BlockSpec(wo.shape, lambda b: (0, 0)),
        pl.BlockSpec(w1.shape, lambda b: (0, 0)),
        pl.BlockSpec(w2.shape, lambda b: (0, 0)),
        pl.BlockSpec(vec.shape, lambda b: (0, 0)),
    ]
    out_spec = pl.BlockSpec((tb, L, D), lambda b: (b, 0, 0))

    out = pl.pallas_call(
        tsfm_kernel,
        out_shape=jax.ShapeDtypeStruct((Bp, L, D), jnp.float32),
        grid_spec=pltpu.PrefetchScalarGridSpec(
            num_scalar_prefetch=0,
            grid=grid,
            in_specs=in_specs,
            out_specs=out_spec,
        ),
        compiler_params=pltpu.CompilerParams(
            dimension_semantics=("parallel",),
            vmem_limit_bytes=vmem_limit_bytes,
        ),
    )(x, wqkv, wo, w1, w2, vec)
    return out[:B]


def make_params(key):
    """Deterministic synthetic parameters (PyTorch weights folded for (B,L,D) layout).

    Linear(in, out): torch weight (out, in) -> stored here transposed (in, out).
    Conv1d(in, out, 1): torch weight (out, in, 1) -> stored (in, out).
    Biases / LayerNorm params stored as (1, n) rows.
    """
    ks = jax.random.split(key, 12)
    s = 0.1
    p = {
        "wq": jax.random.normal(ks[0], (D_MODEL, DIM_K * N_HEADS), jnp.float32) * s,
        "bq": jax.random.normal(ks[1], (1, DIM_K * N_HEADS), jnp.float32) * s,
        "wk": jax.random.normal(ks[2], (D_MODEL, DIM_K * N_HEADS), jnp.float32) * s,
        "bk": jax.random.normal(ks[3], (1, DIM_K * N_HEADS), jnp.float32) * s,
        "wv": jax.random.normal(ks[4], (D_MODEL, DIM_V * N_HEADS), jnp.float32) * s,
        "bv": jax.random.normal(ks[5], (1, DIM_V * N_HEADS), jnp.float32) * s,
        "wo": jax.random.normal(ks[6], (DIM_V * N_HEADS, D_MODEL), jnp.float32) * s,
        "bo": jax.random.normal(ks[7], (1, D_MODEL), jnp.float32) * s,
        "w1": jax.random.normal(ks[8], (D_MODEL, DIM_FC), jnp.float32) * s,
        "b1": jax.random.normal(ks[9], (1, DIM_FC), jnp.float32) * s,
        "w2": jax.random.normal(ks[10], (DIM_FC, D_MODEL), jnp.float32) * s,
        "b2": jax.random.normal(ks[11], (1, D_MODEL), jnp.float32) * s,
        "g1": jnp.ones((1, D_MODEL), jnp.float32),
        "be1": jnp.zeros((1, D_MODEL), jnp.float32),
        "g2": jnp.ones((1, D_MODEL), jnp.float32),
        "be2": jnp.zeros((1, D_MODEL), jnp.float32),
    }
    return p


def ref_forward(x, p):
    """Pure-JAX f32 reference matching the PyTorch forward (dropout = identity)."""
    B, L, D = x.shape
    q = (x @ p["wq"] + p["bq"]).reshape(B, L, N_HEADS, DIM_K)
    k = (x @ p["wk"] + p["bk"]).reshape(B, L, N_HEADS, DIM_K)
    v = (x @ p["wv"] + p["bv"]).reshape(B, L, N_HEADS, DIM_V)
    scores = jnp.einsum("blhe,bshe->bhls", q, k) * (1.0 / sqrt(D_MODEL))
    scores = jax.nn.softmax(scores, axis=-1)
    attn = jnp.einsum("bhls,bshd->blhd", scores, v).reshape(B, L, -1)
    attn = attn @ p["wo"] + p["bo"]

    def ln(z, g, b):
        m = jnp.mean(z, -1, keepdims=True)
        var = jnp.mean((z - m) ** 2, -1, keepdims=True)
        return (z - m) / jnp.sqrt(var + EPS) * g + b

    x1 = ln(x + attn, p["g1"], p["be1"])
    y = jnp.maximum(x1 @ p["w1"] + p["b1"], 0.0) @ p["w2"] + p["b2"]
    return ln(x1 + y, p["g2"], p["be2"])


if __name__ == "__main__":
    key = jax.random.PRNGKey(0)
    kx, kp = jax.random.split(key)

    # Small demo shapes: 16 batch x 8 seq x 32 channels.
    B, L = 16, 8
    x = jax.random.normal(kx, (B, L, D_MODEL), jnp.float32)
    params = make_params(kp)
    ref = ref_forward(x, params)

    # Tolerance accounts for bf16 MXU operands (weights + activation casts,
    # ~0.4% per-operand rounding) plus the EUP approximate softmax reciprocal;
    # statistics (softmax max/sum, LayerNorm mean/var) stay in f32.
    ATOL = RTOL = 3e-2

    # 1) Default auto tiling: tb = min(B, 1024 // L) -> grid=1 at this tiny B
    #    (the v5e/v6e single-TensorCore sweet spot — maximize rows/step).
    out = jax.block_until_ready(single_layer_temporal_tsfm(x, params))
    np.testing.assert_allclose(np.asarray(out), np.asarray(ref), atol=ATOL, rtol=RTOL)

    # 2) Multi-step grid path (the shape a v7x-sized batch would use):
    #    tb=5 -> Bp=20, grid=4 parallel steps, exercises batch padding too.
    out2 = jax.block_until_ready(single_layer_temporal_tsfm(x, params, tb=5))
    np.testing.assert_allclose(np.asarray(out2), np.asarray(ref), atol=ATOL, rtol=RTOL)

    print("KERNEL_OK")
</pallas_src>

<mosaic_0001>
module attributes {stable_mosaic.version = 11 : i64} {
  func.func @tsfm_kernel(%arg0: i32, %arg1: memref<16x8x32xf32, #tpu.memory_space<vmem>>, %arg2: memref<32x96xbf16, #tpu.memory_space<vmem>>, %arg3: memref<32x32xbf16, #tpu.memory_space<vmem>>, %arg4: memref<32x128xbf16, #tpu.memory_space<vmem>>, %arg5: memref<128x32xbf16, #tpu.memory_space<vmem>>, %arg6: memref<8x128xf32, #tpu.memory_space<vmem>>, %arg7: memref<16x8x32xf32, #tpu.memory_space<vmem>>) attributes {dimension_semantics = [#tpu.dimension_semantics<parallel>], iteration_bounds = array<i64: 1>, scalar_prefetch = 0 : i64, scratch_operands = 0 : i64, tpu.core_type = #tpu.core_type<tc>, window_params = [{transform_indices = @transform_0, window_bounds = array<i64: 16, 8, 32>}, {pipeline_mode = #tpu.pipeline_mode<synchronous>, transform_indices = @transform_1, window_bounds = array<i64: 32, 96>}, {pipeline_mode = #tpu.pipeline_mode<synchronous>, transform_indices = @transform_2, window_bounds = array<i64: 32, 32>}, {pipeline_mode = #tpu.pipeline_mode<synchronous>, transform_indices = @transform_3, window_bounds = array<i64: 32, 128>}, {pipeline_mode = #tpu.pipeline_mode<synchronous>, transform_indices = @transform_4, window_bounds = array<i64: 128, 32>}, {pipeline_mode = #tpu.pipeline_mode<synchronous>, transform_indices = @transform_5, window_bounds = array<i64: 8, 128>}, {transform_indices = @transform_6, window_bounds = array<i64: 16, 8, 32>}]} {
    %c0 = arith.constant 0 : index
    %c0_0 = arith.constant 0 : index
    %c0_1 = arith.constant 0 : index
    %0 = vector.load %arg1[%c0, %c0_0, %c0_1] : memref<16x8x32xf32, #tpu.memory_space<vmem>>, vector<16x8x32xf32>
    %1 = vector.shape_cast %0 : vector<16x8x32xf32> to vector<128x32xf32>
    %2 = arith.truncf %1 : vector<128x32xf32> to vector<128x32xbf16>
    %c0_2 = arith.constant 0 : index
    %c0_3 = arith.constant 0 : index
    %3 = vector.load %arg6[%c0_2, %c0_3] : memref<8x128xf32, #tpu.memory_space<vmem>>, vector<1x96xf32>
    %c1 = arith.constant 1 : index
    %c0_4 = arith.constant 0 : index
    %4 = vector.load %arg6[%c1, %c0_4] : memref<8x128xf32, #tpu.memory_space<vmem>>, vector<1x32xf32>
    %c2 = arith.constant 2 : index
    %c0_5 = arith.constant 0 : index
    %5 = vector.load %arg6[%c2, %c0_5] : memref<8x128xf32, #tpu.memory_space<vmem>>, vector<1x128xf32>
    %c3 = arith.constant 3 : index
    %c0_6 = arith.constant 0 : index
    %6 = vector.load %arg6[%c3, %c0_6] : memref<8x128xf32, #tpu.memory_space<vmem>>, vector<1x32xf32>
    %c4 = arith.constant 4 : index
    %c0_7 = arith.constant 0 : index
    %7 = vector.load %arg6[%c4, %c0_7] : memref<8x128xf32, #tpu.memory_space<vmem>>, vector<1x32xf32>
    %c5 = arith.constant 5 : index
    %c0_8 = arith.constant 0 : index
    %8 = vector.load %arg6[%c5, %c0_8] : memref<8x128xf32, #tpu.memory_space<vmem>>, vector<1x32xf32>
    %c6 = arith.constant 6 : index
    %c0_9 = arith.constant 0 : index
    %9 = vector.load %arg6[%c6, %c0_9] : memref<8x128xf32, #tpu.memory_space<vmem>>, vector<1x32xf32>
    %c7 = arith.constant 7 : index
    %c0_10 = arith.constant 0 : index
    %10 = vector.load %arg6[%c7, %c0_10] : memref<8x128xf32, #tpu.memory_space<vmem>>, vector<1x32xf32>
    %c0_11 = arith.constant 0 : index
    %c0_12 = arith.constant 0 : index
    %11 = vector.load %arg2[%c0_11, %c0_12] : memref<32x96xbf16, #tpu.memory_space<vmem>>, vector<32x96xbf16>
    %cst = arith.constant dense<0.000000e+00> : vector<128x96xf32>
    %12 = tpu.matmul %2, %11, %cst {dimension_numbers = #tpu.dot_dimension_numbers<[1], [0], [0], [1], [0, 0, 1, 1], [], []>} : vector<128x32xbf16>, vector<32x96xbf16>, vector<128x96xf32> -> vector<128x96xf32>
    %13 = vector.broadcast %3 : vector<1x96xf32> to vector<128x96xf32>
    %14 = arith.addf %12, %13 : vector<128x96xf32>
    %15 = vector.extract_strided_slice %14 {offsets = [0, 0], sizes = [128, 32], strides = [1, 1]} : vector<128x96xf32> to vector<128x32xf32>
    %16 = arith.truncf %15 : vector<128x32xf32> to vector<128x32xbf16>
    %17 = vector.shape_cast %16 : vector<128x32xbf16> to vector<16x8x32xbf16>
    %18 = vector.extract_strided_slice %14 {offsets = [0, 32], sizes = [128, 32], strides = [1, 1]} : vector<128x96xf32> to vector<128x32xf32>
    %19 = arith.truncf %18 : vector<128x32xf32> to vector<128x32xbf16>
    %20 = vector.shape_cast %19 : vector<128x32xbf16> to vector<16x8x32xbf16>
    %21 = vector.extract_strided_slice %14 {offsets = [0, 64], sizes = [128, 32], strides = [1, 1]} : vector<128x96xf32> to vector<128x32xf32>
    %22 = arith.truncf %21 : vector<128x32xf32> to vector<128x32xbf16>
    %23 = vector.shape_cast %22 : vector<128x32xbf16> to vector<16x8x32xbf16>
    %cst_13 = arith.constant 0.000000e+00 : f32
    %24 = vector.broadcast %cst_13 : f32 to vector<128x32xf32>
    %25 = vector.extract_strided_slice %17 {offsets = [0, 0, 0], sizes = [16, 8, 8], strides = [1, 1, 1]} : vector<16x8x32xbf16> to vector<16x8x8xbf16>
    %26 = vector.extract_strided_slice %20 {offsets = [0, 0, 0], sizes = [16, 8, 8], strides = [1, 1, 1]} : vector<16x8x32xbf16> to vector<16x8x8xbf16>
    %27 = vector.extract_strided_slice %23 {offsets = [0, 0, 0], sizes = [16, 8, 8], strides = [1, 1, 1]} : vector<16x8x32xbf16> to vector<16x8x8xbf16>
    "tpu.trace_start"() <{level = 10 : i32, message = "bld,bmd->blm"}> : () -> ()
    %cst_14 = arith.constant dense<0.000000e+00> : vector<16x8x8xf32>
    %28 = tpu.matmul %25, %26, %cst_14 {dimension_numbers = #tpu.dot_dimension_numbers<[2], [2], [1], [1], [0, 0, 0, 1, 1, 1], [0], [0]>} : vector<16x8x8xbf16>, vector<16x8x8xbf16>, vector<16x8x8xf32> -> vector<16x8x8xf32>
    "tpu.trace_stop"() : () -> ()
    %cst_15 = arith.constant 0.176776692 : f32
    %29 = vector.broadcast %cst_15 : f32 to vector<16x8x8xf32>
    %30 = arith.mulf %28, %29 : vector<16x8x8xf32>
    %cst_16 = arith.constant dense<0xFF800000> : vector<16x8xf32>
    %31 = vector.multi_reduction <maximumf>, %30, %cst_16 [2] : vector<16x8x8xf32> to vector<16x8xf32>
    %32 = vector.shape_cast %31 : vector<16x8xf32> to vector<16x8x1xf32>
    %33 = vector.broadcast %32 : vector<16x8x1xf32> to vector<16x8x8xf32>
    %34 = arith.subf %30, %33 : vector<16x8x8xf32>
    %35 = math.exp %34 : vector<16x8x8xf32>
    %cst_17 = arith.constant dense<0.000000e+00> : vector<16x8xf32>
    %36 = vector.multi_reduction <add>, %35, %cst_17 [2] : vector<16x8x8xf32> to vector<16x8xf32>
    %37 = vector.shape_cast %36 : vector<16x8xf32> to vector<16x8x1xf32>
    %38 = tpu.reciprocal %37 {approx = true} : vector<16x8x1xf32> -> vector<16x8x1xf32>
    %39 = vector.broadcast %38 : vector<16x8x1xf32> to vector<16x8x8xf32>
    %40 = arith.mulf %35, %39 : vector<16x8x8xf32>
    %41 = arith.truncf %40 : vector<16x8x8xf32> to vector<16x8x8xbf16>
    "tpu.trace_start"() <{level = 10 : i32, message = "blm,bmd->bld"}> : () -> ()
    %cst_18 = arith.constant dense<0.000000e+00> : vector<16x8x8xf32>
    %42 = tpu.matmul %41, %27, %cst_18 {dimension_numbers = #tpu.dot_dimension_numbers<[2], [1], [1], [2], [0, 0, 0, 1, 1, 2], [0], [0]>} : vector<16x8x8xbf16>, vector<16x8x8xbf16>, vector<16x8x8xf32> -> vector<16x8x8xf32>
    "tpu.trace_stop"() : () -> ()
    %43 = vector.shape_cast %42 : vector<16x8x8xf32> to vector<128x8xf32>
    %44 = arith.truncf %43 : vector<128x8xf32> to vector<128x8xbf16>
    %c0_19 = arith.constant 0 : index
    %c0_20 = arith.constant 0 : index
    %45 = vector.load %arg3[%c0_19, %c0_20] : memref<32x32xbf16, #tpu.memory_space<vmem>>, vector<8x32xbf16>
    %cst_21 = arith.constant dense<0.000000e+00> : vector<128x32xf32>
    %46 = tpu.matmul %44, %45, %cst_21 {dimension_numbers = #tpu.dot_dimension_numbers<[1], [0], [0], [1], [0, 0, 1, 1], [], []>} : vector<128x8xbf16>, vector<8x32xbf16>, vector<128x32xf32> -> vector<128x32xf32>
    %47 = arith.addf %24, %46 : vector<128x32xf32>
    %48 = vector.extract_strided_slice %17 {offsets = [0, 0, 8], sizes = [16, 8, 8], strides = [1, 1, 1]} : vector<16x8x32xbf16> to vector<16x8x8xbf16>
    %49 = vector.extract_strided_slice %20 {offsets = [0, 0, 8], sizes = [16, 8, 8], strides = [1, 1, 1]} : vector<16x8x32xbf16> to vector<16x8x8xbf16>
    %50 = vector.extract_strided_slice %23 {offsets = [0, 0, 8], sizes = [16, 8, 8], strides = [1, 1, 1]} : vector<16x8x32xbf16> to vector<16x8x8xbf16>
    "tpu.trace_start"() <{level = 10 : i32, message = "bld,bmd->blm"}> : () -> ()
    %cst_22 = arith.constant dense<0.000000e+00> : vector<16x8x8xf32>
    %51 = tpu.matmul %48, %49, %cst_22 {dimension_numbers = #tpu.dot_dimension_numbers<[2], [2], [1], [1], [0, 0, 0, 1, 1, 1], [0], [0]>} : vector<16x8x8xbf16>, vector<16x8x8xbf16>, vector<16x8x8xf32> -> vector<16x8x8xf32>
    "tpu.trace_stop"() : () -> ()
    %cst_23 = arith.constant 0.176776692 : f32
    %52 = vector.broadcast %cst_23 : f32 to vector<16x8x8xf32>
    %53 = arith.mulf %51, %52 : vector<16x8x8xf32>
    %cst_24 = arith.constant dense<0xFF800000> : vector<16x8xf32>
    %54 = vector.multi_reduction <maximumf>, %53, %cst_24 [2] : vector<16x8x8xf32> to vector<16x8xf32>
    %55 = vector.shape_cast %54 : vector<16x8xf32> to vector<16x8x1xf32>
    %56 = vector.broadcast %55 : vector<16x8x1xf32> to vector<16x8x8xf32>
    %57 = arith.subf %53, %56 : vector<16x8x8xf32>
    %58 = math.exp %57 : vector<16x8x8xf32>
    %cst_25 = arith.constant dense<0.000000e+00> : vector<16x8xf32>
    %59 = vector.multi_reduction <add>, %58, %cst_25 [2] : vector<16x8x8xf32> to vector<16x8xf32>
    %60 = vector.shape_cast %59 : vector<16x8xf32> to vector<16x8x1xf32>
    %61 = tpu.reciprocal %60 {approx = true} : vector<16x8x1xf32> -> vector<16x8x1xf32>
    %62 = vector.broadcast %61 : vector<16x8x1xf32> to vector<16x8x8xf32>
    %63 = arith.mulf %58, %62 : vector<16x8x8xf32>
    %64 = arith.truncf %63 : vector<16x8x8xf32> to vector<16x8x8xbf16>
    "tpu.trace_start"() <{level = 10 : i32, message = "blm,bmd->bld"}> : () -> ()
    %cst_26 = arith.constant dense<0.000000e+00> : vector<16x8x8xf32>
    %65 = tpu.matmul %64, %50, %cst_26 {dimension_numbers = #tpu.dot_dimension_numbers<[2], [1], [1], [2], [0, 0, 0, 1, 1, 2], [0], [0]>} : vector<16x8x8xbf16>, vector<16x8x8xbf16>, vector<16x8x8xf32> -> vector<16x8x8xf32>
    "tpu.trace_stop"() : () -> ()
    %66 = vector.shape_cast %65 : vector<16x8x8xf32> to vector<128x8xf32>
    %67 = arith.truncf %66 : vector<128x8xf32> to vector<128x8xbf16>
    %c8 = arith.constant 8 : index
    %c0_27 = arith.constant 0 : index
    %68 = vector.load %arg3[%c8, %c0_27] : memref<32x32xbf16, #tpu.memory_space<vmem>>, vector<8x32xbf16>
    %cst_28 = arith.constant dense<0.000000e+00> : vector<128x32xf32>
    %69 = tpu.matmul %67, %68, %cst_28 {dimension_numbers = #tpu.dot_dimension_numbers<[1], [0], [0], [1], [0, 0, 1, 1], [], []>} : vector<128x8xbf16>, vector<8x32xbf16>, vector<128x32xf32> -> vector<128x32xf32>
    %70 = arith.addf %47, %69 : vector<128x32xf32>
    %71 = vector.extract_strided_slice %17 {offsets = [0, 0, 16], sizes = [16, 8, 8], strides = [1, 1, 1]} : vector<16x8x32xbf16> to vector<16x8x8xbf16>
    %72 = vector.extract_strided_slice %20 {offsets = [0, 0, 16], sizes = [16, 8, 8], strides = [1, 1, 1]} : vector<16x8x32xbf16> to vector<16x8x8xbf16>
    %73 = vector.extract_strided_slice %23 {offsets = [0, 0, 16], sizes = [16, 8, 8], strides = [1, 1, 1]} : vector<16x8x32xbf16> to vector<16x8x8xbf16>
    "tpu.trace_start"() <{level = 10 : i32, message = "bld,bmd->blm"}> : () -> ()
    %cst_29 = arith.constant dense<0.000000e+00> : vector<16x8x8xf32>
    %74 = tpu.matmul %71, %72, %cst_29 {dimension_numbers = #tpu.dot_dimension_numbers<[2], [2], [1], [1], [0, 0, 0, 1, 1, 1], [0], [0]>} : vector<16x8x8xbf16>, vector<16x8x8xbf16>, vector<16x8x8xf32> -> vector<16x8x8xf32>
    "tpu.trace_stop"() : () -> ()
    %cst_30 = arith.constant 0.176776692 : f32
    %75 = vector.broadcast %cst_30 : f32 to vector<16x8x8xf32>
    %76 = arith.mulf %74, %75 : vector<16x8x8xf32>
    %cst_31 = arith.constant dense<0xFF800000> : vector<16x8xf32>
    %77 = vector.multi_reduction <maximumf>, %76, %cst_31 [2] : vector<16x8x8xf32> to vector<16x8xf32>
    %78 = vector.shape_cast %77 : vector<16x8xf32> to vector<16x8x1xf32>
    %79 = vector.broadcast %78 : vector<16x8x1xf32> to vector<16x8x8xf32>
    %80 = arith.subf %76, %79 : vector<16x8x8xf32>
    %81 = math.exp %80 : vector<16x8x8xf32>
    %cst_32 = arith.constant dense<0.000000e+00> : vector<16x8xf32>
    %82 = vector.multi_reduction <add>, %81, %cst_32 [2] : vector<16x8x8xf32> to vector<16x8xf32>
    %83 = vector.shape_cast %82 : vector<16x8xf32> to vector<16x8x1xf32>
    %84 = tpu.reciprocal %83 {approx = true} : vector<16x8x1xf32> -> vector<16x8x1xf32>
    %85 = vector.broadcast %84 : vector<16x8x1xf32> to vector<16x8x8xf32>
    %86 = arith.mulf %81, %85 : vector<16x8x8xf32>
    %87 = arith.truncf %86 : vector<16x8x8xf32> to vector<16x8x8xbf16>
    "tpu.trace_start"() <{level = 10 : i32, message = "blm,bmd->bld"}> : () -> ()
    %cst_33 = arith.constant dense<0.000000e+00> : vector<16x8x8xf32>
    %88 = tpu.matmul %87, %73, %cst_33 {dimension_numbers = #tpu.dot_dimension_numbers<[2], [1], [1], [2], [0, 0, 0, 1, 1, 2], [0], [0]>} : vector<16x8x8xbf16>, vector<16x8x8xbf16>, vector<16x8x8xf32> -> vector<16x8x8xf32>
    "tpu.trace_stop"() : () -> ()
    %89 = vector.shape_cast %88 : vector<16x8x8xf32> to vector<128x8xf32>
    %90 = arith.truncf %89 : vector<128x8xf32> to vector<128x8xbf16>
    %c16 = arith.constant 16 : index
    %c0_34 = arith.constant 0 : index
    %91 = vector.load %arg3[%c16, %c0_34] : memref<32x32xbf16, #tpu.memory_space<vmem>>, vector<8x32xbf16>
    %cst_35 = arith.constant dense<0.000000e+00> : vector<128x32xf32>
    %92 = tpu.matmul %90, %91, %cst_35 {dimension_numbers = #tpu.dot_dimension_numbers<[1], [0], [0], [1], [0, 0, 1, 1], [], []>} : vector<128x8xbf16>, vector<8x32xbf16>, vector<128x32xf32> -> vector<128x32xf32>
    %93 = arith.addf %70, %92 : vector<128x32xf32>
    %94 = vector.extract_strided_slice %17 {offsets = [0, 0, 24], sizes = [16, 8, 8], strides = [1, 1, 1]} : vector<16x8x32xbf16> to vector<16x8x8xbf16>
    %95 = vector.extract_strided_slice %20 {offsets = [0, 0, 24], sizes = [16, 8, 8], strides = [1, 1, 1]} : vector<16x8x32xbf16> to vector<16x8x8xbf16>
    %96 = vector.extract_strided_slice %23 {offsets = [0, 0, 24], sizes = [16, 8, 8], strides = [1, 1, 1]} : vector<16x8x32xbf16> to vector<16x8x8xbf16>
    "tpu.trace_start"() <{level = 10 : i32, message = "bld,bmd->blm"}> : () -> ()
    %cst_36 = arith.constant dense<0.000000e+00> : vector<16x8x8xf32>
    %97 = tpu.matmul %94, %95, %cst_36 {dimension_numbers = #tpu.dot_dimension_numbers<[2], [2], [1], [1], [0, 0, 0, 1, 1, 1], [0], [0]>} : vector<16x8x8xbf16>, vector<16x8x8xbf16>, vector<16x8x8xf32> -> vector<16x8x8xf32>
    "tpu.trace_stop"() : () -> ()
    %cst_37 = arith.constant 0.176776692 : f32
    %98 = vector.broadcast %cst_37 : f32 to vector<16x8x8xf32>
    %99 = arith.mulf %97, %98 : vector<16x8x8xf32>
    %cst_38 = arith.constant dense<0xFF800000> : vector<16x8xf32>
    %100 = vector.multi_reduction <maximumf>, %99, %cst_38 [2] : vector<16x8x8xf32> to vector<16x8xf32>
    %101 = vector.shape_cast %100 : vector<16x8xf32> to vector<16x8x1xf32>
    %102 = vector.broadcast %101 : vector<16x8x1xf32> to vector<16x8x8xf32>
    %103 = arith.subf %99, %102 : vector<16x8x8xf32>
    %104 = math.exp %103 : vector<16x8x8xf32>
    %cst_39 = arith.constant dense<0.000000e+00> : vector<16x8xf32>
    %105 = vector.multi_reduction <add>, %104, %cst_39 [2] : vector<16x8x8xf32> to vector<16x8xf32>
    %106 = vector.shape_cast %105 : vector<16x8xf32> to vector<16x8x1xf32>
    %107 = tpu.reciprocal %106 {approx = true} : vector<16x8x1xf32> -> vector<16x8x1xf32>
    %108 = vector.broadcast %107 : vector<16x8x1xf32> to vector<16x8x8xf32>
    %109 = arith.mulf %104, %108 : vector<16x8x8xf32>
    %110 = arith.truncf %109 : vector<16x8x8xf32> to vector<16x8x8xbf16>
    "tpu.trace_start"() <{level = 10 : i32, message = "blm,bmd->bld"}> : () -> ()
    %cst_40 = arith.constant dense<0.000000e+00> : vector<16x8x8xf32>
    %111 = tpu.matmul %110, %96, %cst_40 {dimension_numbers = #tpu.dot_dimension_numbers<[2], [1], [1], [2], [0, 0, 0, 1, 1, 2], [0], [0]>} : vector<16x8x8xbf16>, vector<16x8x8xbf16>, vector<16x8x8xf32> -> vector<16x8x8xf32>
    "tpu.trace_stop"() : () -> ()
    %112 = vector.shape_cast %111 : vector<16x8x8xf32> to vector<128x8xf32>
    %113 = arith.truncf %112 : vector<128x8xf32> to vector<128x8xbf16>
    %c24 = arith.constant 24 : index
    %c0_41 = arith.constant 0 : index
    %114 = vector.load %arg3[%c24, %c0_41] : memref<32x32xbf16, #tpu.memory_space<vmem>>, vector<8x32xbf16>
    %cst_42 = arith.constant dense<0.000000e+00> : vector<128x32xf32>
    %115 = tpu.matmul %113, %114, %cst_42 {dimension_numbers = #tpu.dot_dimension_numbers<[1], [0], [0], [1], [0, 0, 1, 1], [], []>} : vector<128x8xbf16>, vector<8x32xbf16>, vector<128x32xf32> -> vector<128x32xf32>
    %116 = arith.addf %93, %115 : vector<128x32xf32>
    %117 = vector.broadcast %4 : vector<1x32xf32> to vector<128x32xf32>
    %118 = arith.addf %116, %117 : vector<128x32xf32>
    %119 = arith.addf %1, %118 : vector<128x32xf32>
    %cst_43 = arith.constant dense<0.000000e+00> : vector<128xf32>
    %120 = vector.multi_reduction <add>, %119, %cst_43 [1] : vector<128x32xf32> to vector<128xf32>
    %121 = vector.shape_cast %120 : vector<128xf32> to vector<128x1xf32>
    %cst_44 = arith.constant 3.200000e+01 : f32
    %122 = vector.broadcast %cst_44 : f32 to vector<128x1xf32>
    %123 = arith.divf %121, %122 : vector<128x1xf32>
    %124 = arith.mulf %119, %119 : vector<128x32xf32>
    %cst_45 = arith.constant dense<0.000000e+00> : vector<128xf32>
    %125 = vector.multi_reduction <add>, %124, %cst_45 [1] : vector<128x32xf32> to vector<128xf32>
    %126 = vector.shape_cast %125 : vector<128xf32> to vector<128x1xf32>
    %cst_46 = arith.constant 3.200000e+01 : f32
    %127 = vector.broadcast %cst_46 : f32 to vector<128x1xf32>
    %128 = arith.divf %126, %127 : vector<128x1xf32>
    %129 = arith.mulf %123, %123 : vector<128x1xf32>
    %130 = arith.subf %128, %129 : vector<128x1xf32>
    %131 = vector.broadcast %123 : vector<128x1xf32> to vector<128x32xf32>
    %132 = arith.subf %119, %131 : vector<128x32xf32>
    %cst_47 = arith.constant 9.99999974E-6 : f32
    %133 = vector.broadcast %cst_47 : f32 to vector<128x1xf32>
    %134 = arith.addf %130, %133 : vector<128x1xf32>
    %135 = math.rsqrt %134 : vector<128x1xf32>
    %136 = vector.broadcast %135 : vector<128x1xf32> to vector<128x32xf32>
    %137 = arith.mulf %132, %136 : vector<128x32xf32>
    %138 = vector.broadcast %7 : vector<1x32xf32> to vector<128x32xf32>
    %139 = arith.mulf %137, %138 : vector<128x32xf32>
    %140 = vector.broadcast %8 : vector<1x32xf32> to vector<128x32xf32>
    %141 = arith.addf %139, %140 : vector<128x32xf32>
    %142 = arith.truncf %141 : vector<128x32xf32> to vector<128x32xbf16>
    %c0_48 = arith.constant 0 : index
    %c0_49 = arith.constant 0 : index
    %143 = vector.load %arg4[%c0_48, %c0_49] : memref<32x128xbf16, #tpu.memory_space<vmem>>, vector<32x128xbf16>
    %cst_50 = arith.constant dense<0.000000e+00> : vector<128x128xf32>
    %144 = tpu.matmul %142, %143, %cst_50 {dimension_numbers = #tpu.dot_dimension_numbers<[1], [0], [0], [1], [0, 0, 1, 1], [], []>} : vector<128x32xbf16>, vector<32x128xbf16>, vector<128x128xf32> -> vector<128x128xf32>
    %145 = vector.broadcast %5 : vector<1x128xf32> to vector<128x128xf32>
    %146 = arith.addf %144, %145 : vector<128x128xf32>
    %cst_51 = arith.constant 0.000000e+00 : f32
    %147 = vector.broadcast %cst_51 : f32 to vector<128x128xf32>
    %148 = arith.maximumf %146, %147 : vector<128x128xf32>
    %149 = arith.truncf %148 : vector<128x128xf32> to vector<128x128xbf16>
    %c0_52 = arith.constant 0 : index
    %c0_53 = arith.constant 0 : index
    %150 = vector.load %arg5[%c0_52, %c0_53] : memref<128x32xbf16, #tpu.memory_space<vmem>>, vector<128x32xbf16>
    %cst_54 = arith.constant dense<0.000000e+00> : vector<128x32xf32>
    %151 = tpu.matmul %149, %150, %cst_54 {dimension_numbers = #tpu.dot_dimension_numbers<[1], [0], [0], [1], [0, 0, 1, 1], [], []>} : vector<128x128xbf16>, vector<128x32xbf16>, vector<128x32xf32> -> vector<128x32xf32>
    %152 = vector.broadcast %6 : vector<1x32xf32> to vector<128x32xf32>
    %153 = arith.addf %151, %152 : vector<128x32xf32>
    %154 = arith.addf %141, %153 : vector<128x32xf32>
    %cst_55 = arith.constant dense<0.000000e+00> : vector<128xf32>
    %155 = vector.multi_reduction <add>, %154, %cst_55 [1] : vector<128x32xf32> to vector<128xf32>
    %156 = vector.shape_cast %155 : vector<128xf32> to vector<128x1xf32>
    %cst_56 = arith.constant 3.200000e+01 : f32
    %157 = vector.broadcast %cst_56 : f32 to vector<128x1xf32>
    %158 = arith.divf %156, %157 : vector<128x1xf32>
    %159 = arith.mulf %154, %154 : vector<128x32xf32>
    %cst_57 = arith.constant dense<0.000000e+00> : vector<128xf32>
    %160 = vector.multi_reduction <add>, %159, %cst_57 [1] : vector<128x32xf32> to vector<128xf32>
    %161 = vector.shape_cast %160 : vector<128xf32> to vector<128x1xf32>
    %cst_58 = arith.constant 3.200000e+01 : f32
    %162 = vector.broadcast %cst_58 : f32 to vector<128x1xf32>
    %163 = arith.divf %161, %162 : vector<128x1xf32>
    %164 = arith.mulf %158, %158 : vector<128x1xf32>
    %165 = arith.subf %163, %164 : vector<128x1xf32>
    %166 = vector.broadcast %158 : vector<128x1xf32> to vector<128x32xf32>
    %167 = arith.subf %154, %166 : vector<128x32xf32>
    %cst_59 = arith.constant 9.99999974E-6 : f32
    %168 = vector.broadcast %cst_59 : f32 to vector<128x1xf32>
    %169 = arith.addf %165, %168 : vector<128x1xf32>
    %170 = math.rsqrt %169 : vector<128x1xf32>
    %171 = vector.broadcast %170 : vector<128x1xf32> to vector<128x32xf32>
    %172 = arith.mulf %167, %171 : vector<128x32xf32>
    %173 = vector.broadcast %9 : vector<1x32xf32> to vector<128x32xf32>
    %174 = arith.mulf %172, %173 : vector<128x32xf32>
    %175 = vector.broadcast %10 : vector<1x32xf32> to vector<128x32xf32>
    %176 = arith.addf %174, %175 : vector<128x32xf32>
    %177 = vector.shape_cast %176 : vector<128x32xf32> to vector<16x8x32xf32>
    %c0_60 = arith.constant 0 : index
    %c0_61 = arith.constant 0 : index
    %c0_62 = arith.constant 0 : index
    %178 = vector.load %arg7[%c0_60, %c0_61, %c0_62] : memref<16x8x32xf32, #tpu.memory_space<vmem>>, vector<16x8x32xf32>
    tpu.vector_store %arg7[%c0_60, %c0_61, %c0_62], %177 {strides = array<i32>} : memref<16x8x32xf32, #tpu.memory_space<vmem>>, vector<16x8x32xf32>,
    return
  }
  func.func @transform_0(%arg0: i32) -> (i32, i32, i32) {
    %c0_i32 = arith.constant 0 : i32
    %c0_i32_0 = arith.constant 0 : i32
    %c0_i32_1 = arith.constant 0 : i32
    return %arg0, %c0_i32, %c0_i32_0 : i32, i32, i32
  }
  func.func @transform_1(%arg0: i32) -> (i32, i32) {
    %c0_i32 = arith.constant 0 : i32
    %c0_i32_0 = arith.constant 0 : i32
    %c0_i32_1 = arith.constant 0 : i32
    return %c0_i32, %c0_i32_0 : i32, i32
  }
  func.func @transform_2(%arg0: i32) -> (i32, i32) {
    %c0_i32 = arith.constant 0 : i32
    %c0_i32_0 = arith.constant 0 : i32
    %c0_i32_1 = arith.constant 0 : i32
    return %c0_i32, %c0_i32_0 : i32, i32
  }
  func.func @transform_3(%arg0: i32) -> (i32, i32) {
    %c0_i32 = arith.constant 0 : i32
    %c0_i32_0 = arith.constant 0 : i32
    %c0_i32_1 = arith.constant 0 : i32
    return %c0_i32, %c0_i32_0 : i32, i32
  }
  func.func @transform_4(%arg0: i32) -> (i32, i32) {
    %c0_i32 = arith.constant 0 : i32
    %c0_i32_0 = arith.constant 0 : i32
    %c0_i32_1 = arith.constant 0 : i32
    return %c0_i32, %c0_i32_0 : i32, i32
  }
  func.func @transform_5(%arg0: i32) -> (i32, i32) {
    %c0_i32 = arith.constant 0 : i32
    %c0_i32_0 = arith.constant 0 : i32
    %c0_i32_1 = arith.constant 0 : i32
    return %c0_i32, %c0_i32_0 : i32, i32
  }
  func.func @transform_6(%arg0: i32) -> (i32, i32, i32) {
    %c0_i32 = arith.constant 0 : i32
    %c0_i32_0 = arith.constant 0 : i32
    %c0_i32_1 = arith.constant 0 : i32
    return %arg0, %c0_i32, %c0_i32_0 : i32, i32, i32
  }
}

</mosaic_0001>

<bundles_post_ra>
// kernel: tpu_custom_call.1
= control target key start
LH: loop header
LB: loop body
LE: loop exit
PB: predicated region body
PF: predicated region fallthrough
CT: control target
= control target key end

     0   :  { %11 = vsyncpa [#allocation3], 0  ;;  %s8962_s0 = inlined_call_operand.hbm [shape: f32[16,8,32], index: 0, kind: input, shape index: {}]   ;;  %s8963_s1 = inlined_call_operand.vmem [shape: bf16[32,96], index: 1, kind: input, shape index: {}]   ;;  %s8964_s2 = inlined_call_operand.vmem [shape: bf16[32,32], index: 2, kind: input, shape index: {}]   ;;  %s8965_s3 = inlined_call_operand.vmem [shape: bf16[32,128], index: 3, kind: input, shape index: {}]   ;;  %s8966_s4 = inlined_call_operand.vmem [shape: bf16[128,32], index: 4, kind: input, shape index: {}]   ;;  %s8967_s5 = inlined_call_operand.vmem [shape: f32[8,128], index: 5, kind: input, shape index: {}]   ;;  %s8968_s6 = inlined_call_operand.hbm [shape: f32[16,8,32], index: 6, kind: output, shape index: {}]  }
   0x1   :  { %12 = vsyncpa [#allocation4], 0  ;;  %s17_s23 = sshll.u32 %s8962_s0, 4  ;;  %s6041_s24 = smov [#allocation2]   ;;  %s18_s23 = int_to_ptr.hbm [resolvable:$true] %s17_s23 }
   0x2   :  { %s19_s25 = sshll.u32 %s6041_s24, 4  ;;  %s6042_s26 = smov 128   ;;  %s20_s25 = int_to_ptr.vmem [resolvable:$true] %s19_s25 }
   0x3   :  { %s6043_s27 = smov 8  }
   0x4   :  { %25 = dma.hbm_to_vmem [thread:$0]  %s18_s23, 2048, %s20_s25, [#allocation3], %s6042_s26, %s6042_s26, %s6043_s27  }
   0x5   :  { %6037 = dma.done.wait [#allocation3], 2048  }
   0x6   :  { %6038 = vsyncadd [#allocation3], 4294965248  ;;  %v5606_v0 = vld [vmem:[%s8963_s1 + $0x8] sm:$0xff]  ;;  %v5605_v1 = vld [vmem:[%s8963_s1] sm:$0xff]  ;;  %vm90_vm0 = vcmask 261120   ;;  %s6044_s8 = smov 96  }
   0x7   :  { %121 = vmatpush.bf16.msra.mxu0 %v5606_v0  ;;  %v41_v2 = vld [vmem:[#allocation2] sm:$0xff]  ;;  %v42_v3 = vld [vmem:[#allocation2 + $0x8] sm:$0xff]  ;;  %5617 = vmatpush.bf16.msra.mxu3 %v5606_v0  ;;  %v43_v5 = vld [vmem:[#allocation2 + $0x10] sm:$0xff]  ;;  %s6045_s9 = smov 64   ;;  %s6046_s10 = smov 120   ;;  %vm185_vm1 = vcmask 64512  }
   0x8   :  { %v57_v4 = vpack.c.bf16 %v42_v3, %v41_v2  ;;  %v44_v6 = vld [vmem:[#allocation2 + $0x18] sm:$0xff]  ;;  %v55_v8 = vld [vmem:[#allocation2 + $0x70] sm:$0xff]  ;;  %v45_v11 = vld [vmem:[#allocation2 + $0x20] sm:$0xff]  ;;  %s6047_s11 = smov 88   ;;  %vm778_vm2 = vcmask 1043456   ;;  %s6048_s12 = smov 56  }
   0x9   :  { %v58_v7 = vpack.c.bf16 %v44_v6, %v43_v5  ;;  %v56_v9 = vld [vmem:[#allocation2 + $0x78] sm:$0xff]  ;;  %v46_v12 = vld [vmem:[#allocation2 + $0x28] sm:$0xff]  ;;  %v47_v14 = vld [vmem:[#allocation2 + $0x30] sm:$0xff]  ;;  %s6049_s13 = smov 112   ;;  %s6050_s14 = smov 80  }
   0xa   :  { %v64_v10 = vpack.c.bf16 %v56_v9, %v55_v8  ;;  %v59_v13 = vpack.c.bf16 %v46_v12, %v45_v11  ;;  %v48_v15 = vld [vmem:[#allocation2 + $0x38] sm:$0xff]  ;;  %v49_v17 = vld [vmem:[#allocation2 + $0x40] sm:$0xff]  ;;  %v50_v18 = vld [vmem:[#allocation2 + $0x48] sm:$0xff]  ;;  %s6051_s15 = smov 48   ;;  %s6052_s16 = smov 72  }
   0xb   :  { %122 = vmatpush.bf16.msra.mxu0 %v5605_v1  ;;  %5618 = vmatpush.bf16.msra.mxu3 %v5605_v1  ;;  %v60_v16 = vpack.c.bf16 %v48_v15, %v47_v14  ;;  %v61_v19 = vpack.c.bf16 %v50_v18, %v49_v17  ;;  %v51_v20 = vld [vmem:[#allocation2 + $0x50] sm:$0xff]  ;;  %v52_v21 = vld [vmem:[#allocation2 + $0x58] sm:$0xff]  ;;  %v6114_v23 = vld [vmem:[%s8967_s5] ss:$0 sm:$0xff]  ;;  %s6053_s19 = smov 104   ;;  %s6054_s22 = smov 40  }
   0xc   :  { %v62_v22 = vpack.c.bf16 %v52_v21, %v51_v20  ;;  %v53_v33 = vld [vmem:[#allocation2 + $0x60] sm:$0xff]  ;;  %v54_v34 = vld [vmem:[#allocation2 + $0x68] sm:$0xff] }
   0xd   :  { %v63_v36 = vpack.c.bf16 %v54_v34, %v53_v33 }
   0xe   :  { %5389 = vmatmul.msk.bf16.vlgmr.msra.gmra.mxu0 %vm90_vm0, %v57_v4  ;;  %5396 = vmatmul.msk.bf16.vlgmr.msra.gmra.mxu3 %vm90_vm0, %v64_v10 }
  0x1e   :  { %5390 = vmatmul.msk.bf16.gmra.mxu0 %vm90_vm0, %v58_v7 }
  0x2e   :  { %5391 = vmatmul.msk.bf16.gmra.mxu0 %vm90_vm0, %v59_v13 }
  0x3e   :  { %5392 = vmatmul.msk.bf16.gmra.mxu0 %vm90_vm0, %v60_v16 }
  0x4e   :  { %5393 = vmatmul.msk.bf16.gmra.mxu0 %vm90_vm0, %v61_v19 }
  0x5e   :  { %5394 = vmatmul.msk.bf16.gmra.mxu0 %vm90_vm0, %v62_v22 }
  0x6e   :  { %5395 = vmatmul.msk.bf16.gmra.mxu0 %vm90_vm0, %v63_v36 }
  0x8b   :  { %v124_v24 = vpop.f32.mrf.mxu0 }
  0x8c   :  { %v125_v25 = vadd.f32 %v6114_v23, %v124_v24 }
  0x8e   :  { %v6117_v26 = vpack.c.bf16 %v125_v25, %v125_v25 }
  0x90   :  { %v181_v27 = vunpack.c.l.b16 %v6117_v26 }
  0x91   :  { %v159_v2 = vpop.f32.mrf.mxu3 }
  0x92   :  { %v6120_v28 = vpack.c.b16 %v181_v27, %v181_v27  ;;  %v160_v21 = vadd.f32 %v6114_v23, %v159_v2 }
  0x93   :  { %v126_v29 = vpop.f32.mrf.mxu0 }
  0x94   :  { %9001 = vst [vmem:[#allocation8_spill] sm:$0xff] %v6120_v28  ;;  %v127_v30 = vadd.f32 %v6114_v23, %v126_v29  ;;  %183 = vrot.lane.b32.xlu0 %v6120_v28, %s6044_s8  ;;  %v6212_v27 = vpack.c.bf16 %v160_v21, %v160_v21 }
  0x96   :  { %v6125_v31 = vpack.c.bf16 %v127_v30, %v127_v30  ;;  %v518_v29 = vunpack.c.l.b16 %v6212_v27 }
  0x98   :  { %v206_v32 = vunpack.c.l.b16 %v6125_v31  ;;  %v6221_v30 = vpack.c.b16 %v518_v29, %v518_v29 }
  0x99   :  { %v161_v10 = vpop.f32.mrf.mxu3 }
  0x9a   :  { %v6128_v35 = vpack.c.b16 %v206_v32, %v206_v32  ;;  %v162_v13 = vadd.f32 %v6114_v23, %v161_v10  ;;  %9009 = vst [vmem:[#allocation16_spill] sm:$0xff] %v6221_v30 }
  0x9b   :  { %v129_v37 = vpop.f32.mrf.mxu0 }
  0x9c   :  { %9002 = vst [vmem:[#allocation9_spill] sm:$0xff] %v6128_v35  ;;  %v130_v38 = vadd.f32 %v6114_v23, %v129_v37  ;;  %208 = vrot.lane.b32.xlu0 %v6128_v35, %s6044_s8  ;;  %v6196_v16 = vpack.c.bf16 %v162_v13, %v162_v13 }
  0x9e   :  { %v6134_v39 = vpack.c.bf16 %v130_v38, %v130_v38  ;;  %v542_v19 = vunpack.c.l.b16 %v6196_v16 }
  0xa0   :  { %v230_v40 = vunpack.c.l.b16 %v6134_v39  ;;  %v6208_v24 = vpack.c.b16 %v542_v19, %v542_v19 }
  0xa2   :  { %v6137_v41 = vpack.c.b16 %v230_v40, %v230_v40  ;;  %9008 = vst [vmem:[#allocation15_spill] sm:$0xff] %v6208_v24 }
  0xa3   :  { %v131_v42 = vpop.f32.mrf.mxu0 }
  0xa4   :  { %v132_v43 = vadd.f32 %v6114_v23, %v131_v42  ;;  %232 = vrot.lane.b32.xlu1 %v6137_v41, %s6044_s8 }
  0xa6   :  { %v6142_v44 = vpack.c.bf16 %v132_v43, %v132_v43 }
  0xa8   :  { %v254_v45 = vunpack.c.l.b16 %v6142_v44 }
  0xaa   :  { %v6145_v46 = vpack.c.b16 %v254_v45, %v254_v45 }
  0xab   :  { %v134_v47 = vpop.f32.mrf.mxu0 }
  0xac   :  { %9003 = vst [vmem:[#allocation10_spill] sm:$0xff] %v6145_v46  ;;  %v135_v48 = vadd.f32 %v6114_v23, %v134_v47  ;;  %256 = vrot.lane.b32.xlu2 %v6145_v46, %s6044_s8 }
  0xae   :  { %v6150_v49 = vpack.c.bf16 %v135_v48, %v135_v48 }
  0xb0   :  { %v278_v50 = vunpack.c.l.b16 %v6150_v49 }
  0xb2   :  { %v6153_v51 = vpack.c.b16 %v278_v50, %v278_v50 }
  0xb3   :  { %v136_v52 = vpop.f32.mrf.mxu0 }
  0xb4   :  { %v137_v53 = vadd.f32 %v6114_v23, %v136_v52  ;;  %280 = vrot.lane.b32.xlu1 %v6153_v51, %s6044_s8 }
  0xb6   :  { %v6158_v54 = vpack.c.bf16 %v137_v53, %v137_v53 }
  0xb8   :  { %v302_v55 = vunpack.c.l.b16 %v6158_v54 }
  0xba   :  { %v6161_v56 = vpack.c.b16 %v302_v55, %v302_v55 }
  0xbb   :  { %v139_v57 = vpop.f32.mrf.mxu0 }
  0xbc   :  { %9004 = vst [vmem:[#allocation11_spill] sm:$0xff] %v6161_v56  ;;  %v140_v58 = vadd.f32 %v6114_v23, %v139_v57  ;;  %304 = vrot.lane.b32.xlu2 %v6161_v56, %s6044_s8 }
  0xbe   :  { %v6166_v59 = vpack.c.bf16 %v140_v58, %v140_v58 }
  0xc0   :  { %v326_v60 = vunpack.c.l.b16 %v6166_v59 }
  0xc2   :  { %v6169_v61 = vpack.c.b16 %v326_v60, %v326_v60 }
  0xc3   :  { %v141_v62 = vpop.f32.mrf.mxu0 }
  0xc4   :  { %9005 = vst [vmem:[#allocation12_spill] sm:$0xff] %v6169_v61  ;;  %v142_v63 = vadd.f32 %v6114_v23, %v141_v62  ;;  %328 = vrot.lane.b32.xlu2 %v6169_v61, %s6044_s8 }
  0xc6   :  { %v6174_v0 = vpack.c.bf16 %v142_v63, %v142_v63 }
  0xc8   :  { %v350_v1 = vunpack.c.l.b16 %v6174_v0 }
  0xca   :  { %v6177_v3 = vpack.c.b16 %v350_v1, %v350_v1 }
  0xcb   :  { %v144_v4 = vpop.f32.mrf.mxu0 }
  0xcc   :  { %9006 = vst [vmem:[#allocation13_spill] sm:$0xff] %v6177_v3  ;;  %v145_v5 = vadd.f32 %v6114_v23, %v144_v4  ;;  %352 = vrot.lane.b32.xlu0 %v6177_v3, %s6044_s8 }
  0xce   :  { %v6182_v6 = vpack.c.bf16 %v145_v5, %v145_v5 }
  0xd0   :  { %v374_v7 = vunpack.c.l.b16 %v6182_v6 }
  0xd2   :  { %v6185_v8 = vpack.c.b16 %v374_v7, %v374_v7 }
  0xd3   :  { %v146_v9 = vpop.f32.mrf.mxu0 }
  0xd4   :  { %9007 = vst [vmem:[#allocation14_spill] sm:$0xff] %v6185_v8  ;;  %v147_v11 = vadd.f32 %v6114_v23, %v146_v9  ;;  %376 = vrot.lane.b32.xlu1 %v6185_v8, %s6044_s8 }
  0xd6   :  { %v6190_v12 = vpack.c.bf16 %v147_v11, %v147_v11 }
  0xd8   :  { %v398_v14 = vunpack.c.l.b16 %v6190_v12 }
  0xda   :  { %v6194_v15 = vpack.c.b16 %v398_v14, %v398_v14 }
  0xdb   :  { %v149_v17 = vpop.f32.mrf.mxu0 }
  0xdc   :  { %v150_v18 = vadd.f32 %v6114_v23, %v149_v17  ;;  %400 = vrot.lane.b32.xlu2 %v6194_v15, %s6044_s8  ;;  %858 = vrot.lane.b32.xlu1 %v6153_v51, %s6045_s9 }
  0xde   :  { %v6204_v20 = vpack.c.bf16 %v150_v18, %v150_v18 }
  0xe0   :  { %v422_v22 = vunpack.c.l.b16 %v6204_v20 }
  0xe2   :  { %v6210_v25 = vpack.c.b16 %v422_v22, %v422_v22 }
  0xe4   :  { %544 = vrot.lane.b32.xlu2 %v6208_v24, %s6044_s8  ;;  %942 = vrot.lane.b32.xlu1 %v6185_v8, %s6045_s9 }
  0xe5   :  { %424 = vrot.lane.b32.xlu0 %v6210_v25, %s6044_s8 }
  0xec   :  { %1089 = vrot.lane.b32.xlu1 %v6208_v24, %s6045_s9  ;;  %795 = vrot.lane.b32.xlu2 %v6128_v35, %s6045_s9 }
  0xed   :  { %520 = vrot.lane.b32.xlu0 %v6221_v30, %s6044_s8 }
  0xf4   :  { %1188 = vrot.lane.b32.xlu1 %v6145_v46, %s6046_s10  ;;  %900 = vrot.lane.b32.xlu2 %v6169_v61, %s6045_s9 }
  0xf5   :  { %773 = vrot.lane.b32.xlu0 %v6120_v28, %s6045_s9 }
  0xfc   :  { %1282 = vrot.lane.b32.xlu1 %v6177_v3, %s6047_s11  ;;  %1165 = vrot.lane.b32.xlu2 %v6137_v41, %s6046_s10 }
  0xfd   :  { %837 = vrot.lane.b32.xlu0 %v6145_v46, %s6045_s9 }
 0x104   :  { %1443 = vrot.lane.b32.xlu1 %v6221_v30, %s6047_s11  ;;  %1259 = vrot.lane.b32.xlu2 %v6169_v61, %s6047_s11 }
 0x105   :  { %921 = vrot.lane.b32.xlu0 %v6177_v3, %s6045_s9 }
 0x106   :  { %v257_v32 = vpop.permute.xlu2 %256  ;;  %v184_v33 = vpop.permute.xlu0 %183 }
 0x107   :  { %v190_v34 = vsel %vm185_vm1, %v184_v33, 0  ;;  %v262_v36 = vsel %vm185_vm1, %v257_v32, 0 }
 0x108   :  { %199 = vmatpush.bf16.xpose.msrb.mxu3 %v190_v34  ;;  %271 = vmatpush.bf16.xpose.msra.mxu1 %v262_v36 }
 0x10c   :  { %1441 = vrot.lane.b32.xlu1 %v6221_v30, %s6046_s10  ;;  %1190 = vrot.lane.b32.xlu2 %v6145_v46, %s6047_s11 }
 0x10d   :  { %1068 = vrot.lane.b32.xlu0 %v6221_v30, %s6045_s9 }
 0x10e   :  { %v209_v37 = vpop.permute.xlu0 %208 }
 0x10f   :  { %5397 = vmatmul.msk.bf16.vlgmr.msrb.gmra.mxu3 %vm185_vm1, %v6117_v26  ;;  %5400 = vmatmul.msk.bf16.vlgmr.msra.gmra.mxu1 %vm185_vm1, %v6142_v44  ;;  %v214_v38 = vsel %vm185_vm1, %v209_v37, 0  ;;  %v151_v44 = vpop.f32.mrf.mxu0 }
 0x110   :  { %223 = vmatpush.bf16.xpose.msra.mxu2 %v214_v38  ;;  %v152_v47 = vadd.f32 %v6114_v23, %v151_v44 }
 0x112   :  { %v6280_v48 = vpack.c.bf16 %v152_v47, %v152_v47 }
 0x114   :  { %1466 = vrot.lane.b32.xlu1 %v6208_v24, %s6047_s11  ;;  %1257 = vrot.lane.b32.xlu2 %v6169_v61, %s6046_s10  ;;  %v446_v50 = vunpack.c.l.b16 %v6280_v48 }
 0x115   :  { %1167 = vrot.lane.b32.xlu0 %v6137_v41, %s6047_s11 }
 0x116   :  { %v305_v40 = vpop.permute.xlu2 %304  ;;  %v233_v42 = vpop.permute.xlu1 %232  ;;  %v6292_v53 = vpack.c.b16 %v446_v50, %v446_v50 }
 0x117   :  { %v310_v43 = vsel %vm185_vm1, %v305_v40, 0  ;;  %v238_v26 = vsel %vm185_vm1, %v233_v42, 0  ;;  %5398 = vmatmul.msk.bf16.vlgmr.msra.gmra.mxu2 %vm185_vm1, %v6125_v31  ;;  %v154_v55 = vpop.f32.mrf.mxu0 }
 0x118   :  { %247 = vmatpush.bf16.xpose.msra.mxu3 %v238_v26  ;;  %9010 = vst [vmem:[#allocation17_spill] sm:$0xff] %v6292_v53  ;;  %v155_v57 = vadd.f32 %v6114_v23, %v154_v55 }
 0x11a   :  { %v6310_v60 = vpack.c.bf16 %v155_v57, %v155_v57 }
 0x11c   :  { %816 = vrot.lane.b32.xlu1 %v6137_v41, %s6045_s9  ;;  %1464 = vrot.lane.b32.xlu2 %v6208_v24, %s6046_s10 }
 0x11d   :  { %1280 = vrot.lane.b32.xlu0 %v6177_v3, %s6046_s10 }
 0x11e   :  { %v329_v45 = vpop.permute.xlu2 %328 }
 0x11f   :  { %5399 = vmatmul.msk.bf16.vlgmr.msra.gmra.mxu3 %vm185_vm1, %v6134_v39  ;;  %v334_v31 = vsel %vm185_vm1, %v329_v45, 0  ;;  %v156_v10 = vpop.f32.mrf.mxu0 }
 0x120   :  { %319 = vmatpush.bf16.xpose.msrb.mxu3 %v310_v43  ;;  %343 = vmatpush.bf16.xpose.msrb.mxu1 %v334_v31  ;;  %v157_v11 = vadd.f32 %v6114_v23, %v156_v10 }
 0x122   :  { %v6349_v17 = vpack.c.bf16 %v157_v11, %v157_v11 }
 0x124   :  { %984 = vrot.lane.b32.xlu1 %v6210_v25, %s6045_s9  ;;  %963 = vrot.lane.b32.xlu2 %v6194_v15, %s6045_s9 }
 0x125   :  { %879 = vrot.lane.b32.xlu0 %v6161_v56, %s6045_s9 }
 0x126   :  { %v281_v52 = vpop.permute.xlu1 %280 }
 0x127   :  { %5403 = vmatmul.msk.bf16.vlgmr.msrb.gmra.mxu1 %vm185_vm1, %v6166_v59  ;;  %v286_v39 = vsel %vm185_vm1, %v281_v52, 0 }
 0x128   :  { %295 = vmatpush.bf16.xpose.msrb.mxu2 %v286_v39 }
 0x12c   :  { %448 = vrot.lane.b32.xlu1 %v6292_v53, %s6044_s8  ;;  %1351 = vrot.lane.b32.xlu2 %v6210_v25, %s6047_s11 }
 0x12d   :  { %1142 = vrot.lane.b32.xlu0 %v6128_v35, %s6046_s10 }
 0x12f   :  { %5401 = vmatmul.msk.bf16.vlgmr.msrb.gmra.mxu2 %vm185_vm1, %v6150_v49  ;;  %5402 = vmatmul.msk.bf16.vlgmr.msrb.gmra.mxu3 %vm185_vm1, %v6158_v54  ;;  %v470_v49 = vunpack.c.l.b16 %v6310_v60 }
 0x131   :  { %v6322_v1 = vpack.c.b16 %v470_v49, %v470_v49 }
 0x133   :  { %9011 = vst [vmem:[#allocation18_spill] sm:$0xff] %v6322_v1 }
 0x134   :  { %1144 = vrot.lane.b32.xlu1 %v6128_v35, %s6047_s11  ;;  %1349 = vrot.lane.b32.xlu2 %v6210_v25, %s6046_s10 }
 0x136   :  { %v401_v58 = vpop.permute.xlu2 %400 }
 0x137   :  { %v406_v59 = vsel %vm185_vm1, %v401_v58, 0 }
 0x138   :  { %415 = vmatpush.bf16.xpose.msra.mxu1 %v406_v59 }
 0x13c   :  { %1328 = vrot.lane.b32.xlu1 %v6194_v15, %s6047_s11  ;;  %1236 = vrot.lane.b32.xlu2 %v6161_v56, %s6047_s11 }
 0x13e   :  { %v6317_v54 = vpop.permute.xlu2 %544  ;;  %v353_v62 = vpop.permute.xlu0 %352 }
 0x13f   :  { %v358_v63 = vsel %vm185_vm1, %v353_v62, 0  ;;  %5406 = vmatmul.msk.bf16.vlgmr.msra.gmra.mxu1 %vm185_vm1, %v6190_v12 }
 0x140   :  { %367 = vmatpush.bf16.xpose.msra.mxu2 %v358_v63 }
 0x144   :  { %472 = vrot.lane.b32.xlu1 %v6322_v1, %s6044_s8  ;;  %1234 = vrot.lane.b32.xlu2 %v6161_v56, %s6046_s10 }
 0x146   :  { %v377_v2 = vpop.permute.xlu1 %376  ;;  %v6328_v4 = vpop.permute.xlu2 %795 }
 0x147   :  { %v382_v5 = vsel %vm185_vm1, %v377_v2, 0  ;;  %5404 = vmatmul.msk.bf16.vlgmr.msra.gmra.mxu2 %vm185_vm1, %v6174_v0 }
 0x148   :  { %391 = vmatpush.bf16.xpose.msra.mxu3 %v382_v5 }
 0x14c   :  { %1005 = vrot.lane.b32.xlu2 %v6292_v53, %s6045_s9 }
 0x14e   :  { %v6335_v7 = vpop.permute.xlu1 %858  ;;  %v6337_v9 = vpop.permute.xlu2 %900 }
 0x14f   :  { %5405 = vmatmul.msk.bf16.vlgmr.msra.gmra.mxu3 %vm185_vm1, %v6182_v6  ;;  %v494_v6 = vunpack.c.l.b16 %v6349_v17 }
 0x151   :  { %v6360_v23 = vpack.c.b16 %v494_v6, %v494_v6 }
 0x154   :  { %1374 = vrot.lane.b32.xlu2 %v6292_v53, %s6047_s11 }
 0x156   :  { %v6344_v12 = vpop.permute.xlu1 %942  ;;  %v6346_v0 = vpop.permute.xlu2 %1165 }
 0x157   :  { %v425_v13 = vpop.permute.xlu0 %424 }
 0x158   :  { %v430_v14 = vsel %vm185_vm1, %v425_v13, 0 }
 0x159   :  { %439 = vmatpush.bf16.xpose.msrb.mxu2 %v430_v14 }
 0x15c   :  { %1372 = vrot.lane.b32.xlu2 %v6292_v53, %s6046_s10 }
 0x15e   :  { %v6354_v18 = vpop.permute.xlu1 %1089  ;;  %v6356_v19 = vpop.permute.xlu2 %1259 }
 0x15f   :  { %v521_v37 = vpop.permute.xlu0 %520 }
 0x160   :  { %5407 = vmatmul.msk.bf16.vlgmr.msrb.gmra.mxu2 %vm185_vm1, %v6204_v20  ;;  %v526_v11 = vsel %vm185_vm1, %v521_v37, 0  ;;  %v801_v37 = vsel %vm778_vm2, %v6328_v4, 0 }
 0x164   :  { %496 = vrot.lane.b32.xlu2 %v6360_v23, %s6044_s8 }
 0x166   :  { %v6364_v21 = vpop.permute.xlu1 %1188  ;;  %v6366_v22 = vpop.permute.xlu2 %1190 }
 0x167   :  { %9012 = vst [vmem:[#allocation19_spill] sm:$0xff] %v6364_v21  ;;  %v6390_v44 = vpop.permute.xlu0 %773 }
 0x16c   :  { %1047 = vrot.lane.b32.xlu2 %v6360_v23, %s6045_s9 }
 0x16e   :  { %v6370_v29 = vpop.permute.xlu1 %1282  ;;  %v6372_v32 = vpop.permute.xlu2 %1257 }
 0x16f   :  { %9013 = vst [vmem:[#allocation20_spill] sm:$0xff] %v6372_v32  ;;  %v6404_v58 = vpop.permute.xlu0 %837 }
 0x176   :  { %v6374_v33 = vpop.permute.xlu1 %1443  ;;  %v6376_v34 = vpop.permute.xlu2 %1464 }
 0x177   :  { %9014 = vst [vmem:[#allocation21_spill] sm:$0xff] %v6374_v33  ;;  %v6414_v6 = vpop.permute.xlu0 %921 }
 0x178   :  { %9015 = vst [vmem:[#allocation22_spill] sm:$0xff] %v6376_v34  ;;  %v864_v34 = vsel %vm778_vm2, %v6335_v7, 0 }
 0x17e   :  { %v6378_v20 = vpop.permute.xlu1 %1441  ;;  %v6380_v36 = vpop.permute.xlu2 %963 }
 0x17f   :  { %9016 = vst [vmem:[#allocation23_spill] sm:$0xff] %v6378_v20 }
 0x186   :  { %v6382_v38 = vpop.permute.xlu1 %1466  ;;  %v6384_v40 = vpop.permute.xlu2 %1351 }
 0x187   :  { %9017 = vst [vmem:[#allocation24_spill] sm:$0xff] %v6382_v38 }
 0x18c   :  { %v273_v42 = vpop.f32.mrf.mxu1 }
 0x18d   :  { %v6392_v45 = vmul.f32 0.17677669, %v273_v42 }
 0x18e   :  { %v6386_v43 = vpop.permute.xlu1 %816  ;;  %v6388_v26 = vpop.permute.xlu2 %1349 }
 0x18f   :  { %9018 = vst [vmem:[#allocation25_spill] sm:$0xff] %v6388_v26  ;;  %v590_v52 = vsel %vm185_vm1, %v6392_v45, -inf  ;;  %v822_v7 = vsel %vm778_vm2, %v6386_v43, 0  ;;  %v843_v43 = vsel %vm778_vm2, %v6404_v58, 0 }
 0x192   :  { %v201_v47 = vpop.f32.mrf.mxu3 }
 0x193   :  { %v6394_v31 = vmul.f32 0.17677669, %v201_v47 }
 0x194   :  { %v275_v50 = vpop.f32.mrf.mxu1 }
 0x195   :  { %591 = vmax.xlane.f32.xlu2 %v590_v52  ;;  %v581_v39 = vsel %vm185_vm1, %v6394_v31, -inf }
 0x196   :  { %v6400_v55 = vpop.permute.xlu1 %984  ;;  %v6402_v57 = vpop.permute.xlu2 %1236  ;;  %582 = vmax.xlane.f32.xlu0 %v581_v39 }
 0x19a   :  { %v203_v59 = vpop.f32.mrf.mxu3  ;;  %v225_v49 = vpop.f32.mrf.mxu2 }
 0x19b   :  { %v6406_v62 = vmul.f32 0.17677669, %v225_v49 }
 0x19d   :  { %v584_v63 = vsel %vm185_vm1, %v6406_v62, -inf }
 0x19e   :  { %v449_v2 = vpop.permute.xlu1 %448  ;;  %v6410_v5 = vpop.permute.xlu2 %1234  ;;  %585 = vmax.xlane.f32.xlu1 %v584_v63 }
 0x19f   :  { %9019 = vst [vmem:[#allocation26_spill] sm:$0xff] %v6410_v5  ;;  %v454_v10 = vsel %vm185_vm1, %v449_v2, 0  ;;  %v6430_v2 = vpop.permute.xlu0 %1068 }
 0x1a0   :  { %463 = vmatpush.bf16.xpose.msrb.mxu3 %v454_v10 }
 0x1a2   :  { %v227_v13 = vpop.f32.mrf.mxu2  ;;  %v249_v14 = vpop.f32.mrf.mxu3 }
 0x1a3   :  { %v6416_v42 = vmul.f32 0.17677669, %v249_v14 }
 0x1a4   :  { %v345_v47 = vpop.f32.mrf.mxu1 }
 0x1a5   :  { %v587_v50 = vsel %vm185_vm1, %v6416_v42, -inf  ;;  %v6428_v59 = vmul.f32 0.17677669, %v345_v47 }
 0x1a6   :  { %v6420_v52 = vpop.permute.xlu1 %1144  ;;  %v6422_v39 = vpop.permute.xlu2 %1005  ;;  %588 = vmax.xlane.f32.xlu0 %v587_v50 }
 0x1a7   :  { %5408 = vmatmul.msk.bf16.vlgmr.msrb.gmra.mxu3 %vm185_vm1, %v6280_v48  ;;  %v599_v10 = vsel %vm185_vm1, %v6428_v59, -inf }
 0x1a8   :  { %535 = vmatpush.bf16.xpose.msra.mxu3 %v526_v11 }
 0x1aa   :  { %v251_v49 = vpop.f32.mrf.mxu3 }
 0x1ac   :  { %v347_v63 = vpop.f32.mrf.mxu1 }
 0x1ae   :  { %v6434_v11 = vpop.permute.xlu1 %1328  ;;  %v6436_v13 = vpop.permute.xlu2 %1374  ;;  %600 = vmax.xlane.f32.xlu0 %v599_v10 }
 0x1af   :  { %9020 = vst [vmem:[#allocation27_spill] sm:$0xff] %v6436_v13 }
 0x1b0   :  { %810 = vmatpush.bf16.msrb.mxu3 %v801_v37 }
 0x1b2   :  { %v297_v14 = vpop.f32.mrf.mxu2  ;;  %v321_v4 = vpop.f32.mrf.mxu3 }
 0x1b3   :  { %v6438_v50 = vmul.f32 0.17677669, %v297_v14  ;;  %v570_v48 = vmul.f32 0.17677669, %v321_v4  ;;  %v550_v14 = vsel %vm185_vm1, %v6317_v54, 0  ;;  %v6452_v4 = vpop.permute.xlu0 %1167  ;;  %v780_v54 = vsel %vm778_vm2, %v6390_v44, 0 }
 0x1b5   :  { %v596_v47 = vsel %vm185_vm1, %v570_v48, -inf  ;;  %v593_v37 = vsel %vm185_vm1, %v6438_v50, -inf }
 0x1b6   :  { %v473_v49 = vpop.permute.xlu1 %472  ;;  %v6443_v63 = vpop.permute.xlu2 %1372  ;;  %597 = vmax.xlane.f32.xlu1 %v596_v47  ;;  %594 = vmax.xlane.f32.xlu2 %v593_v37 }
 0x1b7   :  { %9021 = vst [vmem:[#allocation28_spill] sm:$0xff] %v6443_v63  ;;  %v478_v10 = vsel %vm185_vm1, %v473_v49, 0  ;;  %5411 = vmatmul.msk.bf16.vlgmr.msra.gmra.mxu3 %vm185_vm1, %v6212_v27 }
 0x1b8   :  { %873 = vmatpush.bf16.msra.mxu3 %v864_v34  ;;  %487 = vmatpush.bf16.xpose.msrb.mxu1 %v478_v10 }
 0x1ba   :  { %v299_v20 = vpop.f32.mrf.mxu2  ;;  %v323_v63 = vpop.f32.mrf.mxu3 }
 0x1bb   :  { %v6465_v34 = vpop.permute.xlu0 %1280 }
 0x1bc   :  { %v417_v47 = vpop.f32.mrf.mxu1  ;;  %9022 = vst [vmem:[#allocation29_spill] sm:$0xff] %v6465_v34 }
 0x1bd   :  { %v6454_v37 = vmul.f32 0.17677669, %v417_v47 }
 0x1be   :  { %v497_v26 = vpop.permute.xlu2 %496 }
 0x1bf   :  { %v502_v49 = vsel %vm185_vm1, %v497_v26, 0  ;;  %5409 = vmatmul.msk.bf16.vlgmr.msrb.gmra.mxu1 %vm185_vm1, %v6310_v60  ;;  %v608_v27 = vsel %vm185_vm1, %v6454_v37, -inf }
 0x1c0   :  { %559 = vmatpush.bf16.xpose.msra.mxu1 %v550_v14  ;;  %609 = vmax.xlane.f32.xlu2 %v608_v27 }
 0x1c1   :  { %511 = vmatpush.bf16.xpose.msra.mxu2 %v502_v49 }
 0x1c3   :  { %v880_v63 = vpop.permute.xlu0 %879 }
 0x1c4   :  { %v419_v20 = vpop.f32.mrf.mxu1  ;;  %v885_v44 = vsel %vm778_vm2, %v880_v63, 0 }
 0x1c8   :  { %831 = vmatpush.bf16.msrb.mxu1 %v822_v7  ;;  %5410 = vmatmul.msk.bf16.vlgmr.msra.gmra.mxu2 %vm185_vm1, %v6349_v17 }
 0x1c9   :  { %789 = vmatpush.bf16.msrb.mxu2 %v780_v54 }
 0x1ca   :  { %v369_v60 = vpop.f32.mrf.mxu2 }
 0x1cb   :  { %v572_v26 = vmul.f32 0.17677669, %v369_v60 }
 0x1cd   :  { %852 = vmatpush.bf16.msra.mxu2 %v843_v43  ;;  %v602_v10 = vsel %vm185_vm1, %v572_v26, -inf }
 0x1ce   :  { %603 = vmax.xlane.f32.xlu1 %v602_v10 }
 0x1cf   :  { %5412 = vmatmul.msk.bf16.vlgmr.msra.gmra.mxu1 %vm185_vm1, %v6196_v16 }
 0x1d0   :  { %894 = vmatpush.bf16.msra.mxu1 %v885_v44 }
 0x1d2   :  { %v371_v14 = vpop.f32.mrf.mxu2  ;;  %v393_v47 = vpop.f32.mrf.mxu3 }
 0x1d3   :  { %v6475_v7 = vmul.f32 0.17677669, %v393_v47  ;;  %v6487_v47 = vpop.permute.xlu0 %1142 }
 0x1d5   :  { %v605_v17 = vsel %vm185_vm1, %v6475_v7, -inf }
 0x1d6   :  { %606 = vmax.xlane.f32.xlu0 %v605_v17 }
 0x1da   :  { %v395_v58 = vpop.f32.mrf.mxu3 }
 0x1e3   :  { %v441_v49 = vpop.f32.mrf.mxu2 }
 0x1e4   :  { %v6479_v27 = vmul.f32 0.17677669, %v441_v49 }
 0x1e6   :  { %v611_v54 = vsel %vm185_vm1, %v6479_v27, -inf }
 0x1e7   :  { %612 = vmax.xlane.f32.xlu0 %v611_v54 }
 0x1eb   :  { %v443_v20 = vpop.f32.mrf.mxu2 }
 0x209   :  { %v583_v54 = vpop.xlane.xlu0 %582 }
 0x211   :  { %v586_v43 = vpop.xlane.xlu1 %585 }
 0x229   :  { %v598_v16 = vpop.xlane.xlu1 %597 }
 0x22a   :  { %v634_v60 = vsub.f32 %v570_v48, %v598_v16  ;;  %v465_v63 = vpop.f32.mrf.mxu3 }
 0x22b   :  { %v6483_v10 = vmul.f32 0.17677669, %v465_v63  ;;  %v589_v63 = vpop.xlane.xlu0 %588 }
 0x22c   :  { %v655_v44 = vmul.f32 1.442695, %v634_v60  ;;  %v631_v32 = vsub.f32 %v6416_v42, %v589_v63 }
 0x22d   :  { %v614_v14 = vsel %vm185_vm1, %v6483_v10, -inf }
 0x22e   :  { %5651 = vpow2.f32 %v655_v44  ;;  %615 = vmax.xlane.f32.xlu2 %v614_v14  ;;  %v649_v33 = vmul.f32 1.442695, %v631_v32  ;;  %v630_v32 = vsub.f32 %v6406_v62, %v586_v43 }
 0x232   :  { %v467_v17 = vpop.f32.mrf.mxu3 }
 0x233   :  { %v601_v13 = vpop.xlane.xlu0 %600 }
 0x234   :  { %v6489_v58 = vpop.eup %5651  ;;  %v635_v42 = vsub.f32 %v6428_v59, %v601_v13 }
 0x235   :  { %v692_v49 = vsel %vm185_vm1, %v6489_v58, 0.0 }
 0x236   :  { %693 = vadd.xlane.f32.xlu2 %v692_v49  ;;  %v629_v49 = vsub.f32 %v6394_v31, %v583_v54 }
 0x238   :  { %v645_v21 = vmul.f32 1.442695, %v629_v49 }
 0x23a   :  { %v537_v48 = vpop.f32.mrf.mxu3 }
 0x23b   :  { %v6497_v17 = vmul.f32 0.17677669, %v537_v48 }
 0x23c   :  { %v489_v20 = vpop.f32.mrf.mxu1 }
 0x23d   :  { %v6493_v16 = vmul.f32 0.17677669, %v489_v20  ;;  %v623_v20 = vsel %vm185_vm1, %v6497_v17, -inf }
 0x23f   :  { %v617_v60 = vsel %vm185_vm1, %v6493_v16, -inf }
 0x240   :  { %618 = vmax.xlane.f32.xlu1 %v617_v60  ;;  %v6503_v60 = vpop.permute.xlu2 %1047 }
 0x241   :  { %v604_v44 = vpop.xlane.xlu1 %603 }
 0x242   :  { %v636_v14 = vsub.f32 %v572_v26, %v604_v44  ;;  %v539_v34 = vpop.f32.mrf.mxu3  ;;  %v647_v44 = vmul.f32 1.442695, %v630_v32 }
 0x244   :  { %v659_v38 = vmul.f32 1.442695, %v636_v14  ;;  %v491_v5 = vpop.f32.mrf.mxu1 }
 0x246   :  { %5653 = vpow2.f32 %v659_v38 }
 0x247   :  { %5655 = vpow2.f32 %v649_v33  ;;  %v657_v33 = vmul.f32 1.442695, %v635_v42 }
 0x248   :  { %624 = vmax.xlane.f32.xlu1 %v623_v20  ;;  %5657 = vpow2.f32 %v645_v21  ;;  %v592_v14 = vpop.xlane.xlu2 %591 }
 0x249   :  { %v607_v59 = vpop.xlane.xlu0 %606  ;;  %5659 = vpow2.f32 %v657_v33  ;;  %v632_v43 = vsub.f32 %v6392_v45, %v592_v14 }
 0x24a   :  { %v637_v62 = vsub.f32 %v6475_v7, %v607_v59  ;;  %5661 = vpow2.f32 %v647_v44 }
 0x24b   :  { %v513_v26 = vpop.f32.mrf.mxu2 }
 0x24c   :  { %v6505_v34 = vpop.eup %5653  ;;  %v6507_v48 = vmul.f32 0.17677669, %v513_v26  ;;  %v561_v5 = vpop.f32.mrf.mxu1  ;;  %v661_v42 = vmul.f32 1.442695, %v637_v62 }
 0x24d   :  { %v6510_v31 = vmul.f32 0.17677669, %v561_v5  ;;  %v698_v38 = vsel %vm185_vm1, %v6505_v34, 0.0  ;;  %v6519_v13 = vpop.eup %5655 }
 0x24e   :  { %699 = vadd.xlane.f32.xlu2 %v698_v38  ;;  %v620_v54 = vsel %vm185_vm1, %v6507_v48, -inf  ;;  %v6521_v20 = vpop.eup %5657  ;;  %v683_v26 = vsel %vm185_vm1, %v6519_v13, 0.0  ;;  %v651_v38 = vmul.f32 1.442695, %v632_v43  ;;  %5663 = vpow2.f32 %v661_v42 }
 0x24f   :  { %621 = vmax.xlane.f32.xlu0 %v620_v54  ;;  %v626_v63 = vsel %vm185_vm1, %v6510_v31, -inf  ;;  %v677_v5 = vsel %vm185_vm1, %v6521_v20, 0.0  ;;  %v6529_v32 = vpop.eup %5659 }
 0x250   :  { %627 = vmax.xlane.f32.xlu1 %v626_v63  ;;  %v595_v54 = vpop.xlane.xlu2 %594  ;;  %v6531_v63 = vpop.eup %5661  ;;  %5665 = vpow2.f32 %v651_v38  ;;  %v695_v7 = vsel %vm185_vm1, %v6529_v32, 0.0 }
 0x251   :  { %v633_v45 = vsub.f32 %v6438_v50, %v595_v54  ;;  %v680_v33 = vsel %vm185_vm1, %v6531_v63, 0.0 }
 0x253   :  { %v515_v49 = vpop.f32.mrf.mxu2  ;;  %v653_v44 = vmul.f32 1.442695, %v633_v45 }
 0x254   :  { %v563_v21 = vpop.f32.mrf.mxu1  ;;  %v6538_v59 = vpop.eup %5663 }
 0x255   :  { %5667 = vpow2.f32 %v653_v44  ;;  %v701_v50 = vsel %vm185_vm1, %v6538_v59, 0.0 }
 0x256   :  { %v6540_v14 = vpop.eup %5665 }
 0x257   :  { %684 = vadd.xlane.f32.xlu0 %v683_v26  ;;  %v686_v49 = vsel %vm185_vm1, %v6540_v14, 0.0 }
 0x258   :  { %678 = vadd.xlane.f32.xlu1 %v677_v5  ;;  %v610_v43 = vpop.xlane.xlu2 %609 }
 0x259   :  { %v638_v26 = vsub.f32 %v6454_v37, %v610_v43 }
 0x25a   :  { %v613_v42 = vpop.xlane.xlu0 %612 }
 0x25b   :  { %v6548_v21 = vpop.eup %5667  ;;  %v663_v5 = vmul.f32 1.442695, %v638_v26  ;;  %v639_v38 = vsub.f32 %v6479_v27, %v613_v42 }
 0x25c   :  { %v689_v62 = vsel %vm185_vm1, %v6548_v21, 0.0 }
 0x25d   :  { %5669 = vpow2.f32 %v663_v5  ;;  %v665_v54 = vmul.f32 1.442695, %v639_v38 }
 0x25f   :  { %696 = vadd.xlane.f32.xlu0 %v695_v7  ;;  %5671 = vpow2.f32 %v665_v54 }
 0x260   :  { %681 = vadd.xlane.f32.xlu1 %v680_v33 }
 0x263   :  { %v6558_v45 = vpop.eup %5669 }
 0x264   :  { %v704_v7 = vsel %vm185_vm1, %v6558_v45, 0.0 }
 0x265   :  { %v6564_v37 = vpop.eup %5671 }
 0x266   :  { %1420 = vrot.lane.b32.xlu2 %v6360_v23, %s6047_s11  ;;  %v707_v33 = vsel %vm185_vm1, %v6564_v37, 0.0 }
 0x267   :  { %702 = vadd.xlane.f32.xlu0 %v701_v50 }
 0x268   :  { %687 = vadd.xlane.f32.xlu1 %v686_v49 }
 0x270   :  { %690 = vadd.xlane.f32.xlu1 %v689_v62 }
 0x27b   :  { %1026 = vrot.lane.b32.xlu0 %v6322_v1, %s6045_s9 }
 0x289   :  { %1326 = vrot.lane.b32.xlu1 %v6194_v15, %s6046_s10 }
 0x28f   :  { %705 = vadd.xlane.f32.xlu2 %v704_v7 }
 0x291   :  { %1121 = vrot.lane.b32.xlu1 %v6120_v28, %s6047_s11 }
 0x297   :  { %708 = vadd.xlane.f32.xlu2 %v707_v33 }
 0x2a1   :  { %v616_v27 = vpop.xlane.xlu2 %615 }
 0x2a2   :  { %v640_v44 = vsub.f32 %v6483_v10, %v616_v27 }
 0x2a4   :  { %v667_v50 = vmul.f32 1.442695, %v640_v44 }
 0x2a6   :  { %5673 = vpow2.f32 %v667_v50 }
 0x2ac   :  { %v6569_v49 = vpop.eup %5673 }
 0x2ad   :  { %v710_v62 = vsel %vm185_vm1, %v6569_v49, 0.0 }
 0x2ae   :  { %711 = vadd.xlane.f32.xlu2 %v710_v62 }
 0x2b3   :  { %v619_v43 = vpop.xlane.xlu1 %618 }
 0x2b4   :  { %v641_v26 = vsub.f32 %v6493_v16, %v619_v43 }
 0x2b6   :  { %v669_v5 = vmul.f32 1.442695, %v641_v26 }
 0x2b8   :  { %5675 = vpow2.f32 %v669_v5 }
 0x2bb   :  { %v625_v42 = vpop.xlane.xlu1 %624 }
 0x2bc   :  { %v643_v38 = vsub.f32 %v6497_v17, %v625_v42 }
 0x2be   :  { %v6575_v54 = vpop.eup %5675  ;;  %v673_v7 = vmul.f32 1.442695, %v643_v38 }
 0x2bf   :  { %v713_v10 = vsel %vm185_vm1, %v6575_v54, 0.0 }
 0x2c0   :  { %5677 = vpow2.f32 %v673_v7  ;;  %714 = vadd.xlane.f32.xlu2 %v713_v10 }
 0x2c2   :  { %v622_v33 = vpop.xlane.xlu0 %621 }
 0x2c3   :  { %v642_v27 = vsub.f32 %v6507_v48, %v622_v33  ;;  %v628_v44 = vpop.xlane.xlu1 %627 }
 0x2c4   :  { %v644_v16 = vsub.f32 %v6510_v31, %v628_v44  ;;  %v694_v44 = vpop.xlane.xlu2 %693 }
 0x2c5   :  { %v671_v50 = vmul.f32 1.442695, %v642_v27 }
 0x2c6   :  { %v6581_v62 = vpop.eup %5677  ;;  %v675_v43 = vmul.f32 1.442695, %v644_v16 }
 0x2c7   :  { %5679 = vpow2.f32 %v671_v50  ;;  %v719_v17 = vsel %vm185_vm1, %v6581_v62, 0.0 }
 0x2c8   :  { %720 = vadd.xlane.f32.xlu1 %v719_v17  ;;  %v969_v17 = vsel %vm778_vm2, %v6380_v36, 0 }
 0x2ca   :  { %v685_v26 = vpop.xlane.xlu0 %684 }
 0x2cb   :  { %5681 = vrcp.f32 %v685_v26  ;;  %v679_v5 = vpop.xlane.xlu1 %678 }
 0x2cc   :  { %5683 = vrcp.f32 %v679_v5 }
 0x2cd   :  { %v6585_v42 = vpop.eup %5679  ;;  %5685 = vpow2.f32 %v675_v43 }
 0x2ce   :  { %v716_v48 = vsel %vm185_vm1, %v6585_v42, 0.0 }
 0x2cf   :  { %717 = vadd.xlane.f32.xlu0 %v716_v48 }
 0x2d1   :  { %v5682_v31 = vpop.eup %5681 }
 0x2d2   :  { %v5684_v38 = vpop.eup %5683  ;;  %v743_v7 = vmul.f32 %v5682_v31, %v6519_v13  ;;  %v906_v13 = vsel %vm778_vm2, %v6337_v9, 0  ;;  %v697_v36 = vpop.xlane.xlu0 %696 }
 0x2d3   :  { %v6590_v10 = vpop.eup %5685  ;;  %v741_v33 = vmul.f32 %v5684_v38, %v6521_v20  ;;  %v682_v27 = vpop.xlane.xlu1 %681  ;;  %v927_v38 = vsel %vm778_vm2, %v6414_v6, 0  ;;  %v1053_v6 = vsel %vm778_vm2, %v6503_v60, 0 }
 0x2d4   :  { %v759_v50 = vpack.c.bf16 %v743_v7, %v743_v7  ;;  %5687 = vrcp.f32 %v682_v27  ;;  %v722_v43 = vsel %vm185_vm1, %v6590_v10, 0.0  ;;  %v700_v60 = vpop.xlane.xlu2 %699 }
 0x2d5   :  { %v757_v16 = vpack.c.bf16 %v741_v33, %v741_v33  ;;  %5689 = vrcp.f32 %v694_v44 }
 0x2d6   :  { %5415 = vmatmul.msk.bf16.vlgmr.msrb.gmra.mxu1 %vm185_vm1, %v759_v50 }
 0x2d7   :  { %978 = vmatpush.bf16.msrb.mxu1 %v969_v17  ;;  %723 = vadd.xlane.f32.xlu0 %v722_v43 }
 0x2d8   :  { %5413 = vmatmul.msk.bf16.vlgmr.msrb.gmra.mxu2 %vm185_vm1, %v757_v16  ;;  %1821 = vrot.lane.b32.xlu2 %v6169_v61, %s6048_s12 }
 0x2d9   :  { %915 = vmatpush.bf16.msrb.mxu2 %v906_v13 }
 0x2da   :  { %v5688_v20 = vpop.eup %5687  ;;  %v703_v44 = vpop.xlane.xlu0 %702 }
 0x2db   :  { %v742_v26 = vmul.f32 %v5688_v20, %v6531_v63  ;;  %v688_v5 = vpop.xlane.xlu1 %687  ;;  %v5690_v48 = vpop.eup %5689  ;;  %v948_v20 = vsel %vm778_vm2, %v6344_v12, 0  ;;  %v1074_v12 = vsel %vm778_vm2, %v6430_v2, 0  ;;  %v1011_v2 = vsel %vm778_vm2, %v6422_v39, 0 }
 0x2dc   :  { %5691 = vrcp.f32 %v688_v5  ;;  %v746_v9 = vmul.f32 %v5690_v48, %v6489_v58  ;;  %v990_v58 = vsel %vm778_vm2, %v6400_v55, 0 }
 0x2dd   :  { %v758_v31 = vpack.c.bf16 %v742_v26, %v742_v26 }
 0x2de   :  { %v762_v27 = vpack.c.bf16 %v746_v9, %v746_v9 }
 0x2df   :  { %5414 = vmatmul.msk.bf16.vlgmr.msrb.gmra.mxu3 %vm185_vm1, %v758_v31 }
 0x2e0   :  { %936 = vmatpush.bf16.msrb.mxu3 %v927_v38  ;;  %1213 = vrot.lane.b32.xlu2 %v6153_v51, %s6047_s11 }
 0x2e1   :  { %1418 = vrot.lane.b32.xlu1 %v6360_v23, %s6046_s10 }
 0x2e2   :  { %v5692_v7 = vpop.eup %5691 }
 0x2e3   :  { %v744_v63 = vmul.f32 %v5692_v7, %v6540_v14  ;;  %v691_v33 = vpop.xlane.xlu1 %690 }
 0x2e4   :  { %5693 = vrcp.f32 %v691_v33 }
 0x2e5   :  { %v760_v50 = vpack.c.bf16 %v744_v63, %v744_v63  ;;  %5695 = vrcp.f32 %v697_v36 }
 0x2e6   :  { %5418 = vmatmul.msk.bf16.vlgmr.msra.gmra.mxu1 %vm185_vm1, %v762_v27  ;;  %5697 = vrcp.f32 %v700_v60  ;;  %v1196_v60 = vsel %vm185_vm1, %v6366_v22, 0 }
 0x2e7   :  { %1062 = vmatpush.bf16.msra.mxu1 %v1053_v6  ;;  %5699 = vrcp.f32 %v703_v44  ;;  %v1150_v6 = vsel %vm185_vm1, %v6420_v52, 0 }
 0x2e8   :  { %5416 = vmatmul.msk.bf16.vlgmr.msra.gmra.mxu2 %vm185_vm1, %v760_v50  ;;  %1989 = vrot.lane.b32.xlu2 %v6221_v30, %s6048_s12 }
 0x2e9   :  { %999 = vmatpush.bf16.msra.mxu2 %v990_v58  ;;  %1211 = vrot.lane.b32.xlu1 %v6153_v51, %s6046_s10 }
 0x2ea   :  { %v5694_v14 = vpop.eup %5693 }
 0x2eb   :  { %v745_v16 = vmul.f32 %v5694_v14, %v6548_v21  ;;  %1119 = vrot.lane.b32.xlu0 %v6120_v28, %s6046_s10  ;;  %v5696_v13 = vpop.eup %5695 }
 0x2ec   :  { %v747_v21 = vmul.f32 %v5696_v13, %v6529_v32  ;;  %v5698_v36 = vpop.eup %5697  ;;  %v6645_v32 = vpop.permute.xlu2 %1420 }
 0x2ed   :  { %v761_v17 = vpack.c.bf16 %v745_v16, %v745_v16  ;;  %v1027_v43 = vpop.permute.xlu0 %1026  ;;  %v748_v5 = vmul.f32 %v5698_v36, %v6505_v34  ;;  %v5700_v39 = vpop.eup %5699 }
 0x2ee   :  { %v1032_v55 = vsel %vm778_vm2, %v1027_v43, 0  ;;  %v763_v26 = vpack.c.bf16 %v747_v21, %v747_v21  ;;  %v749_v63 = vmul.f32 %v5700_v39, %v6538_v59  ;;  %v1095_v59 = vsel %vm778_vm2, %v6354_v18, 0 }
 0x2ef   :  { %1041 = vmatpush.bf16.msrb.mxu0 %v1032_v55  ;;  %5417 = vmatmul.msk.bf16.vlgmr.msra.gmra.mxu3 %vm185_vm1, %v761_v17  ;;  %v764_v31 = vpack.c.bf16 %v748_v5, %v748_v5  ;;  %v1173_v18 = vsel %vm185_vm1, %v6452_v4, 0  ;;  %v1265_v5 = vsel %vm185_vm1, %v6356_v19, 0 }
 0x2f0   :  { %957 = vmatpush.bf16.msra.mxu3 %v948_v20  ;;  %1926 = vrot.lane.b32.xlu2 %v6292_v53, %s6048_s12  ;;  %v765_v50 = vpack.c.bf16 %v749_v63, %v749_v63  ;;  %v1357_v63 = vsel %vm185_vm1, %v6384_v40, 0 }
 0x2f1   :  { %1905 = vrot.lane.b32.xlu1 %v6210_v25, %s6048_s12 }
 0x2f3   :  { %1737 = vrot.lane.b32.xlu0 %v6137_v41, %s6048_s12 }
 0x2f8   :  { %5419 = vmatmul.msk.bf16.vlgmr.msrb.gmra.mxu2 %vm185_vm1, %v763_v26  ;;  %1303 = vrot.lane.b32.xlu2 %v6185_v8, %s6046_s10 }
 0x2f9   :  { %1083 = vmatpush.bf16.msrb.mxu2 %v1074_v12  ;;  %1842 = vrot.lane.b32.xlu1 %v6177_v3, %s6048_s12 }
 0x2fb   :  { %1758 = vrot.lane.b32.xlu0 %v6145_v46, %s6048_s12  ;;  %v6649_v48 = vpop.permute.xlu1 %1326 }
 0x2ff   :  { %5420 = vmatmul.msk.bf16.vlgmr.msrb.gmra.mxu3 %vm185_vm1, %v764_v31 }
 0x300   :  { %1020 = vmatpush.bf16.msrb.mxu3 %v1011_v2  ;;  %2192 = vrot.lane.b32.xlu2 %v6120_v28, %s6049_s13 }
 0x301   :  { %2010 = vrot.lane.b32.xlu1 %v6208_v24, %s6048_s12 }
 0x302   :  { %v706_v34 = vpop.xlane.xlu2 %705 }
 0x303   :  { %5701 = vrcp.f32 %v706_v34  ;;  %1305 = vrot.lane.b32.xlu0 %v6185_v8, %s6047_s11  ;;  %v1122_v38 = vpop.permute.xlu1 %1121 }
 0x304   :  { %v1127_v9 = vsel %vm185_vm1, %v1122_v38, 0  ;;  %v1242_v38 = vsel %vm185_vm1, %v6402_v57, 0  ;;  %v1288_v57 = vsel %vm185_vm1, %v6370_v29, 0 }
 0x305   :  { %1136 = vmatpush.bf16.xpose.msra.mxu0 %v1127_v9 }
 0x308   :  { %2240 = vrot.lane.b32.xlu2 %v6137_v41, %s6050_s14 }
 0x309   :  { %v5702_v7 = vpop.eup %5701  ;;  %1397 = vrot.lane.b32.xlu1 %v6322_v1, %s6047_s11  ;;  %s5368_s11 = sshll.u32 %s8968_s6, 4  ;;  %s5369_s11 = int_to_ptr.hbm [resolvable:$true] %s5368_s11 }
 0x30a   :  { %v750_v33 = vmul.f32 %v5702_v7, %v6558_v45  ;;  %v709_v27 = vpop.xlane.xlu2 %708 }
 0x30b   :  { %5703 = vrcp.f32 %v709_v27  ;;  %2194 = vrot.lane.b32.xlu0 %v6120_v28, %s6050_s14 }
 0x30c   :  { %v766_v44 = vpack.c.bf16 %v750_v33, %v750_v33 }
 0x30e   :  { %5422 = vmatmul.msk.bf16.vlgmr.msrb.gmra.mxu1 %vm185_vm1, %v766_v44 }
 0x30f   :  { %1159 = vmatpush.bf16.xpose.msrb.mxu1 %v1150_v6  ;;  %5421 = vmatmul.msk.bf16.vlgmr.msra.gmra.mxu3 %vm185_vm1, %v765_v50  ;;  %v1334_v50 = vsel %vm185_vm1, %v6434_v11, 0 }
 0x310   :  { %1104 = vmatpush.bf16.msra.mxu3 %v1095_v59  ;;  %2217 = vrot.lane.b32.xlu2 %v6128_v35, %s6050_s14 }
 0x311   :  { %v5704_v45 = vpop.eup %5703  ;;  %2286 = vrot.lane.b32.xlu1 %v6153_v51, %s6050_s14 }
 0x312   :  { %v751_v58 = vmul.f32 %v5704_v45, %v6564_v37 }
 0x313   :  { %1395 = vrot.lane.b32.xlu0 %v6322_v1, %s6046_s10 }
 0x314   :  { %v767_v52 = vpack.c.bf16 %v751_v58, %v751_v58  ;;  %v9024_v58 = vld [vmem:[#allocation27_spill] sm:$0xff] }
 0x315   :  { %v1380_v11 = vsel %vm185_vm1, %v9024_v58, 0  ;;  %v9036_v58 = vld [vmem:[#allocation23_spill] sm:$0xff] }
 0x316   :  { %5423 = vmatmul.msk.bf16.vlgmr.msra.gmra.mxu2 %vm185_vm1, %v767_v52  ;;  %v9025_v52 = vld [vmem:[#allocation19_spill] sm:$0xff] }
 0x317   :  { %1182 = vmatpush.bf16.xpose.msra.mxu2 %v1173_v18  ;;  %v9026_v18 = vld [vmem:[#allocation21_spill] sm:$0xff] }
 0x318   :  { %2238 = vrot.lane.b32.xlu2 %v6137_v41, %s6049_s13 }
 0x319   :  { %2284 = vrot.lane.b32.xlu1 %v6153_v51, %s6049_s13 }
 0x31b   :  { %2330 = vrot.lane.b32.xlu0 %v6169_v61, %s6049_s13 }
 0x320   :  { %2215 = vrot.lane.b32.xlu2 %v6128_v35, %s6049_s13 }
 0x321   :  { %2332 = vrot.lane.b32.xlu1 %v6169_v61, %s6050_s14  ;;  %v712_v37 = vpop.xlane.xlu2 %711 }
 0x322   :  { %5705 = vrcp.f32 %v712_v37  ;;  %v9027_v37 = vld [vmem:[#allocation20_spill] sm:$0xff] }
 0x323   :  { %2378 = vrot.lane.b32.xlu0 %v6185_v8, %s6050_s14 }
 0x328   :  { %v5706_v4 = vpop.eup %5705  ;;  %2263 = vrot.lane.b32.xlu2 %v6145_v46, %s6050_s14 }
 0x329   :  { %v752_v14 = vmul.f32 %v5706_v4, %v6569_v49  ;;  %2422 = vrot.lane.b32.xlu1 %v6210_v25, %s6049_s13 }
 0x32b   :  { %v768_v16 = vpack.c.bf16 %v752_v14, %v752_v14  ;;  %2376 = vrot.lane.b32.xlu0 %v6185_v8, %s6049_s13 }
 0x32d   :  { %5424 = vmatmul.msk.bf16.vlgmr.msrb.gmra.mxu3 %vm185_vm1, %v768_v16 }
 0x32e   :  { %1205 = vmatpush.bf16.xpose.msrb.mxu3 %v1196_v60 }
 0x330   :  { %2261 = vrot.lane.b32.xlu2 %v6145_v46, %s6049_s13 }
 0x331   :  { %2470 = vrot.lane.b32.xlu1 %v6322_v1, %s6050_s14 }
 0x333   :  { %2353 = vrot.lane.b32.xlu0 %v6177_v3, %s6049_s13  ;;  %v715_v49 = vpop.xlane.xlu2 %714 }
 0x334   :  { %5707 = vrcp.f32 %v715_v49 }
 0x338   :  { %2309 = vrot.lane.b32.xlu2 %v6161_v56, %s6050_s14 }
 0x339   :  { %2447 = vrot.lane.b32.xlu1 %v6292_v53, %s6050_s14 }
 0x33a   :  { %v5708_v22 = vpop.eup %5707 }
 0x33b   :  { %2424 = vrot.lane.b32.xlu0 %v6210_v25, %s6050_s14  ;;  %v721_v17 = vpop.xlane.xlu1 %720  ;;  %v6719_v43 = vpop.permute.xlu2 %1821  ;;  %v753_v55 = vmul.f32 %v5708_v22, %v6575_v54 }
 0x33c   :  { %5709 = vrcp.f32 %v721_v17 }
 0x33d   :  { %v769_v13 = vpack.c.bf16 %v753_v55, %v753_v55  ;;  %v1426_v55 = vsel %vm185_vm1, %v6645_v32, 0 }
 0x33f   :  { %5425 = vmatmul.msk.bf16.vlgmr.msrb.gmra.mxu0 %vm185_vm1, %v769_v13  ;;  %v9028_v13 = vld [vmem:[#allocation26_spill] sm:$0xff] }
 0x340   :  { %2307 = vrot.lane.b32.xlu2 %v6161_v56, %s6049_s13 }
 0x341   :  { %2468 = vrot.lane.b32.xlu1 %v6322_v1, %s6049_s13 }
 0x342   :  { %v5710_v20 = vpop.eup %5709  ;;  %v718_v21 = vpop.xlane.xlu0 %717 }
 0x343   :  { %v755_v36 = vmul.f32 %v5710_v20, %v6581_v62  ;;  %5711 = vrcp.f32 %v718_v21  ;;  %2401 = vrot.lane.b32.xlu0 %v6194_v15, %s6050_s14  ;;  %v1214_v26 = vpop.permute.xlu2 %1213 }
 0x344   :  { %v1219_v54 = vsel %vm185_vm1, %v1214_v26, 0 }
 0x345   :  { %v771_v12 = vpack.c.bf16 %v755_v36, %v755_v36  ;;  %1228 = vmatpush.bf16.xpose.msrb.mxu0 %v1219_v54 }
 0x347   :  { %5427 = vmatmul.msk.bf16.vlgmr.msrb.gmra.mxu2 %vm185_vm1, %v771_v12 }
 0x348   :  { %1274 = vmatpush.bf16.xpose.msrb.mxu2 %v1265_v5  ;;  %2355 = vrot.lane.b32.xlu2 %v6177_v3, %s6050_s14  ;;  %v9030_v5 = vld [vmem:[#allocation24_spill] sm:$0xff] }
 0x349   :  { %v5712_v31 = vpop.eup %5711  ;;  %2445 = vrot.lane.b32.xlu1 %v6292_v53, %s6049_s13  ;;  %v1472_v32 = vsel %vm185_vm1, %v9030_v5, 0 }
 0x34a   :  { %v754_v62 = vmul.f32 %v5712_v31, %v6585_v42  ;;  %v724_v2 = vpop.xlane.xlu0 %723 }
 0x34b   :  { %5713 = vrcp.f32 %v724_v2  ;;  %v6781_v4 = vpop.permute.xlu2 %1989 }
 0x34c   :  { %v770_v34 = vpack.c.bf16 %v754_v62, %v754_v62  ;;  %v9031_v62 = vld [vmem:[#allocation29_spill] sm:$0xff] }
 0x34e   :  { %5426 = vmatmul.msk.bf16.vlgmr.msra.gmra.mxu1 %vm185_vm1, %v770_v34  ;;  %v9032_v34 = vld [vmem:[#allocation25_spill] sm:$0xff] }
 0x34f   :  { %1251 = vmatpush.bf16.xpose.msra.mxu1 %v1242_v38 }
 0x350   :  { %2399 = vrot.lane.b32.xlu2 %v6194_v15, %s6049_s13 }
 0x351   :  { %v5714_v19 = vpop.eup %5713  ;;  %2516 = vrot.lane.b32.xlu1 %v6221_v30, %s6050_s14 }
 0x352   :  { %v756_v9 = vmul.f32 %v5714_v19, %v6590_v10 }
 0x353   :  { %v6747_v39 = vpop.f32.mrf.mxu1  ;;  %v6749_v42 = vpop.permute.xlu1 %1418 }
 0x354   :  { %v772_v7 = vpack.c.bf16 %v756_v9, %v756_v9  ;;  %v6794_v21 = vpop.permute.xlu2 %1926 }
 0x356   :  { %5428 = vmatmul.msk.bf16.vlgmr.msra.gmra.mxu3 %vm185_vm1, %v772_v7 }
 0x357   :  { %1297 = vmatpush.bf16.xpose.msra.mxu3 %v1288_v57  ;;  %5431 = vmatmul.msk.bf16.vlgmr.msra.gmra.mxu2 %vm185_vm1, %v6346_v0 }
 0x358   :  { %1366 = vmatpush.bf16.xpose.msra.mxu2 %v1357_v63 }
 0x35b   :  { %v6758_v33 = vpop.f32.mrf.mxu2  ;;  %v835_v10 = vpop.f32.mrf.mxu1 }
 0x35c   :  { %v1212_v27 = vpop.permute.xlu1 %1211  ;;  %v1304_v7 = vpop.permute.xlu2 %1303 }
 0x35d   :  { %v1120_v44 = vpop.permute.xlu0 %1119 }
 0x35e   :  { %5429 = vmatmul.msk.bf16.vlgmr.msra.gmra.mxu0 %vm185_vm1, %v1120_v44  ;;  %5430 = vmatmul.msk.bf16.vlgmr.msrb.gmra.mxu1 %vm185_vm1, %v6487_v47  ;;  %v1449_v47 = vsel %vm185_vm1, %v9026_v18, 0 }
 0x35f   :  { %1343 = vmatpush.bf16.xpose.msrb.mxu1 %v1334_v50 }
 0x362   :  { %v6765_v29 = vpop.f32.mrf.mxu3 }
 0x363   :  { %v793_v40 = vpop.f32.mrf.mxu2  ;;  %v6769_v6 = vpop.f32.mrf.mxu1 }
 0x364   :  { %9023 = vst [vmem:[#allocation30_spill] sm:$0xff] %v6769_v6  ;;  %v6771_v59 = vpop.permute.xlu1 %1905  ;;  %v9035_v40 = vld [vmem:[#allocation28_spill] sm:$0xff] }
 0x365   :  { %v1738_v45 = vpop.permute.xlu0 %1737 }
 0x366   :  { %5432 = vmatmul.msk.bf16.vlgmr.msrb.gmra.mxu3 %vm185_vm1, %v9025_v52  ;;  %v1743_v2 = vsel %vm778_vm2, %v1738_v45, 0  ;;  %v1827_v45 = vsel %vm778_vm2, %v6719_v43, 0 }
 0x367   :  { %1389 = vmatpush.bf16.xpose.msrb.mxu3 %v1380_v11  ;;  %5435 = vmatmul.msk.bf16.vlgmr.msrb.gmra.mxu2 %vm185_vm1, %v9027_v37 }
 0x368   :  { %1458 = vmatpush.bf16.xpose.msrb.mxu2 %v1449_v47 }
 0x36a   :  { %v814_v14 = vpop.f32.mrf.mxu3 }
 0x36b   :  { %v6783_v16 = vpop.f32.mrf.mxu2  ;;  %v898_v60 = vpop.f32.mrf.mxu1  ;;  %v9039_v14 = vld [vmem:[#allocation22_spill] sm:$0xff] }
 0x36c   :  { %v1843_v22 = vpop.permute.xlu1 %1842 }
 0x36d   :  { %v1759_v17 = vpop.permute.xlu0 %1758  ;;  %v1848_v43 = vsel %vm778_vm2, %v1843_v22, 0 }
 0x36e   :  { %5433 = vmatmul.msk.bf16.vlgmr.msrb.gmra.mxu0 %vm185_vm1, %v1212_v27  ;;  %5434 = vmatmul.msk.bf16.vlgmr.msra.gmra.mxu1 %vm185_vm1, %v9028_v13  ;;  %v1764_v50 = vsel %vm778_vm2, %v1759_v17, 0 }
 0x36f   :  { %1435 = vmatpush.bf16.xpose.msra.mxu1 %v1426_v55 }
 0x372   :  { %v6792_v20 = vpop.f32.mrf.mxu3 }
 0x373   :  { %9029 = vst [vmem:[#allocation27_spill] sm:$0xff] %v6792_v20  ;;  %v856_v36 = vpop.f32.mrf.mxu2 }
 0x374   :  { %v6798_v54 = vpop.permute.xlu1 %2010 }
 0x375   :  { %v1306_v12 = vpop.permute.xlu0 %1305 }
 0x376   :  { %v1311_v31 = vsel %vm185_vm1, %v1306_v12, 0  ;;  %5436 = vmatmul.msk.bf16.vlgmr.msra.gmra.mxu3 %vm185_vm1, %v9031_v62 }
 0x377   :  { %1481 = vmatpush.bf16.xpose.msra.mxu3 %v1472_v32  ;;  %1320 = vmatpush.bf16.xpose.msra.mxu0 %v1311_v31 }
 0x378   :  { %5439 = vmatmul.msk.bf16.vlgmr.msra.gmra.mxu2 %vm185_vm1, %v9032_v34 }
 0x379   :  { %1752 = vmatpush.bf16.msra.mxu2 %v1743_v2 }
 0x37a   :  { %v877_v38 = vpop.f32.mrf.mxu3 }
 0x37b   :  { %v6808_v19 = vpop.f32.mrf.mxu2 }
 0x37c   :  { %9033 = vst [vmem:[#allocation19_spill] sm:$0xff] %v6808_v19  ;;  %v1398_v9 = vpop.permute.xlu1 %1397 }
 0x37d   :  { %v1403_v57 = vsel %vm185_vm1, %v1398_v9, 0  ;;  %v6816_v10 = vpop.permute.xlu0 %2194 }
 0x37e   :  { %5437 = vmatmul.msk.bf16.vlgmr.msra.gmra.mxu0 %vm185_vm1, %v1304_v7  ;;  %5438 = vmatmul.msk.bf16.vlgmr.msrb.gmra.mxu1 %vm185_vm1, %v6649_v48 }
 0x37f   :  { %1412 = vmatpush.bf16.xpose.msrb.mxu0 %v1403_v57 }
 0x382   :  { %v6814_v63 = vpop.f32.mrf.mxu3 }
 0x383   :  { %9034 = vst [vmem:[#allocation21_spill] sm:$0xff] %v6814_v63  ;;  %v919_v27 = vpop.f32.mrf.mxu2 }
 0x385   :  { %v1396_v52 = vpop.permute.xlu0 %1395 }
 0x386   :  { %5440 = vmatmul.msk.bf16.vlgmr.msrb.gmra.mxu3 %vm185_vm1, %v9035_v40 }
 0x387   :  { %1773 = vmatpush.bf16.msrb.mxu3 %v1764_v50 }
 0x388   :  { %5443 = vmatmul.msk.bf16.vlgmr.msrb.gmra.mxu2 %vm185_vm1, %v9036_v58 }
 0x389   :  { %1836 = vmatpush.bf16.msrb.mxu2 %v1827_v45 }
 0x38a   :  { %v940_v48 = vpop.f32.mrf.mxu3 }
 0x38b   :  { %v6827_v11 = vpop.f32.mrf.mxu1 }
 0x38c   :  { %9037 = vst [vmem:[#allocation20_spill] sm:$0xff] %v6827_v11 }
 0x38e   :  { %5441 = vmatmul.msk.bf16.vlgmr.msrb.gmra.mxu0 %vm185_vm1, %v1396_v52  ;;  %5442 = vmatmul.msk.bf16.vlgmr.msra.gmra.mxu1 %vm185_vm1, %v6749_v42 }
 0x392   :  { %v6832_v18 = vpop.f32.mrf.mxu3 }
 0x393   :  { %9038 = vst [vmem:[#allocation26_spill] sm:$0xff] %v6832_v18  ;;  %v982_v37 = vpop.f32.mrf.mxu1 }
 0x396   :  { %5444 = vmatmul.msk.bf16.vlgmr.msra.gmra.mxu3 %vm185_vm1, %v9039_v14  ;;  %v6867_v14 = vpop.permute.xlu2 %2192 }
 0x397   :  { %1857 = vmatpush.bf16.msra.mxu3 %v1848_v43 }
 0x399   :  { %v6839_v60 = vpop.f32.mrf.mxu2 }
 0x39a   :  { %9040 = vst [vmem:[#allocation24_spill] sm:$0xff] %v6839_v60  ;;  %v961_v17 = vpop.f32.mrf.mxu3 }
 0x3a1   :  { %v1003_v55 = vpop.f32.mrf.mxu2 }
 0x3b0   :  { %v6841_v13 = vpop.f32.mrf.mxu3 }
 0x3b1   :  { %9041 = vst [vmem:[#allocation29_spill] sm:$0xff] %v6841_v13 }
 0x3b8   :  { %v1024_v36 = vpop.f32.mrf.mxu3 }
 0x3bc   :  { %v6845_v12 = vpop.f32.mrf.mxu0 }
 0x3bd   :  { %9042 = vst [vmem:[#allocation25_spill] sm:$0xff] %v6845_v12 }
 0x3c4   :  { %v1045_v5 = vpop.f32.mrf.mxu0 }
 0x3ca   :  { %v6847_v32 = vpop.f32.mrf.mxu2 }
 0x3cb   :  { %9043 = vst [vmem:[#allocation28_spill] sm:$0xff] %v6847_v32  ;;  %v6849_v22 = vpop.f32.mrf.mxu1 }
 0x3cc   :  { %9044 = vst [vmem:[#allocation23_spill] sm:$0xff] %v6849_v22 }
 0x3d2   :  { %v1087_v62 = vpop.f32.mrf.mxu2 }
 0x3d3   :  { %v1066_v2 = vpop.f32.mrf.mxu1 }
 0x3d9   :  { %v6853_v34 = vpop.f32.mrf.mxu3 }
 0x3da   :  { %9045 = vst [vmem:[#allocation22_spill] sm:$0xff] %v6853_v34  ;;  %v1184_v9 = vpop.f32.mrf.mxu2 }
 0x3db   :  { %v1138_v7 = vpop.f32.mrf.mxu0  ;;  %v1161_v57 = vpop.f32.mrf.mxu1  ;;  %v6865_v48 = vmul.f32 0.17677669, %v1184_v9 }
 0x3dc   :  { %v6857_v27 = vmul.f32 0.17677669, %v1138_v7  ;;  %v6859_v50 = vmul.f32 0.17677669, %v1161_v57 }
 0x3dd   :  { %v1509_v17 = vsel %vm185_vm1, %v6865_v48, -inf }
 0x3de   :  { %v1506_v40 = vsel %vm185_vm1, %v6859_v50, -inf  ;;  %v1503_v45 = vsel %vm185_vm1, %v6857_v27, -inf }
 0x3df   :  { %1507 = vmax.xlane.f32.xlu1 %v1506_v40  ;;  %1504 = vmax.xlane.f32.xlu2 %v1503_v45  ;;  %v6883_v45 = vpop.permute.xlu2 %2240 }
 0x3e1   :  { %v1108_v58 = vpop.f32.mrf.mxu3 }
 0x3e2   :  { %v1186_v52 = vpop.f32.mrf.mxu2 }
 0x3e3   :  { %v1140_v37 = vpop.f32.mrf.mxu0  ;;  %v1163_v43 = vpop.f32.mrf.mxu1 }
 0x3e7   :  { %1510 = vmax.xlane.f32.xlu2 %v1509_v17 }
 0x3e9   :  { %v1207_v55 = vpop.f32.mrf.mxu3 }
 0x3ea   :  { %v6871_v36 = vmul.f32 0.17677669, %v1207_v55  ;;  %v1276_v5 = vpop.f32.mrf.mxu2  ;;  %v6887_v55 = vpop.permute.xlu2 %2217 }
 0x3eb   :  { %v6873_v62 = vpop.f32.mrf.mxu0  ;;  %v1253_v2 = vpop.f32.mrf.mxu1  ;;  %v6875_v7 = vmul.f32 0.17677669, %v1276_v5 }
 0x3ec   :  { %v6877_v9 = vmul.f32 0.17677669, %v1253_v2  ;;  %v1512_v57 = vsel %vm185_vm1, %v6871_v36, -inf  ;;  %v6889_v2 = vpop.permute.xlu1 %2286 }
 0x3ed   :  { %1513 = vmax.xlane.f32.xlu1 %v1512_v57  ;;  %v1521_v40 = vsel %vm185_vm1, %v6875_v7, -inf }
 0x3ee   :  { %1522 = vmax.xlane.f32.xlu0 %v1521_v40  ;;  %v1518_v58 = vsel %vm185_vm1, %v6877_v9, -inf }
 0x3ef   :  { %1519 = vmax.xlane.f32.xlu2 %v1518_v58 }
 0x3f1   :  { %v1209_v52 = vpop.f32.mrf.mxu3 }
 0x3f2   :  { %v1278_v37 = vpop.f32.mrf.mxu2 }
 0x3f3   :  { %v1232_v43 = vpop.f32.mrf.mxu0  ;;  %v1255_v17 = vpop.f32.mrf.mxu1 }
 0x3f4   :  { %v6899_v37 = vpop.permute.xlu2 %2238  ;;  %v6901_v47 = vpop.permute.xlu1 %2284 }
 0x3f9   :  { %v1299_v5 = vpop.f32.mrf.mxu3 }
 0x3fa   :  { %v6891_v57 = vmul.f32 0.17677669, %v1299_v5 }
 0x3fb   :  { %v6893_v38 = vpop.f32.mrf.mxu0  ;;  %v1345_v31 = vpop.f32.mrf.mxu1 }
 0x3fc   :  { %v1368_v42 = vpop.f32.mrf.mxu2  ;;  %v1524_v40 = vsel %vm185_vm1, %v6891_v57, -inf  ;;  %v6897_v58 = vmul.f32 0.17677669, %v1345_v31  ;;  %v6919_v0 = vpop.permute.xlu1 %2332 }
 0x3fd   :  { %1525 = vmax.xlane.f32.xlu0 %v1524_v40  ;;  %v6907_v26 = vmul.f32 0.17677669, %v1368_v42 }
 0x3fe   :  { %v1530_v5 = vsel %vm185_vm1, %v6897_v58, -inf }
 0x401   :  { %v1301_v52 = vpop.f32.mrf.mxu3 }
 0x403   :  { %v1324_v43 = vpop.f32.mrf.mxu0  ;;  %v1347_v17 = vpop.f32.mrf.mxu1 }
 0x404   :  { %v1370_v44 = vpop.f32.mrf.mxu2  ;;  %v1533_v17 = vsel %vm185_vm1, %v6907_v26, -inf }
 0x405   :  { %1531 = vmax.xlane.f32.xlu0 %v1530_v5  ;;  %v6917_v5 = vpop.permute.xlu2 %2215 }
 0x406   :  { %1716 = vrot.lane.b32.xlu1 %v6128_v35, %s6048_s12 }
 0x409   :  { %v1391_v40 = vpop.f32.mrf.mxu3 }
 0x40a   :  { %v6909_v31 = vmul.f32 0.17677669, %v1391_v40 }
 0x40b   :  { %v6911_v52 = vpop.f32.mrf.mxu0  ;;  %v1437_v49 = vpop.f32.mrf.mxu1 }
 0x40c   :  { %v1460_v43 = vpop.f32.mrf.mxu2  ;;  %v1536_v44 = vsel %vm185_vm1, %v6909_v31, -inf  ;;  %v6965_v61 = vmul.f32 0.17677669, %v1437_v49 }
 0x40d   :  { %1534 = vmax.xlane.f32.xlu0 %v1533_v17  ;;  %1537 = vmax.xlane.f32.xlu2 %v1536_v44  ;;  %v6923_v42 = vmul.f32 0.17677669, %v1460_v43  ;;  %v6929_v17 = vpop.permute.xlu2 %2263  ;;  %v6931_v44 = vpop.permute.xlu1 %2422 }
 0x40e   :  { %2514 = vrot.lane.b32.xlu1 %v6221_v30, %s6049_s13  ;;  %9046 = vst [vmem:[#allocation31_spill] sm:$0xff] %v6931_v44  ;;  %v1542_v19 = vsel %vm185_vm1, %v6965_v61, -inf }
 0x40f   :  { %v1545_v22 = vsel %vm185_vm1, %v6923_v42, -inf }
 0x411   :  { %v1393_v40 = vpop.f32.mrf.mxu3 }
 0x413   :  { %v1416_v32 = vpop.f32.mrf.mxu0  ;;  %v1439_v34 = vpop.f32.mrf.mxu1 }
 0x414   :  { %v1462_v12 = vpop.f32.mrf.mxu2  ;;  %v6943_v34 = vpop.permute.xlu0 %2330 }
 0x415   :  { %1546 = vmax.xlane.f32.xlu2 %v1545_v22  ;;  %v6939_v32 = vpop.permute.xlu2 %2261  ;;  %v6941_v22 = vpop.permute.xlu1 %2470  ;;  %9048 = vst [vmem:[#allocation33_spill] sm:$0xff] %v6943_v34 }
 0x416   :  { %2491 = vrot.lane.b32.xlu1 %v6360_v23, %s6049_s13  ;;  %9047 = vst [vmem:[#allocation32_spill] sm:$0xff] %v6941_v22 }
 0x419   :  { %v1483_v60 = vpop.f32.mrf.mxu3 }
 0x41a   :  { %v6933_v13 = vmul.f32 0.17677669, %v1483_v60 }
 0x41c   :  { %v1548_v43 = vsel %vm185_vm1, %v6933_v13, -inf  ;;  %v6949_v60 = vpop.permute.xlu0 %2378 }
 0x41d   :  { %1549 = vmax.xlane.f32.xlu2 %v1548_v43  ;;  %v6945_v40 = vpop.permute.xlu2 %2309  ;;  %v6947_v30 = vpop.permute.xlu1 %2447 }
 0x421   :  { %2493 = vrot.lane.b32.xlu0 %v6360_v23, %s6050_s14  ;;  %v1485_v12 = vpop.f32.mrf.mxu3 }
 0x424   :  { %v6957_v12 = vpop.permute.xlu0 %2376 }
 0x425   :  { %v6953_v43 = vpop.permute.xlu2 %2307  ;;  %v6955_v53 = vpop.permute.xlu1 %2468  ;;  %9050 = vst [vmem:[#allocation35_spill] sm:$0xff] %v6957_v12 }
 0x426   :  { %9049 = vst [vmem:[#allocation34_spill] sm:$0xff] %v6955_v53 }
 0x42c   :  { %v6963_v11 = vpop.permute.xlu0 %2353 }
 0x42d   :  { %v6959_v3 = vpop.permute.xlu2 %2355  ;;  %v6961_v18 = vpop.permute.xlu1 %2445  ;;  %9052 = vst [vmem:[#allocation37_spill] sm:$0xff] %v6963_v11 }
 0x42e   :  { %9051 = vst [vmem:[#allocation36_spill] sm:$0xff] %v6961_v18 }
 0x434   :  { %v6973_v63 = vpop.permute.xlu0 %2424 }
 0x435   :  { %2539 = vrot.lane.b32.xlu2 %v6208_v24, %s6050_s14  ;;  %v6967_v44 = vpop.permute.xlu2 %2399  ;;  %v6969_v1 = vpop.permute.xlu1 %2516  ;;  %9055 = vst [vmem:[#allocation40_spill] sm:$0xff] %v6973_v63 }
 0x436   :  { %9053 = vst [vmem:[#allocation38_spill] sm:$0xff] %v6967_v44 }
 0x437   :  { %9054 = vst [vmem:[#allocation39_spill] sm:$0xff] %v6969_v1 }
 0x43c   :  { %v6978_v22 = vpop.permute.xlu0 %2401 }
 0x44b   :  { %1543 = vmax.xlane.f32.xlu0 %v1542_v19 }
 0x452   :  { %v1508_v53 = vpop.xlane.xlu1 %1507  ;;  %v6975_v8 = vpop.xlane.xlu2 %1504 }
 0x453   :  { %v1552_v12 = vsub.f32 %v6859_v50, %v1508_v53 }
 0x455   :  { %v1569_v18 = vmul.f32 1.442695, %v1552_v12 }
 0x457   :  { %5715 = vpow2.f32 %v1569_v18 }
 0x45a   :  { %v1511_v49 = vpop.xlane.xlu2 %1510 }
 0x45b   :  { %v1553_v44 = vsub.f32 %v6865_v48, %v1511_v49 }
 0x45d   :  { %v6981_v20 = vpop.eup %5715  ;;  %v1571_v1 = vmul.f32 1.442695, %v1553_v44 }
 0x45e   :  { %v1602_v19 = vsel %vm185_vm1, %v6981_v20, 0.0 }
 0x45f   :  { %5717 = vpow2.f32 %v1571_v1  ;;  %1603 = vadd.xlane.f32.xlu0 %v1602_v19 }
 0x460   :  { %v1514_v6 = vpop.xlane.xlu1 %1513 }
 0x461   :  { %v1554_v34 = vsub.f32 %v6871_v36, %v1514_v6  ;;  %v1523_v63 = vpop.xlane.xlu0 %1522 }
 0x462   :  { %v1520_v53 = vpop.xlane.xlu2 %1519  ;;  %v1557_v18 = vsub.f32 %v6875_v7, %v1523_v63 }
 0x463   :  { %v1573_v50 = vmul.f32 1.442695, %v1554_v34  ;;  %v1556_v12 = vsub.f32 %v6877_v9, %v1520_v53 }
 0x464   :  { %v1579_v11 = vmul.f32 1.442695, %v1557_v18 }
 0x465   :  { %v6988_v48 = vpop.eup %5717  ;;  %5719 = vpow2.f32 %v1573_v50  ;;  %v1577_v1 = vmul.f32 1.442695, %v1556_v12 }
 0x466   :  { %5721 = vpow2.f32 %v1579_v11  ;;  %v1605_v44 = vsel %vm185_vm1, %v6988_v48, 0.0 }
 0x467   :  { %1606 = vadd.xlane.f32.xlu1 %v1605_v44  ;;  %5723 = vpow2.f32 %v1577_v1 }
 0x46b   :  { %v6992_v49 = vpop.eup %5719 }
 0x46c   :  { %v6994_v6 = vpop.eup %5721  ;;  %v1608_v36 = vsel %vm185_vm1, %v6992_v49, 0.0 }
 0x46d   :  { %v1617_v63 = vsel %vm185_vm1, %v6994_v6, 0.0  ;;  %v7001_v9 = vpop.eup %5723 }
 0x46e   :  { %1618 = vadd.xlane.f32.xlu0 %v1617_v63  ;;  %v1614_v19 = vsel %vm185_vm1, %v7001_v9, 0.0 }
 0x46f   :  { %1609 = vadd.xlane.f32.xlu1 %v1608_v36 }
 0x470   :  { %v1526_v7 = vpop.xlane.xlu0 %1525 }
 0x471   :  { %v1558_v11 = vsub.f32 %v6891_v57, %v1526_v7 }
 0x473   :  { %v1581_v34 = vmul.f32 1.442695, %v1558_v11 }
 0x475   :  { %5725 = vpow2.f32 %v1581_v34 }
 0x476   :  { %1615 = vadd.xlane.f32.xlu0 %v1614_v19 }
 0x478   :  { %v1717_v53 = vpop.permute.xlu1 %1716  ;;  %v1532_v18 = vpop.xlane.xlu0 %1531 }
 0x479   :  { %v1722_v50 = vsel %vm778_vm2, %v1717_v53, 0 }
 0x47a   :  { %1731 = vmatpush.bf16.msrb.mxu1 %v1722_v50 }
 0x47b   :  { %v7006_v12 = vpop.eup %5725 }
 0x47c   :  { %v1620_v44 = vsel %vm185_vm1, %v7006_v12, 0.0 }
 0x47e   :  { %1621 = vadd.xlane.f32.xlu0 %v1620_v44 }
 0x480   :  { %v1538_v57 = vpop.xlane.xlu2 %1537  ;;  %v1535_v1 = vpop.xlane.xlu0 %1534 }
 0x481   :  { %v1561_v63 = vsub.f32 %v6907_v26, %v1535_v1  ;;  %v1562_v1 = vsub.f32 %v6909_v31, %v1538_v57 }
 0x483   :  { %v1587_v36 = vmul.f32 1.442695, %v1561_v63  ;;  %v1589_v63 = vmul.f32 1.442695, %v1562_v1 }
 0x485   :  { %5727 = vpow2.f32 %v1587_v36  ;;  %v7026_v36 = vmul.f32 0.17677669, %v6873_v62 }
 0x488   :  { %1800 = vrot.lane.b32.xlu1 %v6161_v56, %s6048_s12  ;;  %v1547_v7 = vpop.xlane.xlu2 %1546 }
 0x489   :  { %v1565_v62 = vsub.f32 %v6923_v42, %v1547_v7 }
 0x48b   :  { %v7013_v11 = vpop.eup %5727 }
 0x48c   :  { %v1629_v34 = vsel %vm185_vm1, %v7013_v11, 0.0 }
 0x48d   :  { %1630 = vadd.xlane.f32.xlu2 %v1629_v34  ;;  %v1515_v34 = vsel %vm185_vm1, %v7026_v36, -inf }
 0x490   :  { %v1550_v19 = vpop.xlane.xlu2 %1549 }
 0x491   :  { %v1566_v53 = vsub.f32 %v6933_v13, %v1550_v19  ;;  %v1551_v13 = vsub.f32 %v6857_v27, %v6975_v8  ;;  %v1595_v27 = vmul.f32 1.442695, %v1565_v62 }
 0x493   :  { %v1597_v50 = vmul.f32 1.442695, %v1566_v53  ;;  %v1567_v19 = vmul.f32 1.442695, %v1551_v13  ;;  %v7041_v8 = vpop.permute.xlu0 %2493 }
 0x495   :  { %5729 = vpow2.f32 %v1597_v50 }
 0x496   :  { %5731 = vpow2.f32 %v1589_v63  ;;  %v7046_v63 = vpop.permute.xlu1 %2514 }
 0x497   :  { %5733 = vpow2.f32 %v1567_v19 }
 0x498   :  { %5735 = vpow2.f32 %v1595_v27 }
 0x49b   :  { %v7018_v44 = vpop.eup %5729 }
 0x49c   :  { %v1644_v26 = vsel %vm185_vm1, %v7018_v44, 0.0  ;;  %v7034_v53 = vpop.eup %5731 }
 0x49d   :  { %1645 = vadd.xlane.f32.xlu0 %v1644_v26  ;;  %v1632_v31 = vsel %vm185_vm1, %v7034_v53, 0.0  ;;  %v7039_v57 = vpop.eup %5733  ;;  %v1560_v26 = vsub.f32 %v6897_v58, %v1532_v18 }
 0x49e   :  { %v1599_v50 = vsel %vm185_vm1, %v7039_v57, 0.0  ;;  %v7049_v19 = vpop.eup %5735 }
 0x49f   :  { %v1585_v13 = vmul.f32 1.442695, %v1560_v26  ;;  %v1641_v7 = vsel %vm185_vm1, %v7049_v19, 0.0 }
 0x4a1   :  { %5737 = vpow2.f32 %v1585_v13 }
 0x4a5   :  { %2537 = vrot.lane.b32.xlu2 %v6208_v24, %s6049_s13  ;;  %v1932_v24 = vsel %vm778_vm2, %v6794_v21, 0  ;;  %v7083_v21 = vpop.permute.xlu2 %2539 }
 0x4a7   :  { %v7055_v58 = vpop.eup %5737 }
 0x4a8   :  { %v1626_v18 = vsel %vm185_vm1, %v7055_v58, 0.0 }
 0x4b1   :  { %1884 = vrot.lane.b32.xlu0 %v6194_v15, %s6048_s12 }
 0x4b2   :  { %1516 = vmax.xlane.f32.xlu1 %v1515_v34 }
 0x4ba   :  { %1633 = vadd.xlane.f32.xlu1 %v1632_v31  ;;  %v7053_v31 = vpop.permute.xlu1 %2491 }
 0x4be   :  { %v1544_v1 = vpop.xlane.xlu0 %1543 }
 0x4bf   :  { %v1564_v34 = vsub.f32 %v6965_v61, %v1544_v1 }
 0x4c1   :  { %v1593_v42 = vmul.f32 1.442695, %v1564_v34 }
 0x4c2   :  { %1600 = vadd.xlane.f32.xlu1 %v1599_v50 }
 0x4c3   :  { %5739 = vpow2.f32 %v1593_v42 }
 0x4c9   :  { %v7059_v27 = vpop.eup %5739 }
 0x4ca   :  { %v1638_v1 = vsel %vm185_vm1, %v7059_v27, 0.0 }
 0x4ce   :  { %1642 = vadd.xlane.f32.xlu2 %v1641_v7 }
 0x4d2   :  { %v1604_v62 = vpop.xlane.xlu0 %1603 }
 0x4d3   :  { %5741 = vrcp.f32 %v1604_v62 }
 0x4d6   :  { %1627 = vadd.xlane.f32.xlu2 %v1626_v18 }
 0x4d9   :  { %v5742_v61 = vpop.eup %5741 }
 0x4da   :  { %v1664_v50 = vmul.f32 %v5742_v61, %v6981_v20  ;;  %v1607_v26 = vpop.xlane.xlu1 %1606  ;;  %v1911_v20 = vsel %vm778_vm2, %v6771_v59, 0 }
 0x4db   :  { %5743 = vrcp.f32 %v1607_v26  ;;  %1695 = vrot.lane.b32.xlu1 %v6120_v28, %s6048_s12  ;;  %1639 = vadd.xlane.f32.xlu0 %v1638_v1 }
 0x4dc   :  { %v1680_v13 = vpack.c.bf16 %v1664_v50, %v1664_v50 }
 0x4de   :  { %5446 = vmatmul.msk.bf16.vlgmr.msrb.gmra.mxu1 %vm185_vm1, %v1680_v13 }
 0x4e1   :  { %v5744_v34 = vpop.eup %5743  ;;  %v1619_v42 = vpop.xlane.xlu0 %1618 }
 0x4e2   :  { %v1665_v7 = vmul.f32 %v5744_v34, %v6988_v48  ;;  %v1610_v62 = vpop.xlane.xlu1 %1609 }
 0x4e3   :  { %5745 = vrcp.f32 %v1610_v62 }
 0x4e4   :  { %v1681_v18 = vpack.c.bf16 %v1665_v7, %v1665_v7  ;;  %5747 = vrcp.f32 %v1619_v42  ;;  %v1995_v42 = vsel %vm778_vm2, %v6781_v4, 0  ;;  %v7093_v4 = vmul.f32 0.17677669, %v6893_v38 }
 0x4e6   :  { %5447 = vmatmul.msk.bf16.vlgmr.msra.gmra.mxu2 %vm185_vm1, %v1681_v18 }
 0x4e7   :  { %1920 = vmatpush.bf16.msra.mxu2 %v1911_v20 }
 0x4e9   :  { %v5746_v61 = vpop.eup %5745  ;;  %v1616_v26 = vpop.xlane.xlu0 %1615 }
 0x4ea   :  { %v1666_v50 = vmul.f32 %v5746_v61, %v6992_v49  ;;  %v5748_v13 = vpop.eup %5747  ;;  %5749 = vrcp.f32 %v1616_v26  ;;  %v2016_v26 = vsel %vm778_vm2, %v6798_v54, 0  ;;  %v2200_v54 = vsel %vm185_vm1, %v6816_v10, 0 }
 0x4eb   :  { %v1669_v59 = vmul.f32 %v5748_v13, %v6994_v6 }
 0x4ec   :  { %v1682_v1 = vpack.c.bf16 %v1666_v50, %v1666_v50 }
 0x4ed   :  { %v1685_v49 = vpack.c.bf16 %v1669_v59, %v1669_v59  ;;  %v7102_v59 = vmul.f32 0.17677669, %v6911_v52 }
 0x4ee   :  { %5448 = vmatmul.msk.bf16.vlgmr.msrb.gmra.mxu3 %vm185_vm1, %v1682_v1  ;;  %1968 = vrot.lane.b32.xlu2 %v6360_v23, %s6048_s12 }
 0x4ef   :  { %1941 = vmatpush.bf16.msrb.mxu3 %v1932_v24  ;;  %1779 = vrot.lane.b32.xlu0 %v6153_v51, %s6048_s12  ;;  %v1539_v38 = vsel %vm185_vm1, %v7102_v59, -inf }
 0x4f0   :  { %v5750_v34 = vpop.eup %5749 }
 0x4f1   :  { %v1622_v48 = vpop.xlane.xlu0 %1621  ;;  %v1668_v7 = vmul.f32 %v5750_v34, %v7001_v9 }
 0x4f2   :  { %5751 = vrcp.f32 %v1622_v48 }
 0x4f3   :  { %v1684_v61 = vpack.c.bf16 %v1668_v7, %v1668_v7 }
 0x4f6   :  { %5451 = vmatmul.msk.bf16.vlgmr.msrb.gmra.mxu2 %vm185_vm1, %v1685_v49 }
 0x4f7   :  { %2004 = vmatpush.bf16.msrb.mxu2 %v1995_v42 }
 0x4f8   :  { %v5752_v24 = vpop.eup %5751 }
 0x4f9   :  { %v1670_v6 = vmul.f32 %v5752_v24, %v7006_v12  ;;  %v1527_v12 = vsel %vm185_vm1, %v7093_v4, -inf }
 0x4fa   :  { %v1801_v62 = vpop.permute.xlu1 %1800 }
 0x4fb   :  { %v1686_v18 = vpack.c.bf16 %v1670_v6, %v1670_v6  ;;  %v1806_v20 = vsel %vm778_vm2, %v1801_v62, 0 }
 0x4fc   :  { %1815 = vmatpush.bf16.msra.mxu1 %v1806_v20 }
 0x4fe   :  { %5452 = vmatmul.msk.bf16.vlgmr.msra.gmra.mxu3 %vm185_vm1, %v1686_v18  ;;  %v2223_v18 = vsel %vm185_vm1, %v6887_v55, 0 }
 0x4ff   :  { %2025 = vmatpush.bf16.msra.mxu3 %v2016_v26  ;;  %5450 = vmatmul.msk.bf16.vlgmr.msra.gmra.mxu1 %vm185_vm1, %v1684_v61 }
 0x500   :  { %v1631_v9 = vpop.xlane.xlu2 %1630 }
 0x501   :  { %5753 = vrcp.f32 %v1631_v9 }
 0x505   :  { %1528 = vmax.xlane.f32.xlu1 %v1527_v12 }
 0x507   :  { %v5754_v50 = vpop.eup %5753 }
 0x508   :  { %v1673_v1 = vmul.f32 %v5754_v50, %v7013_v11  ;;  %v7120_v20 = vpop.permute.xlu2 %2537 }
 0x50a   :  { %v1689_v13 = vpack.c.bf16 %v1673_v1, %v1673_v1  ;;  %v2269_v1 = vsel %vm185_vm1, %v6929_v17, 0 }
 0x50c   :  { %5455 = vmatmul.msk.bf16.vlgmr.msra.gmra.mxu2 %vm185_vm1, %v1689_v13 }
 0x50d   :  { %2209 = vmatpush.bf16.xpose.msra.mxu2 %v2200_v54 }
 0x510   :  { %v1646_v48 = vpop.xlane.xlu0 %1645 }
 0x519   :  { %1540 = vmax.xlane.f32.xlu0 %v1539_v38 }
 0x523   :  { %v1885_v49 = vpop.permute.xlu0 %1884 }
 0x524   :  { %v1890_v34 = vsel %vm778_vm2, %v1885_v49, 0  ;;  %v2246_v49 = vsel %vm185_vm1, %v6883_v45, 0  ;;  %v1118_v45 = vld [vmem:[%s8964_s2] sm:$0xf] }
 0x525   :  { %v1517_v42 = vpop.xlane.xlu1 %1516  ;;  %1899 = vmatpush.bf16.msrb.mxu1 %v1890_v34 }
 0x526   :  { %v1555_v11 = vsub.f32 %v7026_v36, %v1517_v42 }
 0x528   :  { %v1575_v24 = vmul.f32 1.442695, %v1555_v11 }
 0x52a   :  { %5755 = vpow2.f32 %v1575_v24 }
 0x52d   :  { %v1634_v10 = vpop.xlane.xlu1 %1633  ;;  %2789 = vrot.lane.b32.xlu0 %v6128_v35, %s6051_s15 }
 0x52e   :  { %5757 = vrcp.f32 %v1634_v10 }
 0x52f   :  { %5759 = vrcp.f32 %v1646_v48 }
 0x530   :  { %v7110_v52 = vpop.eup %5755 }
 0x531   :  { %v1611_v7 = vsel %vm185_vm1, %v7110_v52, 0.0 }
 0x532   :  { %1612 = vadd.xlane.f32.xlu2 %v1611_v7  ;;  %v2141_v7 = vsel %vm778_vm2, %v1118_v45, 0 }
 0x534   :  { %v5758_v6 = vpop.eup %5757 }
 0x535   :  { %v1674_v62 = vmul.f32 %v5758_v6, %v7034_v53  ;;  %2978 = vrot.lane.b32.xlu0 %v6210_v25, %s6051_s15  ;;  %v1601_v61 = vpop.xlane.xlu1 %1600  ;;  %v5760_v26 = vpop.eup %5759 }
 0x536   :  { %5761 = vrcp.f32 %v1601_v61  ;;  %v1678_v9 = vmul.f32 %v5760_v26, %v7018_v44 }
 0x537   :  { %v1690_v36 = vpack.c.bf16 %v1674_v62, %v1674_v62 }
 0x538   :  { %v1694_v55 = vpack.c.bf16 %v1678_v9, %v1678_v9 }
 0x539   :  { %5456 = vmatmul.msk.bf16.vlgmr.msrb.gmra.mxu3 %vm185_vm1, %v1690_v36  ;;  %v2292_v36 = vsel %vm185_vm1, %v6889_v2, 0  ;;  %v2361_v2 = vsel %vm185_vm1, %v6959_v3, 0 }
 0x53a   :  { %2232 = vmatpush.bf16.xpose.msrb.mxu3 %v2223_v18 }
 0x53c   :  { %v5762_v12 = vpop.eup %5761 }
 0x53d   :  { %2957 = vrot.lane.b32.xlu0 %v6194_v15, %s6051_s15  ;;  %v1663_v38 = vmul.f32 %v5762_v12, %v7039_v57 }
 0x53f   :  { %v1679_v17 = vpack.c.bf16 %v1663_v38, %v1663_v38 }
 0x541   :  { %v1643_v53 = vpop.xlane.xlu2 %1642 }
 0x542   :  { %5763 = vrcp.f32 %v1643_v53 }
 0x545   :  { %3041 = vrot.lane.b32.xlu0 %v6360_v23, %s6051_s15 }
 0x548   :  { %v5764_v50 = vpop.eup %5763 }
 0x549   :  { %5460 = vmatmul.msk.bf16.vlgmr.msra.gmra.mxu3 %vm185_vm1, %v1694_v55  ;;  %v1677_v13 = vmul.f32 %v5764_v50, %v7049_v19  ;;  %v1628_v54 = vpop.xlane.xlu2 %1627  ;;  %v2407_v55 = vsel %vm185_vm1, %v6978_v22, 0 }
 0x54a   :  { %2278 = vmatpush.bf16.xpose.msra.mxu3 %v2269_v1  ;;  %5765 = vrcp.f32 %v1628_v54 }
 0x54b   :  { %v1693_v44 = vpack.c.bf16 %v1677_v13, %v1677_v13 }
 0x54d   :  { %v1696_v48 = vpop.permute.xlu1 %1695  ;;  %3230 = vrot.lane.b32.xlu0 %v6128_v35, %s6052_s16  ;;  %5459 = vmatmul.msk.bf16.vlgmr.msrb.gmra.mxu2 %vm185_vm1, %v1693_v44 }
 0x54e   :  { %v1701_v34 = vsel %vm778_vm2, %v1696_v48, 0  ;;  %2255 = vmatpush.bf16.xpose.msrb.mxu2 %v2246_v49  ;;  %v1640_v10 = vpop.xlane.xlu0 %1639  ;;  %v9058_v48 = vld [vmem:[#allocation37_spill] sm:$0xff] }
 0x54f   :  { %1710 = vmatpush.bf16.msra.mxu0 %v1701_v34  ;;  %5767 = vrcp.f32 %v1640_v10  ;;  %v9059_v34 = vld [vmem:[#allocation40_spill] sm:$0xff]  ;;  %v2499_v10 = vsel %vm185_vm1, %v7041_v8, 0 }
 0x550   :  { %v5766_v19 = vpop.eup %5765 }
 0x551   :  { %v1672_v42 = vmul.f32 %v5766_v19, %v7055_v58  ;;  %v1969_v57 = vpop.permute.xlu2 %1968  ;;  %v2315_v58 = vsel %vm185_vm1, %v6945_v40, 0 }
 0x552   :  { %5445 = vmatmul.msk.bf16.vlgmr.msra.gmra.mxu0 %vm185_vm1, %v1679_v17  ;;  %v1974_v11 = vsel %vm778_vm2, %v1969_v57, 0  ;;  %v2430_v17 = vsel %vm185_vm1, %v9059_v34, 0  ;;  %v9062_v57 = vld [vmem:[#allocation27_spill] sm:$0xff]  ;;  %v9082_v34 = vld [vmem:[#allocation29_spill] sm:$0xff] }
 0x553   :  { %v1688_v24 = vpack.c.bf16 %v1672_v42, %v1672_v42  ;;  %1983 = vmatpush.bf16.msra.mxu1 %v1974_v11  ;;  %v9060_v42 = vld [vmem:[#allocation33_spill] sm:$0xff] }
 0x555   :  { %3207 = vrot.lane.b32.xlu0 %v6120_v28, %s6052_s16  ;;  %5454 = vmatmul.msk.bf16.vlgmr.msrb.gmra.mxu1 %vm185_vm1, %v1688_v24  ;;  %v5768_v62 = vpop.eup %5767 }
 0x556   :  { %v1676_v40 = vmul.f32 %v5768_v62, %v7059_v27 }
 0x557   :  { %2150 = vmatpush.bf16.msrb.mxu1 %v2141_v7 }
 0x558   :  { %v1692_v26 = vpack.c.bf16 %v1676_v40, %v1676_v40  ;;  %v9067_v40 = vld [vmem:[#allocation14_spill] sm:$0xff] }
 0x559   :  { %5478 = vmatmul.msk.bf16.vlgmr.msrb.gmra.mxu3 %vm185_vm1, %v6917_v5 }
 0x55a   :  { %2324 = vmatpush.bf16.xpose.msrb.mxu3 %v2315_v58  ;;  %v9065_v58 = vld [vmem:[#allocation32_spill] sm:$0xff] }
 0x55b   :  { %v7152_v6 = vpop.f32.mrf.mxu1  ;;  %v2476_v62 = vsel %vm185_vm1, %v9065_v58, 0 }
 0x55d   :  { %3228 = vrot.lane.b32.xlu0 %v6128_v35, %s6053_s19  ;;  %5477 = vmatmul.msk.bf16.vlgmr.msra.gmra.mxu2 %vm185_vm1, %v6867_v14  ;;  %v2338_v14 = vsel %vm185_vm1, %v6919_v0, 0 }
 0x55e   :  { %2301 = vmatpush.bf16.xpose.msra.mxu2 %v2292_v36  ;;  %v9066_v36 = vld [vmem:[#allocation35_spill] sm:$0xff] }
 0x561   :  { %v1780_v18 = vpop.permute.xlu0 %1779 }
 0x562   :  { %v1785_v5 = vsel %vm778_vm2, %v1780_v18, 0 }
 0x563   :  { %v1735_v61 = vpop.f32.mrf.mxu1  ;;  %1794 = vmatpush.bf16.msrb.mxu0 %v1785_v5 }
 0x564   :  { %v9068_v61 = vld [vmem:[#allocation21_spill] sm:$0xff] }
 0x565   :  { %3205 = vrot.lane.b32.xlu0 %v6120_v28, %s6053_s19  ;;  %5458 = vmatmul.msk.bf16.vlgmr.msra.gmra.mxu1 %vm185_vm1, %v1692_v26  ;;  %v9069_v26 = vld [vmem:[#allocation19_spill] sm:$0xff] }
 0x569   :  { %v7167_v53 = vpop.f32.mrf.mxu2  ;;  %5480 = vmatmul.msk.bf16.vlgmr.msra.gmra.mxu3 %vm185_vm1, %v6939_v32  ;;  %v9056_v32 = vpack.c.bf16 %v6765_v29, %v6758_v33  ;;  %v2384_v33 = vsel %vm185_vm1, %v6949_v60, 0  ;;  %v2453_v60 = vsel %vm185_vm1, %v6947_v30, 0  ;;  %v9061_v30 = vld [vmem:[#allocation30_spill] sm:$0xff] }
 0x56a   :  { %2370 = vmatpush.bf16.xpose.msra.mxu3 %v2361_v2  ;;  %v9063_v45 = vpack.c.bf16 %v9061_v30, %v9062_v57  ;;  %v9070_v2 = vpack.c.bf16 %v9068_v61, %v9069_v26  ;;  %v9090_v61 = vld [vmem:[#allocation22_spill] sm:$0xff]  ;;  %v9091_v26 = vld [vmem:[#allocation28_spill] sm:$0xff] }
 0x56d   :  { %3253 = vrot.lane.b32.xlu0 %v6137_v41, %s6052_s16  ;;  %5479 = vmatmul.msk.bf16.vlgmr.msrb.gmra.mxu2 %vm185_vm1, %v6899_v37 }
 0x56e   :  { %2347 = vmatpush.bf16.xpose.msrb.mxu2 %v2338_v14  ;;  %v9071_v14 = vld [vmem:[#allocation18_spill] sm:$0xff] }
 0x571   :  { %v1756_v27 = vpop.f32.mrf.mxu2  ;;  %v7177_v9 = vpop.f32.mrf.mxu3 }
 0x572   :  { %v2032_v3 = vpack.c.bf16 %v7177_v9, %v7167_v53  ;;  %v2545_v27 = vsel %vm185_vm1, %v7083_v21, 0  ;;  %v9076_v21 = vld [vmem:[#allocation20_spill] sm:$0xff] }
 0x575   :  { %3276 = vrot.lane.b32.xlu0 %v6145_v46, %s6052_s16  ;;  %5469 = vmatmul.msk.bf16.vlgmr.msrb.gmra.mxu1 %vm185_vm1, %v9056_v32  ;;  %v9072_v32 = vld [vmem:[#allocation36_spill] sm:$0xff] }
 0x578   :  { %v1529_v0 = vpop.xlane.xlu1 %1528 }
 0x579   :  { %v1559_v37 = vsub.f32 %v7093_v4, %v1529_v0  ;;  %v1777_v12 = vpop.f32.mrf.mxu3  ;;  %v7190_v50 = vpop.f32.mrf.mxu2  ;;  %5482 = vmatmul.msk.bf16.vlgmr.msrb.gmra.mxu3 %vm185_vm1, %v6953_v43 }
 0x57a   :  { %2416 = vmatpush.bf16.xpose.msrb.mxu3 %v2407_v55 }
 0x57b   :  { %v1583_v1 = vmul.f32 1.442695, %v1559_v37  ;;  %v9073_v37 = vld [vmem:[#allocation39_spill] sm:$0xff] }
 0x57c   :  { %v7194_v13 = vpop.f32.mrf.mxu1  ;;  %v2522_v12 = vsel %vm185_vm1, %v9073_v37, 0 }
 0x57d   :  { %5769 = vpow2.f32 %v1583_v1  ;;  %3274 = vrot.lane.b32.xlu0 %v6145_v46, %s6053_s19  ;;  %5481 = vmatmul.msk.bf16.vlgmr.msra.gmra.mxu2 %vm185_vm1, %v6901_v47  ;;  %v9057_v47 = vpack.c.bf16 %v6783_v16, %v6747_v39  ;;  %v9074_v1 = vld [vmem:[#allocation31_spill] sm:$0xff] }
 0x57e   :  { %2393 = vmatpush.bf16.xpose.msra.mxu2 %v2384_v33  ;;  %v9075_v33 = vld [vmem:[#allocation12_spill] sm:$0xff] }
 0x581   :  { %v1840_v29 = vpop.f32.mrf.mxu2  ;;  %v7202_v22 = vpop.f32.mrf.mxu3 }
 0x582   :  { %v2034_v43 = vpack.c.bf16 %v7202_v22, %v7190_v50 }
 0x583   :  { %v7206_v4 = vpop.eup %5769 }
 0x584   :  { %v1819_v54 = vpop.f32.mrf.mxu1  ;;  %v1623_v38 = vsel %vm185_vm1, %v7206_v4, 0.0 }
 0x585   :  { %1624 = vadd.xlane.f32.xlu1 %v1623_v38  ;;  %3297 = vrot.lane.b32.xlu0 %v6153_v51, %s6053_s19  ;;  %v9077_v54 = vld [vmem:[#allocation26_spill] sm:$0xff] }
 0x586   :  { %5470 = vmatmul.msk.bf16.gmra.mxu1 %vm185_vm1, %v9057_v47  ;;  %v9078_v38 = vpack.c.bf16 %v9076_v21, %v9077_v54 }
 0x589   :  { %v1861_v44 = vpop.f32.mrf.mxu3  ;;  %5484 = vmatmul.msk.bf16.vlgmr.msra.gmra.mxu3 %vm185_vm1, %v9058_v48  ;;  %v9081_v48 = vld [vmem:[#allocation17_spill] sm:$0xff] }
 0x58a   :  { %2462 = vmatpush.bf16.xpose.msra.mxu3 %v2453_v60  ;;  %v9080_v44 = vld [vmem:[#allocation34_spill] sm:$0xff] }
 0x58c   :  { %v1541_v49 = vpop.xlane.xlu0 %1540 }
 0x58d   :  { %v1563_v19 = vsub.f32 %v7102_v59, %v1541_v49  ;;  %5483 = vmatmul.msk.bf16.vlgmr.msrb.gmra.mxu2 %vm185_vm1, %v9060_v42  ;;  %v9064_v59 = vld [vmem:[#allocation38_spill] sm:$0xff] }
 0x58e   :  { %2439 = vmatpush.bf16.xpose.msrb.mxu2 %v2430_v17 }
 0x58f   :  { %v1591_v39 = vmul.f32 1.442695, %v1563_v19  ;;  %v7225_v16 = vpop.f32.mrf.mxu2  ;;  %v9085_v19 = vld [vmem:[#allocation16_spill] sm:$0xff] }
 0x591   :  { %5771 = vpow2.f32 %v1591_v39  ;;  %v9086_v39 = vld [vmem:[#allocation15_spill] sm:$0xff] }
 0x596   :  { %5471 = vmatmul.msk.bf16.gmra.mxu1 %vm185_vm1, %v9063_v45 }
 0x597   :  { %v7231_v11 = vpop.eup %5771  ;;  %v1924_v24 = vpop.f32.mrf.mxu2 }
 0x598   :  { %v1635_v7 = vsel %vm185_vm1, %v7231_v11, 0.0 }
 0x599   :  { %5486 = vmatmul.msk.bf16.vlgmr.msrb.gmra.mxu3 %vm185_vm1, %v9064_v59  ;;  %1636 = vadd.xlane.f32.xlu2 %v1635_v7  ;;  %v9088_v59 = vld [vmem:[#allocation25_spill] sm:$0xff] }
 0x59a   :  { %2508 = vmatpush.bf16.xpose.msrb.mxu3 %v2499_v10  ;;  %v9087_v10 = vld [vmem:[#allocation23_spill] sm:$0xff] }
 0x59b   :  { %v9089_v7 = vpack.c.bf16 %v9087_v10, %v9088_v59 }
 0x59d   :  { %5485 = vmatmul.msk.bf16.vlgmr.msra.gmra.mxu2 %vm185_vm1, %v9066_v36 }
 0x59e   :  { %1863 = vrot.lane.b32.xlu1 %v9067_v40, %s6048_s12  ;;  %2485 = vmatpush.bf16.xpose.msra.mxu2 %v2476_v62 }
 0x59f   :  { %v2790_v18 = vpop.permute.xlu0 %2789 }
 0x5a0   :  { %v2795_v8 = vsel %vm778_vm2, %v2790_v18, 0 }
 0x5a1   :  { %2804 = vmatpush.bf16.msra.mxu1 %v2795_v8 }
 0x5a5   :  { %v1613_v5 = vpop.xlane.xlu2 %1612 }
 0x5a6   :  { %5773 = vrcp.f32 %v1613_v5  ;;  %5472 = vmatmul.msk.bf16.gmra.mxu1 %vm185_vm1, %v9070_v2  ;;  %1947 = vrot.lane.b32.xlu1 %v9071_v14, %s6048_s12  ;;  %v9092_v2 = vpack.c.bf16 %v9090_v61, %v9091_v26 }
 0x5a9   :  { %5488 = vmatmul.msk.bf16.vlgmr.msra.gmra.mxu3 %vm185_vm1, %v9072_v32 }
 0x5aa   :  { %2554 = vmatpush.bf16.xpose.msra.mxu3 %v2545_v27 }
 0x5ac   :  { %v5774_v0 = vpop.eup %5773 }
 0x5ad   :  { %v1667_v55 = vmul.f32 %v5774_v0, %v7110_v52  ;;  %5487 = vmatmul.msk.bf16.vlgmr.msrb.gmra.mxu2 %vm185_vm1, %v9074_v1  ;;  %v9079_v52 = vld [vmem:[#allocation13_spill] sm:$0xff] }
 0x5ae   :  { %2894 = vrot.lane.b32.xlu1 %v9075_v33, %s6051_s15  ;;  %2531 = vmatpush.bf16.xpose.msrb.mxu2 %v2522_v12 }
 0x5af   :  { %v1683_v29 = vpack.c.bf16 %v1667_v55, %v1667_v55 }
 0x5b1   :  { %5449 = vmatmul.msk.bf16.vlgmr.msrb.gmra.mxu0 %vm185_vm1, %v1683_v29  ;;  %2810 = vrot.lane.b32.xlu2 %v6137_v41, %s6051_s15 }
 0x5b6   :  { %5473 = vmatmul.msk.bf16.gmra.mxu1 %vm185_vm1, %v9078_v38  ;;  %2831 = vrot.lane.b32.xlu1 %v6145_v46, %s6051_s15 }
 0x5b9   :  { %5490 = vmatmul.msk.bf16.vlgmr.msrb.gmra.mxu3 %vm185_vm1, %v7053_v31  ;;  %2915 = vrot.lane.b32.xlu2 %v9079_v52, %s6051_s15  ;;  %v9083_v31 = vld [vmem:[#allocation24_spill] sm:$0xff] }
 0x5ba   :  { %v9084_v17 = vpack.c.bf16 %v9082_v34, %v9083_v31 }
 0x5bc   :  { %v7276_v47 = vpop.f32.mrf.mxu3 }
 0x5bd   :  { %5489 = vmatmul.msk.bf16.vlgmr.msra.gmra.mxu2 %vm185_vm1, %v9080_v44 }
 0x5be   :  { %2873 = vrot.lane.b32.xlu1 %v6161_v56, %s6051_s15 }
 0x5c1   :  { %2999 = vrot.lane.b32.xlu2 %v9081_v48, %s6051_s15 }
 0x5c4   :  { %v1945_v49 = vpop.f32.mrf.mxu3 }
 0x5c6   :  { %5474 = vmatmul.msk.bf16.gmra.mxu1 %vm185_vm1, %v9084_v17  ;;  %3062 = vrot.lane.b32.xlu1 %v9085_v19, %s6051_s15 }
 0x5c9   :  { %5492 = vmatmul.msk.bf16.vlgmr.msra.gmra.mxu3 %vm185_vm1, %v7120_v20  ;;  %3299 = vrot.lane.b32.xlu2 %v6153_v51, %s6052_s16 }
 0x5cc   :  { %v7296_v42 = vpop.f32.mrf.mxu3 }
 0x5cd   :  { %5491 = vmatmul.msk.bf16.vlgmr.msrb.gmra.mxu2 %vm185_vm1, %v7046_v63 }
 0x5ce   :  { %3083 = vrot.lane.b32.xlu1 %v9086_v39, %s6051_s15 }
 0x5cf   :  { %v7302_v30 = vpop.f32.mrf.mxu0 }
 0x5d0   :  { %v7304_v57 = vpop.f32.mrf.mxu2 }
 0x5d1   :  { %3345 = vrot.lane.b32.xlu2 %v9075_v33, %s6052_s16 }
 0x5d2   :  { %v7310_v20 = vpop.f32.mrf.mxu1 }
 0x5d4   :  { %v2029_v24 = vpop.f32.mrf.mxu3 }
 0x5d6   :  { %5475 = vmatmul.msk.bf16.gmra.mxu1 %vm185_vm1, %v9089_v7  ;;  %3251 = vrot.lane.b32.xlu1 %v6137_v41, %s6053_s19 }
 0x5d7   :  { %v1714_v63 = vpop.f32.mrf.mxu0 }
 0x5d8   :  { %v2008_v58 = vpop.f32.mrf.mxu2 }
 0x5da   :  { %v1903_v62 = vpop.f32.mrf.mxu1 }
 0x5dc   :  { %v2234_v36 = vpop.f32.mrf.mxu3 }
 0x5dd   :  { %v7334_v29 = vmul.f32 0.17677669, %v2234_v36 }
 0x5de   :  { %3322 = vrot.lane.b32.xlu1 %v6161_v56, %s6052_s16 }
 0x5df   :  { %v2579_v54 = vsel %vm185_vm1, %v7334_v29, -inf }
 0x5e0   :  { %v2211_v18 = vpop.f32.mrf.mxu2 }
 0x5e2   :  { %v7320_v8 = vpop.f32.mrf.mxu1 }
 0x5e4   :  { %v2236_v5 = vpop.f32.mrf.mxu3 }
 0x5e6   :  { %5476 = vmatmul.msk.bf16.gmra.mxu1 %vm185_vm1, %v9092_v2  ;;  %3320 = vrot.lane.b32.xlu1 %v6161_v56, %s6053_s19 }
 0x5e8   :  { %v2213_v27 = vpop.f32.mrf.mxu2 }
 0x5e9   :  { %v7354_v27 = vmul.f32 0.17677669, %v2211_v18 }
 0x5ea   :  { %v1987_v32 = vpop.f32.mrf.mxu1 }
 0x5ec   :  { %v2280_v0 = vpop.f32.mrf.mxu3 }
 0x5ed   :  { %v7328_v55 = vmul.f32 0.17677669, %v2280_v0 }
 0x5ee   :  { %3368 = vrot.lane.b32.xlu1 %v9079_v52, %s6052_s16 }
 0x5ef   :  { %v2585_v37 = vsel %vm185_vm1, %v7328_v55, -inf }
 0x5f0   :  { %2586 = vmax.xlane.f32.xlu0 %v2585_v37  ;;  %v2257_v12 = vpop.f32.mrf.mxu2 }
 0x5f1   :  { %v7338_v44 = vmul.f32 0.17677669, %v2257_v12 }
 0x5f3   :  { %v2582_v34 = vsel %vm185_vm1, %v7338_v44, -inf }
 0x5f4   :  { %v2282_v1 = vpop.f32.mrf.mxu3 }
 0x5f5   :  { %v2576_v1 = vsel %vm185_vm1, %v7354_v27, -inf }
 0x5f8   :  { %v2259_v21 = vpop.f32.mrf.mxu2  ;;  %v1625_v31 = vpop.xlane.xlu1 %1624 }
 0x5f9   :  { %5775 = vrcp.f32 %v1625_v31 }
 0x5fa   :  { %2580 = vmax.xlane.f32.xlu2 %v2579_v54 }
 0x5fc   :  { %v2326_v38 = vpop.f32.mrf.mxu3 }
 0x5ff   :  { %v5776_v7 = vpop.eup %5775 }
 0x600   :  { %v2303_v49 = vpop.f32.mrf.mxu2  ;;  %v1671_v36 = vmul.f32 %v5776_v7, %v7206_v4  ;;  %v2039_v4 = vld [vmem:[%s8964_s2 + $0x4] sm:$0xf] }
 0x601   :  { %v7342_v24 = vmul.f32 0.17677669, %v2303_v49  ;;  %v2065_v18 = vsel %vm778_vm2, %v2039_v4, 0 }
 0x602   :  { %2583 = vmax.xlane.f32.xlu2 %v2582_v34  ;;  %v1687_v32 = vpack.c.bf16 %v1671_v36, %v1671_v36  ;;  %v7365_v34 = vmul.f32 0.17677669, %v2326_v38 }
 0x603   :  { %v2588_v59 = vsel %vm185_vm1, %v7342_v24, -inf }
 0x604   :  { %v2328_v17 = vpop.f32.mrf.mxu3  ;;  %v2591_v7 = vsel %vm185_vm1, %v7365_v34, -inf }
 0x608   :  { %v2305_v10 = vpop.f32.mrf.mxu2 }
 0x609   :  { %v7367_v10 = vpop.permute.xlu0 %2978 }
 0x60a   :  { %2589 = vmax.xlane.f32.xlu2 %v2588_v59 }
 0x60c   :  { %v2372_v63 = vpop.f32.mrf.mxu3  ;;  %v1637_v62 = vpop.xlane.xlu2 %1636 }
 0x60d   :  { %v7346_v58 = vmul.f32 0.17677669, %v2372_v63  ;;  %5777 = vrcp.f32 %v1637_v62 }
 0x60f   :  { %v2597_v5 = vsel %vm185_vm1, %v7346_v58, -inf }
 0x610   :  { %v1864_v61 = vpop.permute.xlu1 %1863  ;;  %2598 = vmax.xlane.f32.xlu0 %v2597_v5  ;;  %v7352_v2 = vpop.f32.mrf.mxu2 }
 0x611   :  { %v1869_v26 = vsel %vm778_vm2, %v1864_v61, 0 }
 0x612   :  { %1878 = vmatpush.bf16.msra.mxu0 %v1869_v26  ;;  %v7376_v26 = vpop.permute.xlu0 %2957 }
 0x613   :  { %v5778_v31 = vpop.eup %5777 }
 0x614   :  { %v2374_v0 = vpop.f32.mrf.mxu3  ;;  %v2811_v37 = vpop.permute.xlu2 %2810  ;;  %v1675_v59 = vmul.f32 %v5778_v31, %v7231_v11 }
 0x615   :  { %5453 = vmatmul.msk.bf16.vlgmr.msra.gmra.mxu0 %vm185_vm1, %v1687_v32  ;;  %v2816_v12 = vsel %vm778_vm2, %v2811_v37, 0 }
 0x616   :  { %2825 = vmatpush.bf16.msra.mxu2 %v2816_v12  ;;  %v1691_v5 = vpack.c.bf16 %v1675_v59, %v1675_v59  ;;  %v2031_v59 = vpack.c.bf16 %v7152_v6, %v7302_v30 }
 0x618   :  { %v1948_v21 = vpop.permute.xlu1 %1947  ;;  %2577 = vmax.xlane.f32.xlu1 %v2576_v1  ;;  %v2351_v49 = vpop.f32.mrf.mxu2 }
 0x619   :  { %v1953_v54 = vsel %vm778_vm2, %v1948_v21, 0 }
 0x61a   :  { %1962 = vmatpush.bf16.msrb.mxu0 %v1953_v54  ;;  %v7387_v31 = vpop.permute.xlu0 %3041 }
 0x61c   :  { %v2418_v17 = vpop.f32.mrf.mxu3  ;;  %v2916_v61 = vpop.permute.xlu2 %2915 }
 0x61d   :  { %v2921_v37 = vsel %vm778_vm2, %v2916_v61, 0 }
 0x61e   :  { %2074 = vmatpush.bf16.msra.mxu0 %v2065_v18 }
 0x620   :  { %v2895_v63 = vpop.permute.xlu1 %2894  ;;  %2592 = vmax.xlane.f32.xlu1 %v2591_v7  ;;  %v2395_v36 = vpop.f32.mrf.mxu2 }
 0x621   :  { %v2900_v62 = vsel %vm778_vm2, %v2895_v63, 0 }
 0x622   :  { %2909 = vmatpush.bf16.msrb.mxu2 %v2900_v62  ;;  %3366 = vrot.lane.b32.xlu2 %v9079_v52, %s6053_s19 }
 0x624   :  { %v2420_v38 = vpop.f32.mrf.mxu3 }
 0x625   :  { %5457 = vmatmul.msk.bf16.vlgmr.msrb.gmra.mxu0 %vm185_vm1, %v1691_v5  ;;  %v7394_v5 = vpop.permute.xlu0 %3230 }
 0x628   :  { %v2832_v11 = vpop.permute.xlu1 %2831  ;;  %v2397_v0 = vpop.f32.mrf.mxu2 }
 0x629   :  { %v2837_v32 = vsel %vm778_vm2, %v2832_v11, 0  ;;  %v7405_v0 = vmul.f32 0.17677669, %v7352_v2 }
 0x62a   :  { %2846 = vmatpush.bf16.msrb.mxu3 %v2837_v32  ;;  %3343 = vrot.lane.b32.xlu2 %v9075_v33, %s6053_s19 }
 0x62b   :  { %v2594_v9 = vsel %vm185_vm1, %v7405_v0, -inf }
 0x62c   :  { %v2464_v4 = vpop.f32.mrf.mxu3 }
 0x62d   :  { %v7382_v12 = vmul.f32 0.17677669, %v2464_v4  ;;  %v7402_v6 = vpop.permute.xlu0 %3207 }
 0x62e   :  { %2930 = vmatpush.bf16.msra.mxu3 %v2921_v37  ;;  %v1796_v1 = vpop.f32.mrf.mxu0 }
 0x62f   :  { %v2609_v21 = vsel %vm185_vm1, %v7382_v12, -inf  ;;  %v2033_v53 = vpack.c.bf16 %v7194_v13, %v1796_v1 }
 0x630   :  { %v2874_v18 = vpop.permute.xlu1 %2873  ;;  %2610 = vmax.xlane.f32.xlu0 %v2609_v21  ;;  %v2441_v49 = vpop.f32.mrf.mxu2 }
 0x631   :  { %v2879_v54 = vsel %vm778_vm2, %v2874_v18, 0  ;;  %v7411_v18 = vpop.permute.xlu2 %2999 }
 0x632   :  { %2888 = vmatpush.bf16.msrb.mxu1 %v2879_v54 }
 0x634   :  { %v2466_v7 = vpop.f32.mrf.mxu3 }
 0x635   :  { %5461 = vmatmul.msk.bf16.vlgmr.msra.gmra.mxu0 %vm185_vm1, %v2031_v59  ;;  %v7407_v37 = vpop.permute.xlu0 %3228  ;;  %v7421_v59 = vmul.f32 0.17677669, %v2418_v17 }
 0x636   :  { %v1798_v63 = vpop.f32.mrf.mxu0 }
 0x637   :  { %v2603_v13 = vsel %vm185_vm1, %v7421_v59, -inf }
 0x638   :  { %v2443_v62 = vpop.f32.mrf.mxu2  ;;  %v7409_v4 = vpop.permute.xlu1 %3062 }
 0x639   :  { %2768 = vrot.lane.b32.xlu1 %v6120_v28, %s6051_s15  ;;  %v7429_v1 = vpop.permute.xlu2 %3299 }
 0x63c   :  { %v2510_v38 = vpop.f32.mrf.mxu3 }
 0x63d   :  { %v7423_v63 = vpop.permute.xlu0 %3205 }
 0x640   :  { %v7396_v61 = vpop.f32.mrf.mxu2  ;;  %v7425_v62 = vpop.permute.xlu1 %3083 }
 0x644   :  { %v2512_v11 = vpop.f32.mrf.mxu3 }
 0x645   :  { %5462 = vmatmul.msk.bf16.gmra.mxu0 %vm185_vm1, %v2032_v3  ;;  %v7431_v11 = vmul.f32 0.17677669, %v2395_v36  ;;  %v7447_v36 = vpop.permute.xlu2 %3345 }
 0x648   :  { %v2489_v30 = vpop.f32.mrf.mxu2 }
 0x649   :  { %v7433_v30 = vmul.f32 0.17677669, %v2441_v49 }
 0x64b   :  { %v2606_v17 = vsel %vm185_vm1, %v7433_v30, -inf }
 0x64c   :  { %v2556_v32 = vpop.f32.mrf.mxu3 }
 0x64d   :  { %v7449_v49 = vmul.f32 0.17677669, %v2556_v32 }
 0x650   :  { %v2533_v21 = vpop.f32.mrf.mxu2 }
 0x651   :  { %v7413_v54 = vmul.f32 0.17677669, %v2533_v21  ;;  %v2600_v21 = vsel %vm185_vm1, %v7431_v11, -inf }
 0x653   :  { %2595 = vmax.xlane.f32.xlu2 %v2594_v9  ;;  %v2618_v3 = vsel %vm185_vm1, %v7413_v54, -inf  ;;  %v7441_v9 = vpop.permute.xlu1 %3251 }
 0x654   :  { %v2558_v2 = vpop.f32.mrf.mxu3  ;;  %2619 = vmax.xlane.f32.xlu0 %v2618_v3  ;;  %9093 = vst [vmem:[#allocation37_spill] sm:$0xff] %v7441_v9  ;;  %v7451_v3 = vmul.f32 0.17677669, %v2510_v38 }
 0x655   :  { %5463 = vmatmul.msk.bf16.gmra.mxu0 %vm185_vm1, %v2033_v53  ;;  %v7439_v53 = vpop.permute.xlu0 %3253  ;;  %v2621_v2 = vsel %vm185_vm1, %v7449_v49, -inf }
 0x658   :  { %v2535_v7 = vpop.f32.mrf.mxu2 }
 0x659   :  { %v2615_v7 = vsel %vm185_vm1, %v7451_v3, -inf }
 0x65b   :  { %2604 = vmax.xlane.f32.xlu2 %v2603_v13  ;;  %v7459_v50 = vpop.permute.xlu1 %3322 }
 0x663   :  { %2601 = vmax.xlane.f32.xlu1 %v2600_v21  ;;  %2607 = vmax.xlane.f32.xlu2 %v2606_v17  ;;  %v7457_v21 = vpop.permute.xlu0 %3276  ;;  %v7464_v38 = vpop.permute.xlu1 %3320 }
 0x664   :  { %9094 = vst [vmem:[#allocation40_spill] sm:$0xff] %v7464_v38 }
 0x665   :  { %5464 = vmatmul.msk.bf16.gmra.mxu0 %vm185_vm1, %v2034_v43 }
 0x66b   :  { %2622 = vmax.xlane.f32.xlu1 %v2621_v2  ;;  %2616 = vmax.xlane.f32.xlu2 %v2615_v7  ;;  %v7462_v32 = vpop.permute.xlu0 %3274  ;;  %v7472_v60 = vpop.permute.xlu1 %3368 }
 0x66d   :  { %v2581_v13 = vpop.xlane.xlu2 %2580 }
 0x673   :  { %v7470_v7 = vpop.permute.xlu0 %3297 }
 0x675   :  { %v2584_v22 = vpop.xlane.xlu2 %2583 }
 0x676   :  { %v2626_v43 = vsub.f32 %v7338_v44, %v2584_v22  ;;  %v2625_v22 = vsub.f32 %v7334_v29, %v2581_v13 }
 0x678   :  { %v2644_v17 = vmul.f32 1.442695, %v2626_v43  ;;  %v2642_v43 = vmul.f32 1.442695, %v2625_v22 }
 0x67a   :  { %5779 = vpow2.f32 %v2644_v17 }
 0x67b   :  { %v2587_v33 = vpop.xlane.xlu0 %2586 }
 0x67c   :  { %v2627_v35 = vsub.f32 %v7328_v55, %v2587_v33 }
 0x680   :  { %v7466_v45 = vpop.eup %5779 }
 0x681   :  { %v2678_v2 = vsel %vm185_vm1, %v7466_v45, 0.0 }
 0x682   :  { %2679 = vadd.xlane.f32.xlu2 %v2678_v2 }
 0x683   :  { %v2599_v38 = vpop.xlane.xlu0 %2598 }
 0x68b   :  { %v2578_v52 = vpop.xlane.xlu1 %2577 }
 0x68c   :  { %v2624_v44 = vsub.f32 %v7354_v27, %v2578_v52  ;;  %v2631_v52 = vsub.f32 %v7346_v58, %v2599_v38  ;;  %v2646_v27 = vmul.f32 1.442695, %v2627_v35 }
 0x68e   :  { %v2640_v28 = vmul.f32 1.442695, %v2624_v44 }
 0x690   :  { %5781 = vpow2.f32 %v2640_v28 }
 0x691   :  { %5783 = vpow2.f32 %v2642_v43  ;;  %v7505_v43 = vpop.xlane.xlu2 %2589 }
 0x692   :  { %v1880_v17 = vpop.f32.mrf.mxu0 }
 0x693   :  { %v2035_v56 = vpack.c.bf16 %v7310_v20, %v1880_v17  ;;  %v2593_v9 = vpop.xlane.xlu1 %2592  ;;  %v2654_v20 = vmul.f32 1.442695, %v2631_v52 }
 0x694   :  { %v2629_v46 = vsub.f32 %v7365_v34, %v2593_v9  ;;  %v9095_v34 = vpack.c.bf16 %v7276_v47, %v7225_v16 }
 0x695   :  { %5465 = vmatmul.msk.bf16.gmra.mxu0 %vm185_vm1, %v2035_v56 }
 0x696   :  { %v7480_v2 = vpop.eup %5781  ;;  %v2650_v29 = vmul.f32 1.442695, %v2629_v46 }
 0x697   :  { %v2672_v28 = vsel %vm185_vm1, %v7480_v2, 0.0  ;;  %v7485_v44 = vpop.eup %5783 }
 0x698   :  { %5785 = vpow2.f32 %v2650_v29  ;;  %2673 = vadd.xlane.f32.xlu0 %v2672_v28  ;;  %v2675_v56 = vsel %vm185_vm1, %v7485_v44, 0.0 }
 0x699   :  { %5787 = vpow2.f32 %v2646_v27  ;;  %v7509_v16 = vpop.permute.xlu2 %3366  ;;  %v9096_v27 = vpack.c.bf16 %v7296_v42, %v7304_v57 }
 0x69a   :  { %v1882_v13 = vpop.f32.mrf.mxu0  ;;  %5789 = vpow2.f32 %v2654_v20 }
 0x69e   :  { %v7487_v33 = vpop.eup %5785 }
 0x69f   :  { %v2687_v46 = vsel %vm185_vm1, %v7487_v33, 0.0  ;;  %v7493_v58 = vpop.eup %5787 }
 0x6a0   :  { %2676 = vadd.xlane.f32.xlu0 %v2675_v56  ;;  %2688 = vadd.xlane.f32.xlu2 %v2687_v46  ;;  %v7495_v35 = vpop.eup %5789  ;;  %v2681_v9 = vsel %vm185_vm1, %v7493_v58, 0.0 }
 0x6a1   :  { %v2693_v38 = vsel %vm185_vm1, %v7495_v35, 0.0  ;;  %v7512_v47 = vpop.permute.xlu2 %3343 }
 0x6a2   :  { %v1964_v55 = vpop.f32.mrf.mxu0 }
 0x6a3   :  { %v2037_v29 = vpack.c.bf16 %v7320_v8, %v1964_v55  ;;  %v2611_v28 = vpop.xlane.xlu0 %2610 }
 0x6a5   :  { %5466 = vmatmul.msk.bf16.gmra.mxu0 %vm185_vm1, %v9095_v34 }
 0x6a8   :  { %2682 = vadd.xlane.f32.xlu0 %v2681_v9  ;;  %2694 = vadd.xlane.f32.xlu2 %v2693_v38 }
 0x6aa   :  { %v1966_v22 = vpop.f32.mrf.mxu0 }
 0x6ab   :  { %v2769_v17 = vpop.permute.xlu1 %2768 }
 0x6ac   :  { %v2774_v52 = vsel %vm778_vm2, %v2769_v17, 0 }
 0x6ad   :  { %2783 = vmatpush.bf16.msrb.mxu0 %v2774_v52 }
 0x6b5   :  { %5467 = vmatmul.msk.bf16.gmra.mxu0 %vm185_vm1, %v2037_v29 }
 0x6c5   :  { %5468 = vmatmul.msk.bf16.gmra.mxu0 %vm185_vm1, %v9096_v27 }
 0x6c6   :  { %v2596_v20 = vpop.xlane.xlu2 %2595 }
 0x6c7   :  { %v2630_v13 = vsub.f32 %v7405_v0, %v2596_v20  ;;  %v2620_v56 = vpop.xlane.xlu0 %2619 }
 0x6c8   :  { %v2638_v46 = vsub.f32 %v7413_v54, %v2620_v56 }
 0x6c9   :  { %v2652_v34 = vmul.f32 1.442695, %v2630_v13 }
 0x6ca   :  { %v2668_v8 = vmul.f32 1.442695, %v2638_v46 }
 0x6cb   :  { %5791 = vpow2.f32 %v2652_v34 }
 0x6cc   :  { %5793 = vpow2.f32 %v2668_v8 }
 0x6ce   :  { %v2605_v55 = vpop.xlane.xlu2 %2604 }
 0x6cf   :  { %v2633_v9 = vsub.f32 %v7421_v59, %v2605_v55  ;;  %v2635_v59 = vsub.f32 %v7382_v12, %v2611_v28 }
 0x6d1   :  { %v7521_v38 = vpop.eup %5791  ;;  %v2658_v22 = vmul.f32 1.442695, %v2633_v9  ;;  %v2662_v20 = vmul.f32 1.442695, %v2635_v59 }
 0x6d2   :  { %v7523_v17 = vpop.eup %5793  ;;  %v2690_v42 = vsel %vm185_vm1, %v7521_v38, 0.0 }
 0x6d3   :  { %5795 = vpow2.f32 %v2658_v22  ;;  %2691 = vadd.xlane.f32.xlu1 %v2690_v42  ;;  %v2714_v57 = vsel %vm185_vm1, %v7523_v17, 0.0  ;;  %v7552_v22 = vpop.f32.mrf.mxu0 }
 0x6d4   :  { %2715 = vadd.xlane.f32.xlu2 %v2714_v57 }
 0x6d6   :  { %v2608_v0 = vpop.xlane.xlu2 %2607 }
 0x6d7   :  { %v2634_v54 = vsub.f32 %v7433_v30, %v2608_v0  ;;  %v7555_v0 = vpop.f32.mrf.mxu1 }
 0x6d9   :  { %v7530_v52 = vpop.eup %5795  ;;  %v2660_v29 = vmul.f32 1.442695, %v2634_v54 }
 0x6da   :  { %v2699_v27 = vsel %vm185_vm1, %v7530_v52, 0.0 }
 0x6db   :  { %5797 = vpow2.f32 %v2660_v29  ;;  %2700 = vadd.xlane.f32.xlu1 %v2699_v27  ;;  %v2984_v29 = vsel %vm778_vm2, %v7367_v10, 0  ;;  %v7561_v27 = vpop.f32.mrf.mxu0 }
 0x6dc   :  { %5799 = vpow2.f32 %v2662_v20  ;;  %9097 = vst [vmem:[#allocation33_spill] sm:$0xff] %v7561_v27 }
 0x6de   :  { %v2617_v13 = vpop.xlane.xlu2 %2616 }
 0x6df   :  { %v2637_v56 = vsub.f32 %v7451_v3, %v2617_v13  ;;  %v7550_v3 = vpop.xlane.xlu1 %2601  ;;  %v7569_v13 = vpop.f32.mrf.mxu1 }
 0x6e0   :  { %9098 = vst [vmem:[#allocation30_spill] sm:$0xff] %v7569_v13 }
 0x6e1   :  { %v7536_v46 = vpop.eup %5797  ;;  %v2666_v34 = vmul.f32 1.442695, %v2637_v56 }
 0x6e2   :  { %v2702_v30 = vsel %vm185_vm1, %v7536_v46, 0.0  ;;  %v7540_v12 = vpop.eup %5799 }
 0x6e3   :  { %5801 = vpow2.f32 %v2666_v34  ;;  %2703 = vadd.xlane.f32.xlu0 %v2702_v30  ;;  %v2705_v55 = vsel %vm185_vm1, %v7540_v12, 0.0  ;;  %v7571_v34 = vpop.f32.mrf.mxu0 }
 0x6e7   :  { %v2623_v54 = vpop.xlane.xlu1 %2622  ;;  %v7579_v30 = vpop.f32.mrf.mxu1 }
 0x6e8   :  { %v2639_v20 = vsub.f32 %v7449_v49, %v2623_v54 }
 0x6e9   :  { %v7542_v28 = vpop.eup %5801 }
 0x6ea   :  { %v2711_v8 = vsel %vm185_vm1, %v7542_v28, 0.0 }
 0x6eb   :  { %2712 = vadd.xlane.f32.xlu1 %v2711_v8  ;;  %2706 = vadd.xlane.f32.xlu0 %v2705_v55 }
 0x6ec   :  { %3391 = vrot.lane.b32.xlu2 %v9067_v40, %s6052_s16 }
 0x6f5   :  { %v2680_v9 = vpop.xlane.xlu2 %2679 }
 0x6f6   :  { %5803 = vrcp.f32 %v2680_v9 }
 0x6fc   :  { %v5804_v42 = vpop.eup %5803 }
 0x6fd   :  { %v2738_v57 = vmul.f32 %v5804_v42, %v7466_v45  ;;  %v2670_v45 = vmul.f32 1.442695, %v2639_v20  ;;  %v7592_v20 = vpop.f32.mrf.mxu1 }
 0x6fe   :  { %9100 = vst [vmem:[#allocation38_spill] sm:$0xff] %v7592_v20 }
 0x6ff   :  { %v2754_v59 = vpack.c.bf16 %v2738_v57, %v2738_v57  ;;  %3414 = vrot.lane.b32.xlu0 %v6194_v15, %s6052_s16  ;;  %5805 = vpow2.f32 %v2670_v45  ;;  %v7586_v57 = vpop.f32.mrf.mxu0 }
 0x700   :  { %9099 = vst [vmem:[#allocation27_spill] sm:$0xff] %v7586_v57 }
 0x701   :  { %5495 = vmatmul.msk.bf16.vlgmr.msra.gmra.mxu2 %vm185_vm1, %v2754_v59 }
 0x702   :  { %2993 = vmatpush.bf16.msra.mxu2 %v2984_v29 }
 0x704   :  { %3460 = vrot.lane.b32.xlu1 %v9081_v48, %s6052_s16 }
 0x705   :  { %v7577_v10 = vpop.eup %5805 }
 0x706   :  { %v2717_v42 = vsel %vm185_vm1, %v7577_v10, 0.0 }
 0x707   :  { %3437 = vrot.lane.b32.xlu0 %v6210_v25, %s6052_s16 }
 0x70b   :  { %v2674_v56 = vpop.xlane.xlu0 %2673 }
 0x70c   :  { %5807 = vrcp.f32 %v2674_v56  ;;  %3458 = vrot.lane.b32.xlu1 %v9081_v48, %s6053_s19  ;;  %v2963_v56 = vsel %vm778_vm2, %v7376_v26, 0  ;;  %v3005_v26 = vsel %vm778_vm2, %v7411_v18, 0  ;;  %v3047_v18 = vsel %vm778_vm2, %v7387_v31, 0 }
 0x70f   :  { %3412 = vrot.lane.b32.xlu0 %v6194_v15, %s6053_s19 }
 0x712   :  { %v5808_v49 = vpop.eup %5807 }
 0x713   :  { %v2736_v8 = vmul.f32 %v5808_v49, %v7480_v2  ;;  %v2677_v55 = vpop.xlane.xlu0 %2676  ;;  %v2689_v2 = vpop.xlane.xlu2 %2688 }
 0x714   :  { %5809 = vrcp.f32 %v2677_v55  ;;  %3506 = vrot.lane.b32.xlu1 %v6360_v23, %s6052_s16  ;;  %v7596_v49 = vpop.f32.mrf.mxu0 }
 0x715   :  { %v2752_v9 = vpack.c.bf16 %v2736_v8, %v2736_v8  ;;  %2718 = vadd.xlane.f32.xlu2 %v2717_v42 }
 0x717   :  { %5493 = vmatmul.msk.bf16.vlgmr.msrb.gmra.mxu0 %vm185_vm1, %v2752_v9  ;;  %2852 = vrot.lane.b32.xlu0 %v6153_v51, %s6051_s15 }
 0x71a   :  { %v5810_v54 = vpop.eup %5809 }
 0x71b   :  { %v2683_v59 = vpop.xlane.xlu0 %2682  ;;  %v2737_v29 = vmul.f32 %v5810_v54, %v7485_v44  ;;  %v2695_v44 = vpop.xlane.xlu2 %2694 }
 0x71c   :  { %5811 = vrcp.f32 %v2683_v59  ;;  %v7602_v54 = vpop.f32.mrf.mxu1  ;;  %v7609_v59 = vpop.f32.mrf.mxu0 }
 0x71d   :  { %v2753_v45 = vpack.c.bf16 %v2737_v29, %v2737_v29  ;;  %5813 = vrcp.f32 %v2689_v2  ;;  %9101 = vst [vmem:[#allocation32_spill] sm:$0xff] %v7609_v59  ;;  %v3112_v59 = vld [vmem:[%s8964_s2 + $0x8] sm:$0xf] }
 0x71e   :  { %5815 = vrcp.f32 %v2695_v44 }
 0x71f   :  { %3435 = vrot.lane.b32.xlu0 %v6210_v25, %s6053_s19  ;;  %5494 = vmatmul.msk.bf16.vlgmr.msra.gmra.mxu1 %vm185_vm1, %v2753_v45 }
 0x720   :  { %2972 = vmatpush.bf16.msra.mxu1 %v2963_v56 }
 0x722   :  { %v5812_v8 = vpop.eup %5811 }
 0x723   :  { %v2739_v55 = vmul.f32 %v5812_v8, %v7493_v58  ;;  %v5814_v42 = vpop.eup %5813  ;;  %v2632_v58 = vsub.f32 %v7431_v11, %v7550_v3 }
 0x724   :  { %v2741_v2 = vmul.f32 %v5814_v42, %v7487_v33  ;;  %v5816_v45 = vpop.eup %5815  ;;  %v7621_v56 = vpop.f32.mrf.mxu1  ;;  %v2628_v42 = vsub.f32 %v7342_v24, %v7505_v43  ;;  %v3068_v43 = vsel %vm778_vm2, %v7409_v4, 0  ;;  %v7667_v4 = vmul.f32 0.17677669, %v7396_v61 }
 0x725   :  { %v2755_v9 = vpack.c.bf16 %v2739_v55, %v2739_v55  ;;  %9102 = vst [vmem:[#allocation35_spill] sm:$0xff] %v7621_v56  ;;  %v2656_v8 = vmul.f32 1.442695, %v2632_v58  ;;  %v2743_v33 = vmul.f32 %v5816_v45, %v7495_v35  ;;  %v7624_v11 = vpop.f32.mrf.mxu0  ;;  %v3089_v55 = vsel %vm778_vm2, %v7425_v62, 0 }
 0x726   :  { %v2757_v29 = vpack.c.bf16 %v2741_v2, %v2741_v2  ;;  %v2648_v58 = vmul.f32 1.442695, %v2628_v42 }
 0x727   :  { %3483 = vrot.lane.b32.xlu0 %v9071_v14, %s6052_s16  ;;  %5496 = vmatmul.msk.bf16.vlgmr.msrb.gmra.mxu3 %vm185_vm1, %v2755_v9  ;;  %5817 = vpow2.f32 %v2656_v8  ;;  %v2759_v3 = vpack.c.bf16 %v2743_v33, %v2743_v33 }
 0x728   :  { %3014 = vmatpush.bf16.msrb.mxu3 %v3005_v26 }
 0x72c   :  { %v7633_v44 = vpop.f32.mrf.mxu1 }
 0x72d   :  { %3389 = vrot.lane.b32.xlu2 %v9067_v40, %s6053_s19  ;;  %v7631_v31 = vpop.eup %5817  ;;  %v7635_v9 = vpop.f32.mrf.mxu0 }
 0x72e   :  { %9103 = vst [vmem:[#allocation14_spill] sm:$0xff] %v7635_v9  ;;  %v2696_v35 = vsel %vm185_vm1, %v7631_v31, 0.0 }
 0x72f   :  { %3504 = vrot.lane.b32.xlu0 %v6360_v23, %s6053_s19  ;;  %5498 = vmatmul.msk.bf16.vlgmr.msrb.gmra.mxu1 %vm185_vm1, %v2757_v29 }
 0x730   :  { %3056 = vmatpush.bf16.msrb.mxu1 %v3047_v18 }
 0x734   :  { %v7641_v62 = vpop.f32.mrf.mxu1 }
 0x735   :  { %9104 = vst [vmem:[#allocation21_spill] sm:$0xff] %v7641_v62  ;;  %v7645_v26 = vpop.f32.mrf.mxu0 }
 0x737   :  { %3529 = vrot.lane.b32.xlu0 %v9085_v19, %s6052_s16  ;;  %5500 = vmatmul.msk.bf16.vlgmr.msra.gmra.mxu3 %vm185_vm1, %v2759_v3 }
 0x738   :  { %3098 = vmatpush.bf16.msra.mxu3 %v3089_v55 }
 0x73c   :  { %v7649_v45 = vpop.f32.mrf.mxu1 }
 0x73d   :  { %v7652_v33 = vpop.f32.mrf.mxu0 }
 0x73e   :  { %2697 = vadd.xlane.f32.xlu1 %v2696_v35  ;;  %9105 = vst [vmem:[#allocation19_spill] sm:$0xff] %v7652_v33 }
 0x73f   :  { %3552 = vrot.lane.b32.xlu0 %v9086_v39, %s6052_s16 }
 0x746   :  { %v2692_v2 = vpop.xlane.xlu1 %2691 }
 0x747   :  { %5819 = vrcp.f32 %v2692_v2  ;;  %3527 = vrot.lane.b32.xlu0 %v9085_v19, %s6053_s19  ;;  %v7664_v2 = vpop.f32.mrf.mxu1  ;;  %v2716_v61 = vpop.xlane.xlu2 %2715 }
 0x748   :  { %5821 = vpow2.f32 %v2648_v58  ;;  %9106 = vst [vmem:[#allocation18_spill] sm:$0xff] %v7664_v2 }
 0x74d   :  { %v5820_v29 = vpop.eup %5819 }
 0x74e   :  { %v2742_v18 = vmul.f32 %v5820_v29, %v7521_v38  ;;  %v2701_v8 = vpop.xlane.xlu1 %2700  ;;  %v7654_v24 = vpop.eup %5821 }
 0x74f   :  { %5823 = vrcp.f32 %v2701_v8  ;;  %v2684_v35 = vsel %vm185_vm1, %v7654_v24, 0.0  ;;  %v7669_v29 = vpop.f32.mrf.mxu0  ;;  %v2612_v8 = vsel %vm185_vm1, %v7667_v4, -inf }
 0x750   :  { %v2758_v3 = vpack.c.bf16 %v2742_v18, %v2742_v18  ;;  %v3213_v18 = vsel %vm185_vm1, %v7402_v6, 0  ;;  %v7679_v6 = vpop.f32.mrf.mxu1 }
 0x752   :  { %5499 = vmatmul.msk.bf16.vlgmr.msrb.gmra.mxu2 %vm185_vm1, %v2758_v3 }
 0x753   :  { %3077 = vmatpush.bf16.msrb.mxu2 %v3068_v43 }
 0x755   :  { %v5824_v55 = vpop.eup %5823 }
 0x756   :  { %v2745_v42 = vmul.f32 %v5824_v55, %v7530_v52  ;;  %2685 = vadd.xlane.f32.xlu2 %v2684_v35  ;;  %v2704_v38 = vpop.xlane.xlu0 %2703  ;;  %v3236_v35 = vsel %vm185_vm1, %v7394_v5, 0  ;;  %v3282_v5 = vsel %vm185_vm1, %v7457_v21, 0  ;;  %v3305_v21 = vsel %vm185_vm1, %v7429_v1, 0 }
 0x757   :  { %5825 = vrcp.f32 %v2704_v38  ;;  %3823 = vrot.lane.b32.xlu1 %v6137_v41, %s6054_s22 }
 0x758   :  { %v2761_v58 = vpack.c.bf16 %v2745_v42, %v2745_v42  ;;  %v7682_v42 = vpop.f32.mrf.mxu0 }
 0x759   :  { %9107 = vst [vmem:[#allocation36_spill] sm:$0xff] %v7682_v42 }
 0x75a   :  { %5502 = vmatmul.msk.bf16.vlgmr.msra.gmra.mxu1 %vm185_vm1, %v2761_v58 }
 0x75b   :  { %3222 = vmatpush.bf16.xpose.msra.mxu1 %v3213_v18 }
 0x75d   :  { %v5826_v52 = vpop.eup %5825 }
 0x75e   :  { %v2746_v41 = vmul.f32 %v5826_v52, %v7536_v46  ;;  %v2713_v3 = vpop.xlane.xlu1 %2712  ;;  %2613 = vmax.xlane.f32.xlu2 %v2612_v8  ;;  %v2707_v43 = vpop.xlane.xlu0 %2706 }
 0x75f   :  { %5827 = vrcp.f32 %v2713_v3  ;;  %v3259_v3 = vsel %vm185_vm1, %v7439_v53, 0 }
 0x760   :  { %v2762_v55 = vpack.c.bf16 %v2746_v41, %v2746_v41  ;;  %5829 = vrcp.f32 %v2707_v43  ;;  %v7692_v43 = vpop.f32.mrf.mxu1 }
 0x761   :  { %5831 = vrcp.f32 %v2716_v61  ;;  %9108 = vst [vmem:[#allocation39_spill] sm:$0xff] %v7692_v43 }
 0x762   :  { %5503 = vmatmul.msk.bf16.vlgmr.msra.gmra.mxu2 %vm185_vm1, %v2762_v55 }
 0x763   :  { %3245 = vmatpush.bf16.xpose.msra.mxu2 %v3236_v35 }
 0x765   :  { %v5828_v38 = vpop.eup %5827 }
 0x766   :  { %v5830_v46 = vpop.eup %5829  ;;  %v2749_v58 = vmul.f32 %v5828_v38, %v7542_v28 }
 0x767   :  { %v2747_v18 = vmul.f32 %v5830_v46, %v7540_v12  ;;  %v5832_v8 = vpop.eup %5831  ;;  %v7695_v12 = vpop.f32.mrf.mxu0 }
 0x768   :  { %v2765_v52 = vpack.c.bf16 %v2749_v58, %v2749_v58  ;;  %v2750_v28 = vmul.f32 %v5832_v8, %v7523_v17  ;;  %v7700_v35 = vpop.f32.mrf.mxu1  ;;  %v3351_v17 = vsel %vm185_vm1, %v7447_v36, 0  ;;  %v3392_v46 = vpop.permute.xlu2 %3391 }
 0x769   :  { %v2763_v41 = vpack.c.bf16 %v2747_v18, %v2747_v18 }
 0x76a   :  { %5506 = vmatmul.msk.bf16.vlgmr.msrb.gmra.mxu1 %vm185_vm1, %v2765_v52  ;;  %v2766_v61 = vpack.c.bf16 %v2750_v28, %v2750_v28  ;;  %v3374_v52 = vsel %vm185_vm1, %v7472_v60, 0 }
 0x76b   :  { %5504 = vmatmul.msk.bf16.vlgmr.msrb.gmra.mxu3 %vm185_vm1, %v2763_v41  ;;  %3291 = vmatpush.bf16.xpose.msrb.mxu1 %v3282_v5 }
 0x76c   :  { %3268 = vmatpush.bf16.xpose.msrb.mxu3 %v3259_v3 }
 0x76f   :  { %v7704_v53 = vpop.f32.mrf.mxu0 }
 0x770   :  { %9109 = vst [vmem:[#allocation31_spill] sm:$0xff] %v7704_v53  ;;  %v7712_v1 = vpop.f32.mrf.mxu1 }
 0x771   :  { %v3415_v55 = vpop.permute.xlu0 %3414  ;;  %9110 = vst [vmem:[#allocation20_spill] sm:$0xff] %v7712_v1 }
 0x772   :  { %5507 = vmatmul.msk.bf16.vlgmr.msrb.gmra.mxu2 %vm185_vm1, %v2766_v61  ;;  %v3420_v5 = vsel %vm185_vm1, %v3415_v55, 0 }
 0x773   :  { %3314 = vmatpush.bf16.xpose.msrb.mxu2 %v3305_v21 }
 0x776   :  { %3481 = vrot.lane.b32.xlu2 %v9071_v14, %s6053_s19 }
 0x777   :  { %v7714_v58 = vpop.f32.mrf.mxu0 }
 0x778   :  { %9111 = vst [vmem:[#allocation26_spill] sm:$0xff] %v7714_v58  ;;  %v7724_v41 = vpop.f32.mrf.mxu1 }
 0x779   :  { %v3438_v38 = vpop.permute.xlu0 %3437  ;;  %9112 = vst [vmem:[#allocation34_spill] sm:$0xff] %v7724_v41 }
 0x77a   :  { %5517 = vmatmul.msk.bf16.vlgmr.msra.gmra.mxu1 %vm185_vm1, %v7423_v63  ;;  %v3443_v55 = vsel %vm185_vm1, %v3438_v38, 0 }
 0x77b   :  { %3360 = vmatpush.bf16.xpose.msra.mxu1 %v3351_v17 }
 0x77e   :  { %2936 = vrot.lane.b32.xlu2 %v9067_v40, %s6051_s15 }
 0x77f   :  { %v7730_v60 = vpop.f32.mrf.mxu0 }
 0x780   :  { %9113 = vst [vmem:[#allocation17_spill] sm:$0xff] %v7730_v60 }
 0x781   :  { %v3413_v18 = vpop.permute.xlu0 %3412 }
 0x782   :  { %5518 = vmatmul.msk.bf16.vlgmr.msra.gmra.mxu2 %vm185_vm1, %v7407_v37  ;;  %v3461_v37 = vpop.permute.xlu1 %3460 }
 0x783   :  { %3383 = vmatpush.bf16.xpose.msra.mxu2 %v3374_v52 }
 0x784   :  { %v7720_v36 = vpop.f32.mrf.mxu2 }
 0x786   :  { %3550 = vrot.lane.b32.xlu2 %v9086_v39, %s6053_s19 }
 0x788   :  { %v2719_v63 = vpop.xlane.xlu2 %2718 }
 0x789   :  { %5833 = vrcp.f32 %v2719_v63  ;;  %v2853_v8 = vpop.permute.xlu0 %2852  ;;  %v3328_v63 = vsel %vm185_vm1, %v7459_v50, 0 }
 0x78a   :  { %v2858_v3 = vsel %vm778_vm2, %v2853_v8, 0  ;;  %5520 = vmatmul.msk.bf16.vlgmr.msrb.gmra.mxu1 %vm185_vm1, %v7462_v32  ;;  %v7742_v8 = vpop.f32.mrf.mxu1 }
 0x78b   :  { %3429 = vmatpush.bf16.xpose.msrb.mxu1 %v3420_v5  ;;  %2867 = vmatpush.bf16.msra.mxu0 %v2858_v3  ;;  %9114 = vst [vmem:[#allocation29_spill] sm:$0xff] %v7742_v8  ;;  %v3459_v5 = vpop.permute.xlu1 %3458 }
 0x78c   :  { %v2829_v28 = vpop.f32.mrf.mxu2 }
 0x78e   :  { %3020 = vrot.lane.b32.xlu2 %v9071_v14, %s6051_s15 }
 0x78f   :  { %v5834_v61 = vpop.eup %5833 }
 0x790   :  { %v2751_v21 = vmul.f32 %v5834_v61, %v7577_v10  ;;  %v9115_v10 = vld [vmem:[#allocation9_spill] sm:$0xff]  ;;  %v9116_v61 = vld [vmem:[#allocation10_spill] sm:$0xff] }
 0x791   :  { %v3436_v17 = vpop.permute.xlu0 %3435 }
 0x792   :  { %v2767_v52 = vpack.c.bf16 %v2751_v21, %v2751_v21  ;;  %5521 = vmatmul.msk.bf16.vlgmr.msrb.gmra.mxu2 %vm185_vm1, %v7470_v7 }
 0x793   :  { %3452 = vmatpush.bf16.xpose.msrb.mxu2 %v3443_v55  ;;  %v3507_v21 = vpop.permute.xlu1 %3506 }
 0x794   :  { %v7738_v32 = vpop.f32.mrf.mxu0  ;;  %5508 = vmatmul.msk.bf16.vlgmr.msra.gmra.mxu3 %vm185_vm1, %v2767_v52  ;;  %v3512_v52 = vsel %vm185_vm1, %v3507_v21, 0 }
 0x795   :  { %3337 = vmatpush.bf16.xpose.msra.mxu3 %v3328_v63 }
 0x796   :  { %3802 = vrot.lane.b32.xlu2 %v9115_v10, %s6054_s22  ;;  %v9117_v10 = vld [vmem:[#allocation37_spill] sm:$0xff] }
 0x799   :  { %v3484_v38 = vpop.permute.xlu0 %3483 }
 0x79a   :  { %v3489_v3 = vsel %vm185_vm1, %v3484_v38, 0  ;;  %5523 = vmatmul.msk.bf16.vlgmr.msra.gmra.mxu1 %vm185_vm1, %v7512_v47  ;;  %v3397_v47 = vsel %vm185_vm1, %v3392_v46, 0  ;;  %v9118_v38 = vld [vmem:[#allocation11_spill] sm:$0xff] }
 0x79b   :  { %3498 = vmatpush.bf16.xpose.msra.mxu1 %v3489_v3 }
 0x79c   :  { %v2787_v7 = vpop.f32.mrf.mxu0  ;;  %v7750_v28 = vpop.f32.mrf.mxu1 }
 0x79e   :  { %3844 = vrot.lane.b32.xlu2 %v9116_v61, %s6054_s22 }
 0x7a1   :  { %v3505_v55 = vpop.permute.xlu0 %3504 }
 0x7a2   :  { %5524 = vmatmul.msk.bf16.vlgmr.msra.gmra.mxu2 %vm185_vm1, %v7509_v16 }
 0x7a3   :  { %3521 = vmatpush.bf16.xpose.msra.mxu2 %v3512_v52 }
 0x7a4   :  { %v2808_v63 = vpop.f32.mrf.mxu1  ;;  %5519 = vmatmul.msk.bf16.vlgmr.msrb.gmra.mxu3 %vm185_vm1, %v9117_v10  ;;  %v9119_v10 = vld [vmem:[#allocation40_spill] sm:$0xff] }
 0x7a5   :  { %3406 = vmatpush.bf16.xpose.msrb.mxu3 %v3397_v47  ;;  %v3466_v47 = vsel %vm185_vm1, %v3461_v37, 0 }
 0x7a6   :  { %3886 = vrot.lane.b32.xlu2 %v9118_v38, %s6054_s22  ;;  %v3390_v38 = vpop.permute.xlu2 %3389 }
 0x7a9   :  { %v3530_v3 = vpop.permute.xlu0 %3529 }
 0x7aa   :  { %v7764_v7 = vpop.f32.mrf.mxu3  ;;  %5526 = vmatmul.msk.bf16.vlgmr.msrb.gmra.mxu1 %vm185_vm1, %v3413_v18  ;;  %v3535_v50 = vsel %vm185_vm1, %v3530_v3, 0 }
 0x7ac   :  { %v7769_v16 = vpop.f32.mrf.mxu1 }
 0x7b1   :  { %v3553_v21 = vpop.permute.xlu0 %3552 }
 0x7b2   :  { %v3558_v46 = vsel %vm185_vm1, %v3553_v21, 0  ;;  %v2850_v52 = vpop.f32.mrf.mxu3  ;;  %5527 = vmatmul.msk.bf16.vlgmr.msrb.gmra.mxu2 %vm185_vm1, %v3436_v17  ;;  %v2698_v21 = vpop.xlane.xlu1 %2697 }
 0x7b3   :  { %3567 = vmatpush.bf16.xpose.msrb.mxu1 %v3558_v46 }
 0x7b4   :  { %v2892_v63 = vpop.f32.mrf.mxu1  ;;  %5522 = vmatmul.msk.bf16.vlgmr.msra.gmra.mxu3 %vm185_vm1, %v9119_v10 }
 0x7b5   :  { %3475 = vmatpush.bf16.xpose.msra.mxu3 %v3466_v47 }
 0x7ba   :  { %v7776_v18 = vpop.f32.mrf.mxu3 }
 0x7c2   :  { %v2934_v61 = vpop.f32.mrf.mxu3  ;;  %5530 = vmatmul.msk.bf16.vlgmr.msra.gmra.mxu2 %vm185_vm1, %v3505_v55 }
 0x7c4   :  { %5525 = vmatmul.msk.bf16.vlgmr.msrb.gmra.mxu3 %vm185_vm1, %v3390_v38 }
 0x7c5   :  { %3544 = vmatpush.bf16.xpose.msrb.mxu3 %v3535_v50 }
 0x7c9   :  { %v2686_v17 = vpop.xlane.xlu2 %2685  ;;  %v3824_v3 = vpop.permute.xlu1 %3823 }
 0x7ca   :  { %5835 = vrcp.f32 %v2686_v17  ;;  %v3829_v38 = vsel %vm778_vm2, %v3824_v3, 0 }
 0x7d0   :  { %v5836_v37 = vpop.eup %5835 }
 0x7d1   :  { %v2740_v46 = vmul.f32 %v5836_v37, %v7654_v24  ;;  %v2614_v52 = vpop.xlane.xlu2 %2613 }
 0x7d2   :  { %v2636_v47 = vsub.f32 %v7667_v4, %v2614_v52 }
 0x7d3   :  { %v2756_v63 = vpack.c.bf16 %v2740_v46, %v2740_v46 }
 0x7d4   :  { %v2664_v10 = vmul.f32 1.442695, %v2636_v47  ;;  %5528 = vmatmul.msk.bf16.vlgmr.msra.gmra.mxu3 %vm185_vm1, %v3459_v5 }
 0x7d5   :  { %5497 = vmatmul.msk.bf16.vlgmr.msra.gmra.mxu0 %vm185_vm1, %v2756_v63  ;;  %v7785_v55 = vpop.f32.mrf.mxu2  ;;  %v3528_v63 = vpop.permute.xlu0 %3527 }
 0x7d6   :  { %5837 = vpow2.f32 %v2664_v10 }
 0x7d7   :  { %5839 = vrcp.f32 %v2698_v21  ;;  %v7789_v61 = vpop.f32.mrf.mxu1 }
 0x7d9   :  { %v3482_v24 = vpop.permute.xlu2 %3481 }
 0x7da   :  { %5529 = vmatmul.msk.bf16.vlgmr.msra.gmra.mxu1 %vm185_vm1, %v3482_v24 }
 0x7db   :  { %3838 = vmatpush.bf16.msra.mxu1 %v3829_v38 }
 0x7dc   :  { %v7793_v4 = vpop.eup %5837 }
 0x7dd   :  { %v5840_v5 = vpop.eup %5839  ;;  %v2913_v17 = vpop.f32.mrf.mxu2  ;;  %v2708_v37 = vsel %vm185_vm1, %v7793_v4, 0.0 }
 0x7de   :  { %2709 = vadd.xlane.f32.xlu0 %v2708_v37  ;;  %v2744_v21 = vmul.f32 %v5840_v5, %v7631_v31 }
 0x7df   :  { %v2976_v46 = vpop.f32.mrf.mxu1 }
 0x7e0   :  { %v2760_v10 = vpack.c.bf16 %v2744_v21, %v2744_v21 }
 0x7e1   :  { %v2937_v52 = vpop.permute.xlu2 %2936 }
 0x7e2   :  { %v2942_v47 = vsel %vm778_vm2, %v2937_v52, 0  ;;  %v9120_v52 = vld [vmem:[#allocation8_spill] sm:$0xff] }
 0x7e3   :  { %2951 = vmatpush.bf16.msrb.mxu0 %v2942_v47 }
 0x7e4   :  { %5531 = vmatmul.msk.bf16.vlgmr.msrb.gmra.mxu3 %vm185_vm1, %v3528_v63 }
 0x7e5   :  { %v7800_v3 = vpop.f32.mrf.mxu2 }
 0x7e6   :  { %5501 = vmatmul.msk.bf16.vlgmr.msrb.gmra.mxu0 %vm185_vm1, %v2760_v10 }
 0x7e7   :  { %v7803_v24 = vpop.f32.mrf.mxu1 }
 0x7e9   :  { %v3551_v38 = vpop.permute.xlu2 %3550 }
 0x7ea   :  { %5532 = vmatmul.msk.bf16.vlgmr.msrb.gmra.mxu1 %vm185_vm1, %v3551_v38 }
 0x7ed   :  { %v2997_v17 = vpop.f32.mrf.mxu2 }
 0x7ee   :  { %v7806_v37 = vpop.f32.mrf.mxu3 }
 0x7ef   :  { %v3060_v5 = vpop.f32.mrf.mxu1 }
 0x7f1   :  { %v3021_v46 = vpop.permute.xlu2 %3020 }
 0x7f2   :  { %v3026_v21 = vsel %vm778_vm2, %v3021_v46, 0  ;;  %3781 = vrot.lane.b32.xlu0 %v9120_v52, %s6054_s22 }
 0x7f3   :  { %3035 = vmatpush.bf16.msra.mxu0 %v3026_v21 }
 0x7f5   :  { %v7813_v47 = vpop.f32.mrf.mxu2 }
 0x7f6   :  { %v3018_v63 = vpop.f32.mrf.mxu3 }
 0x7f7   :  { %v3224_v10 = vpop.f32.mrf.mxu1 }
 0x7f8   :  { %v7815_v50 = vmul.f32 0.17677669, %v3224_v10 }
 0x7f9   :  { %v3803_v38 = vpop.permute.xlu2 %3802 }
 0x7fa   :  { %v3808_v17 = vsel %vm778_vm2, %v3803_v38, 0  ;;  %3865 = vrot.lane.b32.xlu0 %v6153_v51, %s6054_s22  ;;  %v3589_v5 = vsel %vm185_vm1, %v7815_v50, -inf }
 0x7fb   :  { %3590 = vmax.xlane.f32.xlu2 %v3589_v5  ;;  %3817 = vmatpush.bf16.msra.mxu3 %v3808_v17 }
 0x7fd   :  { %v3081_v46 = vpop.f32.mrf.mxu2 }
 0x7ff   :  { %v3226_v52 = vpop.f32.mrf.mxu1 }
 0x801   :  { %v7822_v21 = vpop.permute.xlu2 %3844 }
 0x805   :  { %v3247_v31 = vpop.f32.mrf.mxu2 }
 0x806   :  { %v7829_v1 = vmul.f32 0.17677669, %v3247_v31 }
 0x807   :  { %v3293_v63 = vpop.f32.mrf.mxu1 }
 0x808   :  { %v7824_v8 = vmul.f32 0.17677669, %v3293_v63  ;;  %v3592_v5 = vsel %vm185_vm1, %v7829_v1, -inf }
 0x809   :  { %v3887_v10 = vpop.permute.xlu2 %3886 }
 0x80a   :  { %v3892_v60 = vsel %vm778_vm2, %v3887_v10, 0  ;;  %v3598_v38 = vsel %vm185_vm1, %v7824_v8, -inf }
 0x80b   :  { %3599 = vmax.xlane.f32.xlu1 %v3598_v38  ;;  %3901 = vmatpush.bf16.msrb.mxu1 %v3892_v60 }
 0x80d   :  { %v3249_v51 = vpop.f32.mrf.mxu2 }
 0x80f   :  { %v3295_v17 = vpop.f32.mrf.mxu1 }
 0x813   :  { %3593 = vmax.xlane.f32.xlu1 %v3592_v5 }
 0x815   :  { %v3316_v46 = vpop.f32.mrf.mxu2 }
 0x817   :  { %v7833_v52 = vpop.f32.mrf.mxu3  ;;  %v3362_v63 = vpop.f32.mrf.mxu1 }
 0x818   :  { %v7841_v2 = vmul.f32 0.17677669, %v3362_v63 }
 0x81a   :  { %v3607_v10 = vsel %vm185_vm1, %v7841_v2, -inf }
 0x81d   :  { %v3318_v53 = vpop.f32.mrf.mxu2 }
 0x81f   :  { %v3102_v43 = vpop.f32.mrf.mxu3  ;;  %v3364_v42 = vpop.f32.mrf.mxu1 }
 0x820   :  { %v7845_v42 = vmul.f32 0.17677669, %v3316_v46 }
 0x825   :  { %v3385_v38 = vpop.f32.mrf.mxu2 }
 0x827   :  { %v3270_v60 = vpop.f32.mrf.mxu3  ;;  %v3431_v51 = vpop.f32.mrf.mxu1 }
 0x828   :  { %v7837_v31 = vmul.f32 0.17677669, %v3270_v60  ;;  %v3601_v60 = vsel %vm185_vm1, %v7845_v42, -inf }
 0x82a   :  { %v3595_v17 = vsel %vm185_vm1, %v7837_v31, -inf }
 0x82b   :  { %3596 = vmax.xlane.f32.xlu1 %v3595_v17 }
 0x82d   :  { %v3387_v5 = vpop.f32.mrf.mxu2 }
 0x82e   :  { %v7857_v5 = vmul.f32 0.17677669, %v3385_v38 }
 0x82f   :  { %v3272_v33 = vpop.f32.mrf.mxu3  ;;  %v3433_v62 = vpop.f32.mrf.mxu1 }
 0x830   :  { %v7853_v62 = vmul.f32 0.17677669, %v3431_v51 }
 0x833   :  { %3608 = vmax.xlane.f32.xlu1 %v3607_v10  ;;  %v3616_v10 = vsel %vm185_vm1, %v7853_v62, -inf }
 0x835   :  { %v3454_v43 = vpop.f32.mrf.mxu2 }
 0x837   :  { %v3339_v53 = vpop.f32.mrf.mxu3 }
 0x838   :  { %v7847_v9 = vmul.f32 0.17677669, %v3339_v53 }
 0x83a   :  { %v3604_v17 = vsel %vm185_vm1, %v7847_v9, -inf }
 0x83b   :  { %3602 = vmax.xlane.f32.xlu1 %v3601_v60  ;;  %3605 = vmax.xlane.f32.xlu0 %v3604_v17  ;;  %v3138_v60 = vsel %vm778_vm2, %v3112_v59, 0  ;;  %v3610_v17 = vsel %vm185_vm1, %v7857_v5, -inf }
 0x83c   :  { %3147 = vmatpush.bf16.msrb.mxu0 %v3138_v60 }
 0x83d   :  { %v3456_v33 = vpop.f32.mrf.mxu2 }
 0x83f   :  { %v3341_v63 = vpop.f32.mrf.mxu3 }
 0x843   :  { %3617 = vmax.xlane.f32.xlu0 %v3616_v10 }
 0x845   :  { %v3523_v46 = vpop.f32.mrf.mxu2 }
 0x847   :  { %v3408_v53 = vpop.f32.mrf.mxu3 }
 0x848   :  { %v7859_v56 = vmul.f32 0.17677669, %v3408_v53 }
 0x84a   :  { %v3613_v51 = vsel %vm185_vm1, %v7859_v56, -inf }
 0x84b   :  { %3614 = vmax.xlane.f32.xlu1 %v3613_v51  ;;  %3611 = vmax.xlane.f32.xlu0 %v3610_v17 }
 0x84d   :  { %v3525_v38 = vpop.f32.mrf.mxu2 }
 0x84e   :  { %v7879_v38 = vmul.f32 0.17677669, %v3454_v43 }
 0x84f   :  { %v3410_v33 = vpop.f32.mrf.mxu3 }
 0x851   :  { %v2710_v63 = vpop.xlane.xlu0 %2709 }
 0x852   :  { %5841 = vrcp.f32 %v2710_v63  ;;  %v2869_v10 = vpop.f32.mrf.mxu0 }
 0x857   :  { %v3477_v53 = vpop.f32.mrf.mxu3  ;;  %v3500_v20 = vpop.f32.mrf.mxu1 }
 0x858   :  { %v5842_v57 = vpop.eup %5841  ;;  %v7869_v13 = vmul.f32 0.17677669, %v3477_v53  ;;  %v7871_v59 = vmul.f32 0.17677669, %v3500_v20  ;;  %v9121_v20 = vld [vmem:[#allocation13_spill] sm:$0xff] }
 0x859   :  { %v2748_v27 = vmul.f32 %v5842_v57, %v7793_v4  ;;  %v3619_v57 = vsel %vm185_vm1, %v7879_v38, -inf }
 0x85a   :  { %v2871_v41 = vpop.f32.mrf.mxu0  ;;  %v3622_v60 = vsel %vm185_vm1, %v7869_v13, -inf  ;;  %v3625_v51 = vsel %vm185_vm1, %v7871_v59, -inf }
 0x85b   :  { %v2764_v17 = vpack.c.bf16 %v2748_v27, %v2748_v27  ;;  %3623 = vmax.xlane.f32.xlu2 %v3622_v60  ;;  %3626 = vmax.xlane.f32.xlu1 %v3625_v51  ;;  %v3850_v27 = vsel %vm778_vm2, %v7822_v21, 0  ;;  %v7888_v60 = vmul.f32 0.17677669, %v3523_v46 }
 0x85d   :  { %5505 = vmatmul.msk.bf16.vlgmr.msra.gmra.mxu0 %vm185_vm1, %v2764_v17  ;;  %v3628_v17 = vsel %vm185_vm1, %v7888_v60, -inf }
 0x85f   :  { %v3479_v33 = vpop.f32.mrf.mxu3  ;;  %3928 = vrot.lane.b32.xlu0 %v9121_v20, %s6054_s22  ;;  %v3502_v63 = vpop.f32.mrf.mxu1 }
 0x863   :  { %v2953_v41 = vpop.f32.mrf.mxu0  ;;  %3620 = vmax.xlane.f32.xlu1 %v3619_v57  ;;  %v9122_v57 = vpack.c.bf16 %v7750_v28, %v7738_v32 }
 0x864   :  { %v3782_v4 = vpop.permute.xlu0 %3781 }
 0x865   :  { %v3787_v53 = vsel %vm778_vm2, %v3782_v4, 0 }
 0x866   :  { %3796 = vmatpush.bf16.msrb.mxu2 %v3787_v53 }
 0x867   :  { %v3546_v43 = vpop.f32.mrf.mxu3  ;;  %v7890_v51 = vpop.f32.mrf.mxu1 }
 0x868   :  { %v7908_v32 = vmul.f32 0.17677669, %v3546_v43 }
 0x86a   :  { %3859 = vmatpush.bf16.msra.mxu2 %v3850_v27 }
 0x86b   :  { %v2955_v33 = vpop.f32.mrf.mxu0  ;;  %3629 = vmax.xlane.f32.xlu1 %v3628_v17 }
 0x86c   :  { %v3866_v20 = vpop.permute.xlu0 %3865  ;;  %v9123_v33 = vpack.c.bf16 %v7764_v7, %v7720_v36  ;;  %v3106_v7 = vpack.c.bf16 %v7769_v16, %v2869_v10 }
 0x86d   :  { %v3871_v63 = vsel %vm778_vm2, %v3866_v20, 0  ;;  %5509 = vmatmul.msk.bf16.vlgmr.msrb.gmra.mxu0 %vm185_vm1, %v9122_v57 }
 0x86e   :  { %v3591_v21 = vpop.xlane.xlu2 %3590  ;;  %3880 = vmatpush.bf16.msrb.mxu3 %v3871_v63  ;;  %v3631_v63 = vsel %vm185_vm1, %v7908_v32, -inf }
 0x86f   :  { %v3637_v46 = vsub.f32 %v7815_v50, %v3591_v21  ;;  %v3548_v4 = vpop.f32.mrf.mxu3  ;;  %v3571_v53 = vpop.f32.mrf.mxu1 }
 0x871   :  { %v3653_v27 = vmul.f32 1.442695, %v3637_v46 }
 0x873   :  { %5843 = vpow2.f32 %v3653_v27 }
 0x879   :  { %v7900_v58 = vpop.eup %5843 }
 0x87a   :  { %v3685_v17 = vsel %vm185_vm1, %v7900_v58, 0.0 }
 0x87b   :  { %3686 = vadd.xlane.f32.xlu2 %v3685_v17  ;;  %v3108_v17 = vpack.c.bf16 %v7789_v61, %v2953_v41 }
 0x87d   :  { %5510 = vmatmul.msk.bf16.gmra.mxu0 %vm185_vm1, %v9123_v33  ;;  %v9125_v33 = vld [vmem:[#allocation12_spill] sm:$0xff] }
 0x87e   :  { %v3600_v28 = vpop.xlane.xlu1 %3599 }
 0x87f   :  { %v3640_v50 = vsub.f32 %v7824_v8, %v3600_v28 }
 0x881   :  { %v3659_v20 = vmul.f32 1.442695, %v3640_v50 }
 0x883   :  { %5845 = vpow2.f32 %v3659_v20  ;;  %3632 = vmax.xlane.f32.xlu2 %v3631_v63  ;;  %v9126_v20 = vpack.c.bf16 %v7806_v37, %v7800_v3 }
 0x886   :  { %v3594_v57 = vpop.xlane.xlu1 %3593 }
 0x887   :  { %v3638_v21 = vsub.f32 %v7829_v1, %v3594_v57  ;;  %v9124_v1 = vpack.c.bf16 %v7776_v18, %v7785_v55 }
 0x889   :  { %v7914_v46 = vpop.eup %5845  ;;  %v3655_v4 = vmul.f32 1.442695, %v3638_v21 }
 0x88a   :  { %v3694_v36 = vsel %vm185_vm1, %v7914_v46, 0.0 }
 0x88b   :  { %5847 = vpow2.f32 %v3655_v4  ;;  %3695 = vadd.xlane.f32.xlu1 %v3694_v36 }
 0x88d   :  { %5511 = vmatmul.msk.bf16.gmra.mxu0 %vm185_vm1, %v3106_v7 }
 0x891   :  { %v7920_v8 = vpop.eup %5847 }
 0x892   :  { %v3688_v43 = vsel %vm185_vm1, %v7920_v8, 0.0 }
 0x893   :  { %3689 = vadd.xlane.f32.xlu1 %v3688_v43 }
 0x89b   :  { %3949 = vrot.lane.b32.xlu2 %v9067_v40, %s6054_s22 }
 0x89d   :  { %5512 = vmatmul.msk.bf16.gmra.mxu0 %vm185_vm1, %v9124_v1 }
 0x89e   :  { %v3597_v53 = vpop.xlane.xlu1 %3596 }
 0x89f   :  { %v3639_v1 = vsub.f32 %v7837_v31, %v3597_v53 }
 0x8a3   :  { %3970 = vrot.lane.b32.xlu2 %v6194_v15, %s6054_s22 }
 0x8a6   :  { %v3609_v16 = vpop.xlane.xlu1 %3608 }
 0x8a7   :  { %v3643_v10 = vsub.f32 %v7841_v2, %v3609_v16 }
 0x8a9   :  { %v3665_v27 = vmul.f32 1.442695, %v3643_v10 }
 0x8ab   :  { %5849 = vpow2.f32 %v3665_v27 }
 0x8ac   :  { %3907 = vrot.lane.b32.xlu1 %v9125_v33, %s6054_s22 }
 0x8ad   :  { %5513 = vmatmul.msk.bf16.gmra.mxu0 %vm185_vm1, %v3108_v17 }
 0x8ae   :  { %v3606_v40 = vpop.xlane.xlu0 %3605  ;;  %v3603_v50 = vpop.xlane.xlu1 %3602 }
 0x8af   :  { %v3642_v18 = vsub.f32 %v7847_v9, %v3606_v40  ;;  %v3641_v31 = vsub.f32 %v7845_v42, %v3603_v50 }
 0x8b1   :  { %v7938_v55 = vpop.eup %5849  ;;  %v3663_v28 = vmul.f32 1.442695, %v3642_v18  ;;  %v3661_v53 = vmul.f32 1.442695, %v3641_v31 }
 0x8b2   :  { %v3703_v15 = vsel %vm185_vm1, %v7938_v55, 0.0 }
 0x8b3   :  { %3704 = vadd.xlane.f32.xlu0 %v3703_v15  ;;  %5851 = vpow2.f32 %v3663_v28 }
 0x8b6   :  { %v3618_v2 = vpop.xlane.xlu0 %3617 }
 0x8b9   :  { %v7942_v61 = vpop.eup %5851 }
 0x8ba   :  { %v3700_v41 = vsel %vm185_vm1, %v7942_v61, 0.0 }
 0x8bb   :  { %3701 = vadd.xlane.f32.xlu0 %v3700_v41 }
 0x8bd   :  { %5514 = vmatmul.msk.bf16.gmra.mxu0 %vm185_vm1, %v9126_v20 }
 0x8be   :  { %v3612_v9 = vpop.xlane.xlu0 %3611  ;;  %v3615_v63 = vpop.xlane.xlu1 %3614 }
 0x8bf   :  { %v3644_v57 = vsub.f32 %v7857_v5, %v3612_v9  ;;  %v3645_v4 = vsub.f32 %v7859_v56, %v3615_v63  ;;  %v3657_v5 = vmul.f32 1.442695, %v3639_v1  ;;  %v7963_v56 = vmul.f32 0.17677669, %v7890_v51 }
 0x8c1   :  { %v3667_v21 = vmul.f32 1.442695, %v3644_v57  ;;  %v3669_v36 = vmul.f32 1.442695, %v3645_v4 }
 0x8c3   :  { %5853 = vpow2.f32 %v3667_v21 }
 0x8c4   :  { %5855 = vpow2.f32 %v3669_v36  ;;  %v9127_v36 = vpack.c.bf16 %v7833_v52, %v7813_v47 }
 0x8c9   :  { %v7952_v7 = vpop.eup %5853 }
 0x8ca   :  { %v3706_v43 = vsel %vm185_vm1, %v7952_v7, 0.0  ;;  %v7958_v10 = vpop.eup %5855 }
 0x8cb   :  { %v3709_v17 = vsel %vm185_vm1, %v7958_v10, 0.0 }
 0x8cc   :  { %3707 = vadd.xlane.f32.xlu2 %v3706_v43 }
 0x8ce   :  { %v3624_v3 = vpop.xlane.xlu2 %3623  ;;  %v3627_v16 = vpop.xlane.xlu1 %3626 }
 0x8cf   :  { %v3648_v37 = vsub.f32 %v7869_v13, %v3624_v3  ;;  %3991 = vrot.lane.b32.xlu0 %v6210_v25, %s6054_s22  ;;  %v3634_v13 = vsel %vm185_vm1, %v7963_v56, -inf }
 0x8d1   :  { %v3675_v27 = vmul.f32 1.442695, %v3648_v37 }
 0x8d3   :  { %5857 = vpow2.f32 %v3675_v27 }
 0x8d4   :  { %5859 = vpow2.f32 %v3657_v5  ;;  %3710 = vadd.xlane.f32.xlu2 %v3709_v17 }
 0x8d5   :  { %5861 = vpow2.f32 %v3661_v53 }
 0x8d6   :  { %3635 = vmax.xlane.f32.xlu1 %v3634_v13  ;;  %v3621_v25 = vpop.xlane.xlu1 %3620 }
 0x8d7   :  { %v3647_v42 = vsub.f32 %v7879_v38, %v3621_v25  ;;  %v2153_v38 = vadd.f32 %v7555_v0, %v7552_v22  ;;  %v3649_v22 = vsub.f32 %v7871_v59, %v3627_v16  ;;  %v2158_v59 = vadd.f32 %v7579_v30, %v7571_v34 }
 0x8d9   :  { %v7970_v33 = vpop.eup %5857  ;;  %v3673_v50 = vmul.f32 1.442695, %v3647_v42  ;;  %v2163_v42 = vadd.f32 %v7602_v54, %v7596_v49  ;;  %v2168_v49 = vadd.f32 %v7633_v44, %v7624_v11  ;;  %v2173_v11 = vadd.f32 %v7649_v45, %v7645_v26 }
 0x8da   :  { %v7972_v40 = vpop.eup %5859  ;;  %v3037_v51 = vpop.f32.mrf.mxu0  ;;  %v3718_v18 = vsel %vm185_vm1, %v7970_v33, 0.0  ;;  %v2178_v26 = vadd.f32 %v7679_v6, %v7669_v29 }
 0x8db   :  { %v3110_v28 = vpack.c.bf16 %v7803_v24, %v3037_v51  ;;  %v3691_v15 = vsel %vm185_vm1, %v7972_v40, 0.0  ;;  %v7981_v41 = vpop.eup %5861  ;;  %5863 = vpow2.f32 %v3673_v50  ;;  %v3646_v24 = vsub.f32 %v7853_v62, %v3618_v2 }
 0x8dc   :  { %3719 = vadd.xlane.f32.xlu2 %v3718_v18  ;;  %v3697_v9 = vsel %vm185_vm1, %v7981_v41, 0.0  ;;  %v3677_v62 = vmul.f32 1.442695, %v3649_v22 }
 0x8dd   :  { %5515 = vmatmul.msk.bf16.gmra.mxu0 %vm185_vm1, %v3110_v28  ;;  %v3671_v4 = vmul.f32 1.442695, %v3646_v24 }
 0x8de   :  { %3692 = vadd.xlane.f32.xlu1 %v3691_v15  ;;  %v3630_v47 = vpop.xlane.xlu1 %3629 }
 0x8e1   :  { %v7988_v63 = vpop.eup %5863 }
 0x8e2   :  { %v3039_v20 = vpop.f32.mrf.mxu0  ;;  %v3715_v43 = vsel %vm185_vm1, %v7988_v63, 0.0 }
 0x8e6   :  { %3698 = vadd.xlane.f32.xlu1 %v3697_v9  ;;  %v3929_v9 = vpop.permute.xlu0 %3928 }
 0x8ea   :  { %v3149_v57 = vpop.f32.mrf.mxu0 }
 0x8eb   :  { %v7990_v21 = vadd.f32 %v3149_v57, %v2153_v38 }
 0x8ed   :  { %5516 = vmatmul.msk.bf16.gmra.mxu0 %vm185_vm1, %v9127_v36 }
 0x8ee   :  { %v3687_v1 = vpop.xlane.xlu2 %3686  ;;  %3716 = vadd.xlane.f32.xlu1 %v3715_v43 }
 0x8ef   :  { %5865 = vrcp.f32 %v3687_v1 }
 0x8f0   :  { %5867 = vpow2.f32 %v3671_v4  ;;  %v3650_v4 = vsub.f32 %v7888_v60, %v3630_v47 }
 0x8f1   :  { %5869 = vpow2.f32 %v3677_v62 }
 0x8f2   :  { %v7999_v0 = vpop.f32.mrf.mxu0  ;;  %v3679_v43 = vmul.f32 1.442695, %v3650_v4 }
 0x8f4   :  { %4033 = vrot.lane.b32.xlu2 %v9071_v14, %s6054_s22 }
 0x8f5   :  { %v5866_v2 = vpop.eup %5865 }
 0x8f6   :  { %v8003_v3 = vpop.eup %5867  ;;  %v3749_v52 = vmul.f32 %v5866_v2, %v7900_v58  ;;  %v3633_v37 = vpop.xlane.xlu2 %3632 }
 0x8f7   :  { %v3651_v27 = vsub.f32 %v7908_v32, %v3633_v37  ;;  %v3712_v16 = vsel %vm185_vm1, %v8003_v3, 0.0  ;;  %v8016_v58 = vpop.eup %5869 }
 0x8f8   :  { %v3765_v5 = vpack.c.bf16 %v3749_v52, %v3749_v52  ;;  %v3721_v30 = vsel %vm185_vm1, %v8016_v58, 0.0 }
 0x8f9   :  { %3713 = vadd.xlane.f32.xlu0 %v3712_v16  ;;  %v3681_v31 = vmul.f32 1.442695, %v3651_v27 }
 0x8fa   :  { %v3154_v17 = vpop.f32.mrf.mxu0  ;;  %5533 = vmatmul.msk.bf16.vlgmr.msrb.gmra.mxu2 %vm185_vm1, %v3765_v5 }
 0x8fb   :  { %v8012_v14 = vadd.f32 %v3154_v17, %v2158_v59 }
 0x8fc   :  { %4054 = vrot.lane.b32.xlu2 %v6360_v23, %s6054_s22 }
 0x8fe   :  { %v3696_v13 = vpop.xlane.xlu1 %3695  ;;  %v3950_v32 = vpop.permute.xlu2 %3949 }
 0x8ff   :  { %5871 = vrcp.f32 %v3696_v13  ;;  %v3955_v34 = vsel %vm778_vm2, %v3950_v32, 0 }
 0x900   :  { %5873 = vpow2.f32 %v3681_v31  ;;  %3964 = vmatpush.bf16.msra.mxu0 %v3955_v34 }
 0x901   :  { %3722 = vadd.xlane.f32.xlu0 %v3721_v30 }
 0x902   :  { %v8021_v53 = vpop.f32.mrf.mxu0 }
 0x904   :  { %4075 = vrot.lane.b32.xlu2 %v9085_v19, %s6054_s22 }
 0x905   :  { %v5872_v25 = vpop.eup %5871 }
 0x906   :  { %v8025_v23 = vpop.eup %5873  ;;  %v3752_v51 = vmul.f32 %v5872_v25, %v7914_v46  ;;  %v3690_v18 = vpop.xlane.xlu1 %3689 }
 0x907   :  { %5875 = vrcp.f32 %v3690_v18  ;;  %4012 = vrot.lane.b32.xlu1 %v9081_v48, %s6054_s22  ;;  %v3727_v15 = vsel %vm185_vm1, %v8025_v23, 0.0  ;;  %v3934_v48 = vsel %vm778_vm2, %v3929_v9, 0  ;;  %v3971_v5 = vpop.permute.xlu2 %3970 }
 0x908   :  { %v3768_v28 = vpack.c.bf16 %v3752_v51, %v3752_v51  ;;  %5877 = vpow2.f32 %v3679_v43 }
 0x909   :  { %3728 = vadd.xlane.f32.xlu0 %v3727_v15 }
 0x90a   :  { %v3159_v50 = vpop.f32.mrf.mxu0  ;;  %5536 = vmatmul.msk.bf16.vlgmr.msra.gmra.mxu2 %vm185_vm1, %v3768_v28 }
 0x90b   :  { %v8035_v19 = vadd.f32 %v3159_v50, %v2163_v42 }
 0x90d   :  { %v5876_v20 = vpop.eup %5875 }
 0x90e   :  { %v3750_v46 = vmul.f32 %v5876_v20, %v7920_v8  ;;  %v8056_v60 = vpop.eup %5877 }
 0x90f   :  { %v3724_v52 = vsel %vm185_vm1, %v8056_v60, 0.0 }
 0x910   :  { %v3766_v24 = vpack.c.bf16 %v3750_v46, %v3750_v46 }
 0x912   :  { %v8039_v38 = vpop.f32.mrf.mxu0  ;;  %5534 = vmatmul.msk.bf16.vlgmr.msra.gmra.mxu3 %vm185_vm1, %v3766_v24 }
 0x913   :  { %3943 = vmatpush.bf16.msra.mxu3 %v3934_v48 }
 0x91a   :  { %v3164_v54 = vpop.f32.mrf.mxu0 }
 0x91b   :  { %v8044_v57 = vadd.f32 %v3164_v54, %v2168_v49  ;;  %v3976_v49 = vsel %vm778_vm2, %v3971_v5, 0 }
 0x91d   :  { %4096 = vrot.lane.b32.xlu0 %v9086_v39, %s6054_s22 }
 0x91e   :  { %v3908_v8 = vpop.permute.xlu1 %3907 }
 0x91f   :  { %v3913_v36 = vsel %vm778_vm2, %v3908_v8, 0 }
 0x920   :  { %3922 = vmatpush.bf16.msrb.mxu2 %v3913_v36 }
 0x922   :  { %v8050_v1 = vpop.f32.mrf.mxu0 }
 0x926   :  { %v3705_v22 = vpop.xlane.xlu0 %3704 }
 0x927   :  { %5879 = vrcp.f32 %v3705_v22 }
 0x92a   :  { %v3169_v44 = vpop.f32.mrf.mxu0 }
 0x92b   :  { %v8054_v62 = vadd.f32 %v3169_v44, %v2173_v11 }
 0x92d   :  { %v5880_v2 = vpop.eup %5879 }
 0x92e   :  { %v3755_v39 = vmul.f32 %v5880_v2, %v7938_v55  ;;  %v3702_v45 = vpop.xlane.xlu0 %3701  ;;  %v9128_v2 = vld [vmem:[#allocation26_spill] sm:$0xff] }
 0x930   :  { %v3771_v47 = vpack.c.bf16 %v3755_v39, %v3755_v39  ;;  %v9129_v39 = vld [vmem:[#allocation34_spill] sm:$0xff] }
 0x931   :  { %3725 = vadd.xlane.f32.xlu1 %v3724_v52 }
 0x932   :  { %v8061_v37 = vpop.f32.mrf.mxu0  ;;  %5539 = vmatmul.msk.bf16.vlgmr.msrb.gmra.mxu2 %vm185_vm1, %v3771_v47  ;;  %v2188_v47 = vadd.f32 %v9129_v39, %v9128_v2 }
 0x93a   :  { %v3174_v27 = vpop.f32.mrf.mxu0 }
 0x93b   :  { %v8066_v59 = vadd.f32 %v3174_v27, %v2178_v26 }
 0x93f   :  { %v3708_v16 = vpop.xlane.xlu2 %3707 }
 0x941   :  { %v3992_v17 = vpop.permute.xlu0 %3991 }
 0x942   :  { %v3997_v55 = vsel %vm778_vm2, %v3992_v17, 0  ;;  %v8071_v18 = vpop.f32.mrf.mxu0 }
 0x943   :  { %4006 = vmatpush.bf16.msra.mxu2 %v3997_v55 }
 0x947   :  { %v3711_v31 = vpop.xlane.xlu2 %3710 }
 0x948   :  { %5881 = vrcp.f32 %v3711_v31 }
 0x949   :  { %v3636_v13 = vpop.xlane.xlu1 %3635 }
 0x94a   :  { %v3652_v32 = vsub.f32 %v7963_v56, %v3636_v13  ;;  %v4125_v13 = vld [vmem:[%s8964_s2 + $0xc] sm:$0xf] }
 0x94c   :  { %v3683_v34 = vmul.f32 1.442695, %v3652_v32  ;;  %v4151_v32 = vsel %vm778_vm2, %v4125_v13, 0 }
 0x94e   :  { %v5882_v30 = vpop.eup %5881  ;;  %5883 = vpow2.f32 %v3683_v34 }
 0x94f   :  { %v3757_v25 = vmul.f32 %v5882_v30, %v7958_v10  ;;  %v3720_v29 = vpop.xlane.xlu2 %3719  ;;  %v2183_v10 = vadd.f32 %v7700_v35, %v7695_v12 }
 0x951   :  { %v3773_v6 = vpack.c.bf16 %v3757_v25, %v3757_v25  ;;  %v3693_v51 = vpop.xlane.xlu1 %3692 }
 0x952   :  { %5885 = vrcp.f32 %v3693_v51 }
 0x953   :  { %5541 = vmatmul.msk.bf16.vlgmr.msra.gmra.mxu0 %vm185_vm1, %v3773_v6 }
 0x954   :  { %v8074_v28 = vpop.eup %5883 }
 0x955   :  { %v3730_v42 = vsel %vm185_vm1, %v8074_v28, 0.0 }
 0x956   :  { %3731 = vadd.xlane.f32.xlu1 %v3730_v42 }
 0x957   :  { %v4034_v56 = vpop.permute.xlu2 %4033 }
 0x958   :  { %v5886_v15 = vpop.eup %5885  ;;  %v4039_v50 = vsel %vm778_vm2, %v4034_v56, 0 }
 0x959   :  { %v3751_v20 = vmul.f32 %v5886_v15, %v7972_v40  ;;  %v3699_v46 = vpop.xlane.xlu1 %3698  ;;  %4048 = vmatpush.bf16.msrb.mxu0 %v4039_v50 }
 0x95a   :  { %5887 = vrcp.f32 %v3699_v46  ;;  %v3179_v9 = vpop.f32.mrf.mxu0 }
 0x95b   :  { %v3767_v24 = vpack.c.bf16 %v3751_v20, %v3751_v20  ;;  %v8082_v48 = vadd.f32 %v3179_v9, %v2183_v10  ;;  %5889 = vrcp.f32 %v3702_v45 }
 0x95d   :  { %5535 = vmatmul.msk.bf16.vlgmr.msra.gmra.mxu1 %vm185_vm1, %v3767_v24  ;;  %4160 = vmatpush.bf16.msra.mxu0 %v4151_v32 }
 0x95e   :  { %3985 = vmatpush.bf16.msra.mxu1 %v3976_v49 }
 0x95f   :  { %v4055_v54 = vpop.permute.xlu2 %4054 }
 0x960   :  { %v5888_v4 = vpop.eup %5887 }
 0x961   :  { %v3753_v8 = vmul.f32 %v5888_v4, %v7981_v41  ;;  %v3717_v12 = vpop.xlane.xlu1 %3716  ;;  %v5890_v36 = vpop.eup %5889 }
 0x962   :  { %5891 = vrcp.f32 %v3717_v12  ;;  %v8087_v35 = vpop.f32.mrf.mxu0  ;;  %v3754_v43 = vmul.f32 %v5890_v36, %v7942_v61 }
 0x963   :  { %v3769_v40 = vpack.c.bf16 %v3753_v8, %v3753_v8  ;;  %5893 = vrcp.f32 %v3708_v16  ;;  %v4060_v16 = vsel %vm778_vm2, %v4055_v54, 0 }
 0x964   :  { %v3770_v5 = vpack.c.bf16 %v3754_v43, %v3754_v43 }
 0x965   :  { %5537 = vmatmul.msk.bf16.vlgmr.msrb.gmra.mxu3 %vm185_vm1, %v3769_v40 }
 0x967   :  { %v4076_v22 = vpop.permute.xlu2 %4075 }
 0x968   :  { %v5892_v11 = vpop.eup %5891  ;;  %v4081_v44 = vsel %vm778_vm2, %v4076_v22, 0 }
 0x969   :  { %v3759_v41 = vmul.f32 %v5892_v11, %v7988_v63  ;;  %4090 = vmatpush.bf16.msrb.mxu2 %v4081_v44  ;;  %v5894_v27 = vpop.eup %5893 }
 0x96a   :  { %v3184_v52 = vpop.f32.mrf.mxu0  ;;  %v3756_v61 = vmul.f32 %v5894_v27, %v7952_v7 }
 0x96b   :  { %v3775_v26 = vpack.c.bf16 %v3759_v41, %v3759_v41  ;;  %v8095_v45 = vadd.f32 %v3184_v52, %v2188_v47 }
 0x96c   :  { %v3714_v17 = vpop.xlane.xlu0 %3713  ;;  %v3772_v55 = vpack.c.bf16 %v3756_v61, %v3756_v61 }
 0x96d   :  { %5538 = vmatmul.msk.bf16.vlgmr.msrb.gmra.mxu1 %vm185_vm1, %v3770_v5  ;;  %5543 = vmatmul.msk.bf16.vlgmr.msra.gmra.mxu2 %vm185_vm1, %v3775_v26  ;;  %5895 = vrcp.f32 %v3714_v17 }
 0x96e   :  { %4069 = vmatpush.bf16.msrb.mxu1 %v4060_v16  ;;  %5897 = vrcp.f32 %v3720_v29 }
 0x972   :  { %v8119_v11 = vpop.f32.mrf.mxu0 }
 0x973   :  { %v5896_v63 = vpop.eup %5895 }
 0x974   :  { %v3723_v31 = vpop.xlane.xlu0 %3722  ;;  %v3758_v34 = vmul.f32 %v5896_v63, %v8003_v3  ;;  %v5898_v7 = vpop.eup %5897 }
 0x975   :  { %5540 = vmatmul.msk.bf16.vlgmr.msra.gmra.mxu3 %vm185_vm1, %v3772_v55  ;;  %5899 = vrcp.f32 %v3723_v31  ;;  %v3760_v15 = vmul.f32 %v5898_v7, %v7970_v33 }
 0x976   :  { %v3774_v6 = vpack.c.bf16 %v3758_v34, %v3758_v34 }
 0x977   :  { %v3776_v3 = vpack.c.bf16 %v3760_v15, %v3760_v15  ;;  %v8130_v15 = vld [vmem:[%s8967_s5 + $0x1] ss:$0 sm:$0xff] }
 0x979   :  { %v4013_v30 = vpop.permute.xlu1 %4012 }
 0x97a   :  { %v4018_v25 = vsel %vm778_vm2, %v4013_v30, 0 }
 0x97b   :  { %4027 = vmatpush.bf16.msrb.mxu3 %v4018_v25  ;;  %v5900_v29 = vpop.eup %5899 }
 0x97c   :  { %v3761_v51 = vmul.f32 %v5900_v29, %v8016_v58  ;;  %v3729_v42 = vpop.xlane.xlu0 %3728 }
 0x97d   :  { %v3798_v56 = vpop.f32.mrf.mxu2  ;;  %5542 = vmatmul.msk.bf16.vlgmr.msra.gmra.mxu1 %vm185_vm1, %v3774_v6  ;;  %5901 = vrcp.f32 %v3729_v42 }
 0x97e   :  { %v3777_v50 = vpack.c.bf16 %v3761_v51, %v3761_v51 }
 0x980   :  { %5545 = vmatmul.msk.bf16.vlgmr.msrb.gmra.mxu0 %vm185_vm1, %v3777_v50 }
 0x983   :  { %v5902_v10 = vpop.eup %5901 }
 0x984   :  { %v3763_v20 = vmul.f32 %v5902_v10, %v8025_v23 }
 0x985   :  { %v3800_v46 = vpop.f32.mrf.mxu2  ;;  %5544 = vmatmul.msk.bf16.vlgmr.msrb.gmra.mxu3 %vm185_vm1, %v3776_v3 }
 0x986   :  { %v3779_v9 = vpack.c.bf16 %v3763_v20, %v3763_v20  ;;  %v9130_v20 = vld [vmem:[#allocation33_spill] sm:$0xff]  ;;  %v9131_v46 = vld [vmem:[#allocation30_spill] sm:$0xff] }
 0x988   :  { %5547 = vmatmul.msk.bf16.vlgmr.msrb.gmra.mxu2 %vm185_vm1, %v3779_v9  ;;  %v2155_v9 = vadd.f32 %v9131_v46, %v9130_v20 }
 0x98d   :  { %v3861_v58 = vpop.f32.mrf.mxu2 }
 0x98f   :  { %v4097_v24 = vpop.permute.xlu0 %4096 }
 0x990   :  { %v4102_v49 = vsel %vm778_vm2, %v4097_v24, 0 }
 0x991   :  { %4111 = vmatpush.bf16.msra.mxu3 %v4102_v49 }
 0x995   :  { %v3819_v54 = vpop.f32.mrf.mxu3  ;;  %v3863_v33 = vpop.f32.mrf.mxu2 }
 0x996   :  { %v4117_v4 = vpack.c.bf16 %v3819_v54, %v3798_v56  ;;  %v3190_v54 = vadd.f32 %v7999_v0, %v2155_v9 }
 0x998   :  { %5549 = vmatmul.msk.bf16.vlgmr.msra.gmra.mxu0 %vm185_vm1, %v4117_v4 }
 0x99d   :  { %v3821_v8 = vpop.f32.mrf.mxu3 }
 0x9a4   :  { %v3726_v12 = vpop.xlane.xlu1 %3725 }
 0x9a5   :  { %5903 = vrcp.f32 %v3726_v12 }
 0x9ab   :  { %v5904_v23 = vpop.eup %5903 }
 0x9ac   :  { %v3762_v40 = vmul.f32 %v5904_v23, %v8056_v60  ;;  %v5974_v23 = vld [vmem:[#allocation2 + $0x8] sm:$0xff] }
 0x9ae   :  { %v3778_v36 = vpack.c.bf16 %v3762_v40, %v3762_v40 }
 0x9b0   :  { %5546 = vmatmul.msk.bf16.vlgmr.msrb.gmra.mxu1 %vm185_vm1, %v3778_v36 }
 0x9b5   :  { %v3924_v43 = vpop.f32.mrf.mxu2 }
 0x9bd   :  { %v3926_v22 = vpop.f32.mrf.mxu2 }
 0x9c9   :  { %v3732_v44 = vpop.xlane.xlu1 %3731 }
 0x9ca   :  { %5905 = vrcp.f32 %v3732_v44 }
 0x9d0   :  { %v5906_v2 = vpop.eup %5905  ;;  %v3966_v39 = vpop.f32.mrf.mxu0 }
 0x9d1   :  { %v3764_v47 = vmul.f32 %v5906_v2, %v8074_v28 }
 0x9d3   :  { %v3780_v41 = vpack.c.bf16 %v3764_v47, %v3764_v47 }
 0x9d5   :  { %5548 = vmatmul.msk.bf16.vlgmr.msra.gmra.mxu3 %vm185_vm1, %v3780_v41 }
 0x9d8   :  { %v3968_v52 = vpop.f32.mrf.mxu0 }
 0x9da   :  { %v3840_v5 = vpop.f32.mrf.mxu1 }
 0x9db   :  { %v4118_v26 = vpack.c.bf16 %v3861_v58, %v3840_v5  ;;  %v5973_v58 = vld [vmem:[#allocation2] sm:$0xff] }
 0x9dd   :  { %5550 = vmatmul.msk.bf16.gmra.mxu0 %vm185_vm1, %v4118_v26 }
 0x9e2   :  { %v3842_v60 = vpop.f32.mrf.mxu1 }
 0x9e3   :  { %v5975_v60 = vld [vmem:[#allocation2 + $0x10] sm:$0xff] }
 0x9e8   :  { %v3882_v27 = vpop.f32.mrf.mxu3 }
 0x9ea   :  { %v3903_v16 = vpop.f32.mrf.mxu1 }
 0x9eb   :  { %v4119_v17 = vpack.c.bf16 %v3903_v16, %v3882_v27 }
 0x9ed   :  { %5551 = vmatmul.msk.bf16.gmra.mxu0 %vm185_vm1, %v4119_v17  ;;  %v9132_v17 = vld [vmem:[#allocation27_spill] sm:$0xff] }
 0x9f0   :  { %v3884_v61 = vpop.f32.mrf.mxu3  ;;  %v4008_v55 = vpop.f32.mrf.mxu2 }
 0x9f1   :  { %v9133_v61 = vld [vmem:[#allocation38_spill] sm:$0xff] }
 0x9f2   :  { %v3905_v63 = vpop.f32.mrf.mxu1 }
 0x9f8   :  { %v3945_v31 = vpop.f32.mrf.mxu3  ;;  %v4010_v13 = vpop.f32.mrf.mxu2 }
 0x9f9   :  { %v4120_v32 = vpack.c.bf16 %v3945_v31, %v3924_v43 }
 0x9fa   :  { %v3987_v28 = vpop.f32.mrf.mxu1 }
 0x9fb   :  { %v4121_v29 = vpack.c.bf16 %v3987_v28, %v3966_v39 }
 0x9fd   :  { %5552 = vmatmul.msk.bf16.gmra.mxu0 %vm185_vm1, %v4120_v32  ;;  %v4050_v34 = vpop.f32.mrf.mxu0 }
 0xa00   :  { %v3947_v30 = vpop.f32.mrf.mxu3 }
 0xa02   :  { %v3989_v25 = vpop.f32.mrf.mxu1 }
 0xa05   :  { %v4052_v7 = vpop.f32.mrf.mxu0 }
 0xa06   :  { %v5976_v7 = vld [vmem:[#allocation2 + $0x18] sm:$0xff] }
 0xa08   :  { %v4029_v6 = vpop.f32.mrf.mxu3 }
 0xa09   :  { %v4122_v49 = vpack.c.bf16 %v4029_v6, %v4008_v55  ;;  %v2160_v55 = vadd.f32 %v9133_v61, %v9132_v17  ;;  %v5980_v17 = vld [vmem:[#allocation2 + $0x38] sm:$0xff] }
 0xa0b   :  { %v4092_v51 = vpop.f32.mrf.mxu2  ;;  %v3192_v13 = vadd.f32 %v8021_v53, %v2160_v55  ;;  %v9134_v53 = vld [vmem:[#allocation32_spill] sm:$0xff] }
 0xa0d   :  { %5553 = vmatmul.msk.bf16.gmra.mxu0 %vm185_vm1, %v4121_v29 }
 0xa10   :  { %v4031_v42 = vpop.f32.mrf.mxu3 }
 0xa13   :  { %v4094_v56 = vpop.f32.mrf.mxu2 }
 0xa14   :  { %v9135_v56 = vld [vmem:[#allocation35_spill] sm:$0xff] }
 0xa15   :  { %v4162_v50 = vpop.f32.mrf.mxu0 }
 0xa16   :  { %v4202_v3 = vadd.f32 %v4162_v50, %v7990_v21  ;;  %v2165_v50 = vadd.f32 %v9135_v56, %v9134_v53 }
 0xa18   :  { %v4219_v10 = vadd.f32 %v8130_v15, %v4202_v3  ;;  %v3194_v20 = vadd.f32 %v8039_v38, %v2165_v50 }
 0xa1a   :  { %v8136_v24 = vadd.f32 %v5973_v58, %v4219_v10 }
 0xa1c   :  { %v4251_v33 = vsel %vm90_vm0, %v8136_v24, 0.0  ;;  %v4322_v12 = vmul.f32 %v8136_v24, %v8136_v24 }
 0xa1d   :  { %5554 = vmatmul.msk.bf16.gmra.mxu0 %vm185_vm1, %v4122_v49  ;;  %4252 = vadd.xlane.f32.xlu1 %v4251_v33  ;;  %v4164_v4 = vpop.f32.mrf.mxu0  ;;  %v6055_v49 = vmov 32.0  }
 0xa1e   :  { %v4203_v8 = vadd.f32 %v4164_v4, %v3190_v54  ;;  %v4338_v36 = vsel %vm90_vm0, %v4322_v12, 0.0  ;;  %5907 = vrcp.f32 %v6055_v49 }
 0xa20   :  { %v4220_v21 = vadd.f32 %v8130_v15, %v4203_v8 }
 0xa22   :  { %v8145_v40 = vadd.f32 %v5974_v23, %v4220_v21  ;;  %v5978_v21 = vld [vmem:[#allocation2 + $0x28] sm:$0xff] }
 0xa24   :  { %v4254_v0 = vsel %vm90_vm0, %v8145_v40, 0.0  ;;  %v4323_v43 = vmul.f32 %v8145_v40, %v8145_v40 }
 0xa25   :  { %4339 = vadd.xlane.f32.xlu1 %v4338_v36  ;;  %4255 = vadd.xlane.f32.xlu2 %v4254_v0  ;;  %v5908_v36 = vpop.eup %5907  ;;  %v9136_v0 = vld [vmem:[#allocation14_spill] sm:$0xff] }
 0xa26   :  { %v4341_v22 = vsel %vm90_vm0, %v4323_v43, 0.0  ;;  %v9137_v43 = vld [vmem:[#allocation21_spill] sm:$0xff]  ;;  %vm4304_vm3 = vweird.f32 %v5908_v36 }
 0xa27   :  { %4342 = vadd.xlane.f32.xlu0 %v4341_v22  ;;  %v2170_v22 = vadd.f32 %v9137_v43, %v9136_v0 }
 0xa2d   :  { %v4071_v44 = vpop.f32.mrf.mxu1 }
 0xa2e   :  { %v4123_v2 = vpack.c.bf16 %v4071_v44, %v4050_v34  ;;  %v5979_v44 = vld [vmem:[#allocation2 + $0x30] sm:$0xff] }
 0xa30   :  { %5555 = vmatmul.msk.bf16.gmra.mxu0 %vm185_vm1, %v4123_v2 }
 0xa35   :  { %v4073_v39 = vpop.f32.mrf.mxu1 }
 0xa36   :  { %v3196_v39 = vadd.f32 %v8050_v1, %v2170_v22 }
 0xa58   :  { %v4113_v47 = vpop.f32.mrf.mxu3 }
 0xa59   :  { %v4124_v41 = vpack.c.bf16 %v4113_v47, %v4092_v51  ;;  %v5977_v51 = vld [vmem:[#allocation2 + $0x20] sm:$0xff] }
 0xa5a   :  { %v4167_v52 = vpop.f32.mrf.mxu0 }
 0xa5b   :  { %v4204_v5 = vadd.f32 %v4167_v52, %v8012_v14  ;;  %5556 = vmatmul.msk.bf16.gmra.mxu0 %vm185_vm1, %v4124_v41  ;;  %v4300_v41 = vmul.f32 32.0, %v5908_v36 }
 0xa5d   :  { %v4221_v26 = vadd.f32 %v8130_v15, %v4204_v5 }
 0xa5f   :  { %v8157_v27 = vadd.f32 %v5975_v60, %v4221_v26 }
 0xa60   :  { %v4115_v16 = vpop.f32.mrf.mxu3 }
 0xa61   :  { %v4257_v63 = vsel %vm90_vm0, %v8157_v27, 0.0  ;;  %v4324_v14 = vmul.f32 %v8157_v27, %v8157_v27  ;;  %v4301_v16 = vsub.f32 1.0, %v4300_v41 }
 0xa62   :  { %4258 = vadd.xlane.f32.xlu1 %v4257_v63  ;;  %v4169_v31 = vpop.f32.mrf.mxu0 }
 0xa63   :  { %v4205_v28 = vadd.f32 %v4169_v31, %v3192_v13  ;;  %v4344_v34 = vsel %vm90_vm0, %v4324_v14, 0.0  ;;  %v4302_v31 = vmul.f32 %v5908_v36, %v4301_v16  ;;  %v9140_v16 = vld [vmem:[#allocation36_spill] sm:$0xff] }
 0xa65   :  { %v4222_v32 = vadd.f32 %v8130_v15, %v4205_v28 }
 0xa67   :  { %v8169_v6 = vadd.f32 %v5976_v7, %v4222_v32  ;;  %v9139_v7 = vld [vmem:[#allocation18_spill] sm:$0xff] }
 0xa69   :  { %v4260_v3 = vsel %vm90_vm0, %v8169_v6, 0.0  ;;  %v4325_v9 = vmul.f32 %v8169_v6, %v8169_v6 }
 0xa6a   :  { %4345 = vadd.xlane.f32.xlu1 %v4344_v34  ;;  %v4172_v30 = vpop.f32.mrf.mxu0  ;;  %v4303_v34 = vadd.f32 %v5908_v36, %v4302_v31 }
 0xa6b   :  { %v4206_v25 = vadd.f32 %v4172_v30, %v8035_v19  ;;  %v4347_v33 = vsel %vm90_vm0, %v4325_v9, 0.0 }
 0xa6d   :  { %v4223_v29 = vadd.f32 %v8130_v15, %v4206_v25  ;;  %v9138_v25 = vld [vmem:[#allocation19_spill] sm:$0xff] }
 0xa6f   :  { %v8172_v42 = vadd.f32 %v5977_v51, %v4223_v29  ;;  %v2175_v29 = vadd.f32 %v9139_v7, %v9138_v25  ;;  %v5981_v51 = vld [vmem:[#allocation2 + $0x40] sm:$0xff] }
 0xa71   :  { %v4263_v10 = vsel %vm90_vm0, %v8172_v42, 0.0  ;;  %v4326_v58 = vmul.f32 %v8172_v42, %v8172_v42  ;;  %v3198_v56 = vadd.f32 %v8061_v37, %v2175_v29  ;;  %v5608_v37 = vld [vmem:[%s8965_s3 + $0x8] sm:$0xff]  ;;  %v5984_v29 = vld [vmem:[#allocation2 + $0x58] sm:$0xff] }
 0xa72   :  { %4261 = vadd.xlane.f32.xlu1 %v4260_v3  ;;  %4264 = vadd.xlane.f32.xlu2 %v4263_v10  ;;  %v4174_v19 = vpop.f32.mrf.mxu0 }
 0xa73   :  { %v4207_v46 = vadd.f32 %v4174_v19, %v3194_v20  ;;  %v4350_v4 = vsel %vm90_vm0, %v4326_v58, 0.0  ;;  %4731 = vmatpush.bf16.msra.mxu1 %v5608_v37 }
 0xa75   :  { %v4224_v54 = vadd.f32 %v8130_v15, %v4207_v46 }
 0xa77   :  { %v8189_v12 = vadd.f32 %v5978_v21, %v4224_v54  ;;  %v5982_v54 = vld [vmem:[#allocation2 + $0x48] sm:$0xff]  ;;  %v5607_v21 = vld [vmem:[%s8965_s3] sm:$0xff] }
 0xa78   :  { %4732 = vmatpush.bf16.msra.mxu1 %v5607_v21  ;;  %v8281_v21 = vld [vmem:[%s8967_s5 + $0x4] ss:$0 sm:$0xff] }
 0xa79   :  { %v4266_v47 = vsel %vm90_vm0, %v8189_v12, 0.0  ;;  %v4327_v60 = vmul.f32 %v8189_v12, %v8189_v12 }
 0xa7a   :  { %4348 = vadd.xlane.f32.xlu1 %v4347_v33  ;;  %4351 = vadd.xlane.f32.xlu2 %v4350_v4  ;;  %v4177_v8 = vpop.f32.mrf.mxu0 }
 0xa7b   :  { %v4208_v38 = vadd.f32 %v4177_v8, %v8044_v57  ;;  %v4353_v1 = vsel %vm90_vm0, %v4327_v60, 0.0 }
 0xa7d   :  { %v4225_v23 = vadd.f32 %v8130_v15, %v4208_v38 }
 0xa7f   :  { %v8194_v2 = vadd.f32 %v5979_v44, %v4225_v23 }
 0xa81   :  { %v4269_v57 = vsel %vm90_vm0, %v8194_v2, 0.0  ;;  %v4328_v30 = vmul.f32 %v8194_v2, %v8194_v2 }
 0xa82   :  { %4267 = vadd.xlane.f32.xlu1 %v4266_v47  ;;  %4270 = vadd.xlane.f32.xlu0 %v4269_v57  ;;  %v4179_v52 = vpop.f32.mrf.mxu0 }
 0xa83   :  { %v4209_v5 = vadd.f32 %v4179_v52, %v3196_v39  ;;  %v4356_v3 = vsel %vm90_vm0, %v4328_v30, 0.0 }
 0xa85   :  { %v4226_v26 = vadd.f32 %v8130_v15, %v4209_v5 }
 0xa87   :  { %v8204_v61 = vadd.f32 %v5980_v17, %v4226_v26  ;;  %v9141_v17 = vld [vmem:[#allocation39_spill] sm:$0xff] }
 0xa89   :  { %v4272_v55 = vsel %vm90_vm0, %v8204_v61, 0.0  ;;  %v4329_v63 = vmul.f32 %v8204_v61, %v8204_v61 }
 0xa8a   :  { %4354 = vadd.xlane.f32.xlu1 %v4353_v1  ;;  %4273 = vadd.xlane.f32.xlu2 %v4272_v55  ;;  %v4182_v13 = vpop.f32.mrf.mxu0  ;;  %v2180_v1 = vadd.f32 %v9141_v17, %v9140_v16  ;;  %v5983_v55 = vld [vmem:[#allocation2 + $0x50] sm:$0xff] }
 0xa8b   :  { %v4210_v28 = vadd.f32 %v4182_v13, %v8054_v62  ;;  %v4359_v14 = vsel %vm90_vm0, %v4329_v63, 0.0  ;;  %v8221_v62 = vsel %vm4304_vm3, %v5908_v36, %v4303_v34 }
 0xa8c   :  { %4360 = vadd.xlane.f32.xlu0 %v4359_v14  ;;  %v3200_v13 = vadd.f32 %v8071_v18, %v2180_v1 }
 0xa8d   :  { %v4227_v32 = vadd.f32 %v8130_v15, %v4210_v28 }
 0xa8f   :  { %v8218_v53 = vadd.f32 %v5981_v51, %v4227_v32 }
 0xa90   :  { %v4253_v50 = vpop.xlane.xlu1 %4252 }
 0xa91   :  { %v4275_v10 = vsel %vm90_vm0, %v8218_v53, 0.0  ;;  %v4330_v19 = vmul.f32 %v8218_v53, %v8218_v53  ;;  %v8230_v58 = vmul.f32 %v8221_v62, %v4253_v50 }
 0xa92   :  { %4357 = vadd.xlane.f32.xlu1 %v4356_v3  ;;  %4276 = vadd.xlane.f32.xlu2 %v4275_v10  ;;  %v4184_v20 = vpop.f32.mrf.mxu0 }
 0xa93   :  { %v4211_v46 = vadd.f32 %v4184_v20, %v3198_v56  ;;  %v4362_v9 = vsel %vm90_vm0, %v4330_v19, 0.0  ;;  %v4402_v4 = vmul.f32 %v8230_v58, %v8230_v58 }
 0xa94   :  { %4363 = vadd.xlane.f32.xlu0 %v4362_v9 }
 0xa95   :  { %v4228_v49 = vadd.f32 %v8130_v15, %v4211_v46 }
 0xa97   :  { %v8236_v33 = vadd.f32 %v5982_v54, %v4228_v49 }
 0xa98   :  { %v4340_v8 = vpop.xlane.xlu1 %4339  ;;  %v4256_v38 = vpop.xlane.xlu2 %4255 }
 0xa99   :  { %v4386_v23 = vmul.f32 %v4340_v8, %v8221_v62  ;;  %v8245_v36 = vmul.f32 %v8221_v62, %v4256_v38  ;;  %v4278_v0 = vsel %vm90_vm0, %v8236_v33, 0.0  ;;  %v4331_v43 = vmul.f32 %v8236_v33, %v8236_v33 }
 0xa9a   :  { %4279 = vadd.xlane.f32.xlu1 %v4278_v0  ;;  %v4187_v22 = vpop.f32.mrf.mxu0  ;;  %v4343_v44 = vpop.xlane.xlu0 %4342  ;;  %v4434_v8 = vsub.f32 %v8136_v24, %v8230_v58  ;;  %v5985_v24 = vld [vmem:[#allocation2 + $0x60] sm:$0xff] }
 0xa9b   :  { %v4418_v39 = vsub.f32 %v4386_v23, %v4402_v4  ;;  %v4403_v47 = vmul.f32 %v8245_v36, %v8245_v36  ;;  %v4212_v57 = vadd.f32 %v4187_v22, %v8066_v59  ;;  %v4387_v41 = vmul.f32 %v4343_v44, %v8221_v62  ;;  %v9143_v22 = vld [vmem:[#allocation20_spill] sm:$0xff] }
 0xa9c   :  { %v4365_v52 = vsel %vm90_vm0, %v4331_v43, 0.0  ;;  %v9142_v43 = vld [vmem:[#allocation31_spill] sm:$0xff] }
 0xa9d   :  { %v4450_v5 = vadd.f32 1e-05, %v4418_v39  ;;  %v4229_v26 = vadd.f32 %v8130_v15, %v4212_v57  ;;  %4366 = vadd.xlane.f32.xlu2 %v4365_v52  ;;  %v4419_v60 = vsub.f32 %v4387_v41, %v4403_v47  ;;  %v2185_v44 = vadd.f32 %v9143_v22, %v9142_v43  ;;  %v8294_v52 = vld [vmem:[%s8967_s5 + $0x5] ss:$0 sm:$0xff]  ;;  %v5988_v43 = vld [vmem:[#allocation2 + $0x78] sm:$0xff] }
 0xa9f   :  { %5909 = vrsqrt.f32 %v4450_v5  ;;  %v8259_v63 = vadd.f32 %v5983_v55, %v4229_v26  ;;  %v4451_v31 = vadd.f32 1e-05, %v4419_v60  ;;  %vm4472_vm5 = vweird.f32 %v4450_v5 }
 0xaa0   :  { %v3202_v57 = vadd.f32 %v8087_v35, %v2185_v44 }
 0xaa1   :  { %v4281_v59 = vsel %vm90_vm0, %v8259_v63, 0.0  ;;  %v4332_v28 = vmul.f32 %v8259_v63, %v8259_v63  ;;  %5911 = vrsqrt.f32 %v4451_v31  ;;  %vm4482_vm8 = vweird.f32 %v4451_v31 }
 0xaa2   :  { %4282 = vadd.xlane.f32.xlu1 %v4281_v59  ;;  %v4189_v14 = vpop.f32.mrf.mxu0 }
 0xaa3   :  { %v4213_v32 = vadd.f32 %v4189_v14, %v3200_v13  ;;  %v4368_v34 = vsel %vm90_vm0, %v4332_v28, 0.0  ;;  %v5986_v13 = vld [vmem:[#allocation2 + $0x68] sm:$0xff] }
 0xaa5   :  { %v5910_v30 = vpop.eup %5909  ;;  %v4230_v25 = vadd.f32 %v8130_v15, %v4213_v32  ;;  %4369 = vadd.xlane.f32.xlu2 %v4368_v34 }
 0xaa6   :  { %v4467_v7 = vmul.f32 %v5910_v30, %v4450_v5  ;;  %vm4473_vm4 = vweird.f32 %v5910_v30 }
 0xaa7   :  { %v8268_v51 = vadd.f32 %v5984_v29, %v4230_v25  ;;  %v5912_v18 = vpop.eup %5911  ;;  %vm4474_vm6 = vmor %vm4472_vm5, %vm4473_vm4 }
 0xaa8   :  { %v4468_v56 = vmul.f32 %v5910_v30, %v4467_v7  ;;  %v4477_v50 = vmul.f32 %v5912_v18, %v4451_v31  ;;  %vm4483_vm7 = vweird.f32 %v5912_v18 }
 0xaa9   :  { %v4284_v3 = vsel %vm90_vm0, %v8268_v51, 0.0  ;;  %v4333_v10 = vmul.f32 %v8268_v51, %v8268_v51  ;;  %vm4484_vm9 = vmor %vm4482_vm8, %vm4483_vm7 }
 0xaaa   :  { %v4469_v19 = vmul.f32 0.5, %v4468_v56  ;;  %4285 = vadd.xlane.f32.xlu0 %v4284_v3  ;;  %v4478_v20 = vmul.f32 %v5912_v18, %v4477_v50  ;;  %v9144_v56 = vld [vmem:[#allocation17_spill] sm:$0xff] }
 0xaab   :  { %v4371_v46 = vsel %vm90_vm0, %v4333_v10, 0.0  ;;  %v9145_v50 = vld [vmem:[#allocation29_spill] sm:$0xff]  ;;  %v5987_v10 = vld [vmem:[#allocation2 + $0x70] sm:$0xff] }
 0xaac   :  { %v4470_v9 = vsub.f32 1.5, %v4469_v19  ;;  %4372 = vadd.xlane.f32.xlu1 %v4371_v46  ;;  %v4479_v37 = vmul.f32 0.5, %v4478_v20  ;;  %v2190_v3 = vadd.f32 %v9145_v50, %v9144_v56 }
 0xaad   :  { %v4192_v49 = vpop.f32.mrf.mxu0 }
 0xaae   :  { %v4471_v54 = vmul.f32 %v5910_v30, %v4470_v9  ;;  %v4214_v4 = vadd.f32 %v4192_v49, %v8082_v48  ;;  %v4480_v38 = vsub.f32 1.5, %v4479_v37  ;;  %v4435_v48 = vsub.f32 %v8145_v40, %v8245_v36 }
 0xaaf   :  { %v3204_v37 = vadd.f32 %v8119_v11, %v2190_v3 }
 0xab0   :  { %v4475_v23 = vsel %vm4474_vm6, %v5910_v30, %v4471_v54  ;;  %v4231_v0 = vadd.f32 %v8130_v15, %v4214_v4  ;;  %v4481_v47 = vmul.f32 %v5912_v18, %v4480_v38 }
 0xab1   :  { %v4626_v39 = vmul.f32 %v4475_v23, %v4434_v8 }
 0xab2   :  { %v8288_v58 = vadd.f32 %v5985_v24, %v4231_v0  ;;  %v4485_v41 = vsel %vm4484_vm9, %v5912_v18, %v4481_v47 }
 0xab3   :  { %v4643_v5 = vmul.f32 %v8281_v21, %v4626_v39  ;;  %v4627_v26 = vmul.f32 %v4485_v41, %v4435_v48 }
 0xab4   :  { %v4287_v60 = vsel %vm90_vm0, %v8288_v58, 0.0  ;;  %v4334_v40 = vmul.f32 %v8288_v58, %v8288_v58 }
 0xab5   :  { %4288 = vadd.xlane.f32.xlu0 %v4287_v60  ;;  %v4194_v36 = vpop.f32.mrf.mxu0  ;;  %v4644_v16 = vmul.f32 %v8281_v21, %v4627_v26  ;;  %v8304_v1 = vadd.f32 %v8294_v52, %v4643_v5 }
 0xab6   :  { %v4215_v35 = vadd.f32 %v4194_v36, %v3202_v57  ;;  %v4374_v17 = vsel %vm90_vm0, %v4334_v40, 0.0 }
 0xab7   :  { %4375 = vadd.xlane.f32.xlu1 %v4374_v17  ;;  %v8307_v55 = vadd.f32 %v8294_v52, %v4644_v16 }
 0xab8   :  { %v4232_v31 = vadd.f32 %v8130_v15, %v4215_v35 }
 0xab9   :  { %v4676_v28 = vpack.c.bf16 %v8307_v55, %v8304_v1 }
 0xaba   :  { %v8310_v59 = vadd.f32 %v5986_v13, %v4232_v31 }
 0xabb   :  { %5565 = vmatmul.msk.bf16.vlgmr.msra.gmra.mxu1 %vm90_vm0, %v4676_v28 }
 0xabc   :  { %v4290_v14 = vsel %vm90_vm0, %v8310_v59, 0.0  ;;  %v4335_v32 = vmul.f32 %v8310_v59, %v8310_v59 }
 0xabd   :  { %4291 = vadd.xlane.f32.xlu2 %v4290_v14 }
 0xabe   :  { %v4377_v34 = vsel %vm90_vm0, %v4335_v32, 0.0 }
 0xabf   :  { %4378 = vadd.xlane.f32.xlu0 %v4377_v34 }
 0xad5   :  { %v4259_v30 = vpop.xlane.xlu1 %4258 }
 0xad6   :  { %v8322_v29 = vmul.f32 %v8221_v62, %v4259_v30 }
 0xad8   :  { %v4197_v25 = vpop.f32.mrf.mxu0  ;;  %v4404_v46 = vmul.f32 %v8322_v29, %v8322_v29 }
 0xad9   :  { %v4216_v7 = vadd.f32 %v4197_v25, %v8095_v45 }
 0xadb   :  { %v4233_v18 = vadd.f32 %v8130_v15, %v4216_v7 }
 0xadd   :  { %v8327_v19 = vadd.f32 %v5987_v10, %v4233_v18  ;;  %v4346_v20 = vpop.xlane.xlu1 %4345 }
 0xade   :  { %v4388_v9 = vmul.f32 %v4346_v20, %v8221_v62 }
 0xadf   :  { %v4293_v45 = vsel %vm90_vm0, %v8327_v19, 0.0  ;;  %v4336_v49 = vmul.f32 %v8327_v19, %v8327_v19 }
 0xae0   :  { %v4420_v54 = vsub.f32 %v4388_v9, %v4404_v46  ;;  %4294 = vadd.xlane.f32.xlu2 %v4293_v45  ;;  %v4199_v4 = vpop.f32.mrf.mxu0 }
 0xae1   :  { %v4217_v8 = vadd.f32 %v4199_v4, %v3204_v37  ;;  %v4380_v38 = vsel %vm90_vm0, %v4336_v49, 0.0 }
 0xae2   :  { %v4452_v23 = vadd.f32 1e-05, %v4420_v54  ;;  %4381 = vadd.xlane.f32.xlu0 %v4380_v38 }
 0xae3   :  { %v4234_v0 = vadd.f32 %v8130_v15, %v4217_v8 }
 0xae4   :  { %5913 = vrsqrt.f32 %v4452_v23  ;;  %vm4492_vm11 = vweird.f32 %v4452_v23 }
 0xae5   :  { %v8339_v22 = vadd.f32 %v5988_v43, %v4234_v0  ;;  %v4262_v11 = vpop.xlane.xlu1 %4261  ;;  %v4265_v44 = vpop.xlane.xlu2 %4264 }
 0xae6   :  { %v4309_v57 = vmul.f32 %v8221_v62, %v4262_v11  ;;  %v8348_v15 = vmul.f32 %v8221_v62, %v4265_v44 }
 0xae7   :  { %v4296_v39 = vsel %vm90_vm0, %v8339_v22, 0.0  ;;  %v4337_v47 = vmul.f32 %v8339_v22, %v8339_v22 }
 0xae8   :  { %4297 = vadd.xlane.f32.xlu1 %v4296_v39  ;;  %v4405_v60 = vmul.f32 %v4309_v57, %v4309_v57  ;;  %v4406_v40 = vmul.f32 %v8348_v15, %v8348_v15 }
 0xae9   :  { %v4383_v48 = vsel %vm90_vm0, %v4337_v47, 0.0 }
 0xaea   :  { %v5914_v24 = vpop.eup %5913  ;;  %4384 = vadd.xlane.f32.xlu2 %v4383_v48 }
 0xaeb   :  { %v4487_v41 = vmul.f32 %v5914_v24, %v4452_v23  ;;  %vm4493_vm10 = vweird.f32 %v5914_v24  ;;  %v4436_v23 = vsub.f32 %v8157_v27, %v8322_v29 }
 0xaec   :  { %vm4494_vm12 = vmor %vm4492_vm11, %vm4493_vm10 }
 0xaed   :  { %v4349_v5 = vpop.xlane.xlu1 %4348  ;;  %v4352_v26 = vpop.xlane.xlu2 %4351  ;;  %v4488_v35 = vmul.f32 %v5914_v24, %v4487_v41  ;;  %v4437_v41 = vsub.f32 %v8169_v6, %v4309_v57 }
 0xaee   :  { %v4389_v36 = vmul.f32 %v4349_v5, %v8221_v62  ;;  %v4390_v16 = vmul.f32 %v4352_v26, %v8221_v62 }
 0xaef   :  { %v4489_v14 = vmul.f32 0.5, %v4488_v35 }
 0xaf0   :  { %v4421_v17 = vsub.f32 %v4389_v36, %v4405_v60  ;;  %v4422_v31 = vsub.f32 %v4390_v16, %v4406_v40 }
 0xaf1   :  { %v4490_v30 = vsub.f32 1.5, %v4489_v14 }
 0xaf2   :  { %v4453_v13 = vadd.f32 1e-05, %v4421_v17  ;;  %v8354_v28 = vadd.f32 1e-05, %v4422_v31 }
 0xaf3   :  { %v4491_v50 = vmul.f32 %v5914_v24, %v4490_v30 }
 0xaf4   :  { %5915 = vrsqrt.f32 %v4453_v13  ;;  %vm4502_vm14 = vweird.f32 %v4453_v13  ;;  %vm4512_vm2 = vweird.f32 %v8354_v28 }
 0xaf5   :  { %5917 = vrsqrt.f32 %v8354_v28  ;;  %v4268_v32 = vpop.xlane.xlu1 %4267  ;;  %v4271_v34 = vpop.xlane.xlu0 %4270  ;;  %v4495_v4 = vsel %vm4494_vm12, %v5914_v24, %v4491_v50 }
 0xaf6   :  { %v8358_v7 = vmul.f32 %v8221_v62, %v4268_v32  ;;  %v8377_v44 = vmul.f32 %v8221_v62, %v4271_v34  ;;  %v4628_v47 = vmul.f32 %v4495_v4, %v4436_v23  ;;  %v5616_v32 = vld [vmem:[%s8966_s4 + $0x38] sm:$0xff] }
 0xaf7   :  { %4863 = vmatpush.bf16.msra.mxu2 %v5616_v32  ;;  %5619 = vmatpush.bf16.msrb.mxu3 %v5616_v32  ;;  %v5612_v32 = vld [vmem:[%s8966_s4 + $0x18] sm:$0xff] }
 0xaf8   :  { %v4407_v9 = vmul.f32 %v8358_v7, %v8358_v7  ;;  %v4408_v36 = vmul.f32 %v8377_v44, %v8377_v44  ;;  %v4645_v57 = vmul.f32 %v8281_v21, %v4628_v47 }
 0xafa   :  { %v5916_v25 = vpop.eup %5915  ;;  %v8404_v50 = vadd.f32 %v8294_v52, %v4645_v57 }
 0xafb   :  { %v8360_v18 = vpop.eup %5917  ;;  %v4497_v56 = vmul.f32 %v5916_v25, %v4453_v13  ;;  %vm4503_vm13 = vweird.f32 %v5916_v25 }
 0xafc   :  { %v4507_v3 = vmul.f32 %v8360_v18, %v8354_v28  ;;  %vm4504_vm15 = vmor %vm4502_vm14, %vm4503_vm13  ;;  %vm4513_vm1 = vweird.f32 %v8360_v18 }
 0xafd   :  { %v4498_v10 = vmul.f32 %v5916_v25, %v4497_v56  ;;  %v4355_v20 = vpop.xlane.xlu1 %4354  ;;  %v4274_v46 = vpop.xlane.xlu2 %4273  ;;  %vm8422_vm3 = vmor %vm4512_vm2, %vm4513_vm1 }
 0xafe   :  { %v4391_v37 = vmul.f32 %v4355_v20, %v8221_v62  ;;  %v8368_v45 = vmul.f32 %v8221_v62, %v4274_v46  ;;  %v4508_v8 = vmul.f32 %v8360_v18, %v4507_v3  ;;  %v5615_v46 = vld [vmem:[%s8966_s4 + $0x30] sm:$0xff] }
 0xaff   :  { %v4499_v49 = vmul.f32 0.5, %v4498_v10  ;;  %v4361_v54 = vpop.xlane.xlu0 %4360  ;;  %4864 = vmatpush.bf16.msra.mxu2 %v5615_v46  ;;  %5620 = vmatpush.bf16.msrb.mxu3 %v5615_v46 }
 0xb00   :  { %v4423_v38 = vsub.f32 %v4391_v37, %v4407_v9  ;;  %v4409_v0 = vmul.f32 %v8368_v45, %v8368_v45  ;;  %v4393_v11 = vmul.f32 %v4361_v54, %v8221_v62  ;;  %v4509_v5 = vmul.f32 0.5, %v4508_v8 }
 0xb01   :  { %v4500_v43 = vsub.f32 1.5, %v4499_v49 }
 0xb02   :  { %v8379_v39 = vadd.f32 1e-05, %v4423_v38  ;;  %v4425_v24 = vsub.f32 %v4393_v11, %v4409_v0  ;;  %v4510_v17 = vsub.f32 1.5, %v4509_v5  ;;  %v5614_v11 = vld [vmem:[%s8966_s4 + $0x28] sm:$0xff] }
 0xb03   :  { %v4501_v48 = vmul.f32 %v5916_v25, %v4500_v43  ;;  %4865 = vmatpush.bf16.msra.mxu2 %v5614_v11  ;;  %5621 = vmatpush.bf16.msrb.mxu3 %v5614_v11 }
 0xb04   :  { %5919 = vrsqrt.f32 %v8379_v39  ;;  %v8383_v29 = vadd.f32 1e-05, %v4425_v24  ;;  %v4511_v10 = vmul.f32 %v8360_v18, %v4510_v17  ;;  %vm4522_vm5 = vweird.f32 %v8379_v39 }
 0xb05   :  { %v4505_v27 = vsel %vm4504_vm15, %v5916_v25, %v4501_v48  ;;  %v4358_v26 = vpop.xlane.xlu1 %4357  ;;  %v4277_v60 = vpop.xlane.xlu2 %4276 }
 0xb06   :  { %v4629_v40 = vmul.f32 %v4505_v27, %v4437_v41  ;;  %v4392_v16 = vmul.f32 %v4358_v26, %v8221_v62  ;;  %v8389_v35 = vmul.f32 %v8221_v62, %v4277_v60  ;;  %5921 = vrsqrt.f32 %v8383_v29 }
 0xb07   :  { %v4364_v6 = vpop.xlane.xlu0 %4363  ;;  %v4515_v23 = vsel %vm8422_vm3, %v8360_v18, %v4511_v10  ;;  %v4438_v18 = vsub.f32 %v8172_v42, %v8348_v15  ;;  %v5613_v42 = vld [vmem:[%s8966_s4 + $0x20] sm:$0xff]  ;;  %vm4542_vm11 = vweird.f32 %v8383_v29 }
 0xb08   :  { %v4424_v31 = vsub.f32 %v4392_v16, %v4408_v36  ;;  %v4410_v13 = vmul.f32 %v8389_v35, %v8389_v35  ;;  %v4394_v14 = vmul.f32 %v4364_v6, %v8221_v62  ;;  %v4646_v34 = vmul.f32 %v8281_v21, %v4629_v40  ;;  %4866 = vmatpush.bf16.msra.mxu2 %v5613_v42 }
 0xb09   :  { %v4630_v40 = vmul.f32 %v4515_v23, %v4438_v18  ;;  %v4439_v36 = vsub.f32 %v8189_v12, %v8358_v7  ;;  %5622 = vmatpush.bf16.msrb.mxu3 %v5613_v42  ;;  %v4440_v18 = vsub.f32 %v8194_v2, %v8377_v44 }
 0xb0a   :  { %v5920_v30 = vpop.eup %5919  ;;  %v8400_v25 = vadd.f32 1e-05, %v4424_v31  ;;  %v8407_v3 = vadd.f32 %v8294_v52, %v4646_v34  ;;  %v4426_v20 = vsub.f32 %v4394_v14, %v4410_v13 }
 0xb0b   :  { %v4517_v56 = vmul.f32 %v5920_v30, %v8379_v39  ;;  %vm4523_vm4 = vweird.f32 %v5920_v30  ;;  %v4647_v14 = vmul.f32 %v8281_v21, %v4630_v40  ;;  %v4441_v40 = vsub.f32 %v8204_v61, %v8368_v45 }
 0xb0c   :  { %5923 = vrsqrt.f32 %v8400_v25  ;;  %v8415_v9 = vpop.eup %5921  ;;  %v4677_v54 = vpack.c.bf16 %v8407_v3, %v8404_v50  ;;  %v8433_v28 = vadd.f32 1e-05, %v4426_v20  ;;  %vm4524_vm6 = vmor %vm4522_vm5, %vm4523_vm4  ;;  %4867 = vmatpush.bf16.msra.mxu2 %v5612_v32  ;;  %vm4532_vm9 = vweird.f32 %v8400_v25 }
 0xb0d   :  { %v4518_v37 = vmul.f32 %v5920_v30, %v4517_v56  ;;  %v4280_v49 = vpop.xlane.xlu1 %4279  ;;  %v4537_v4 = vmul.f32 %v8415_v9, %v8383_v29  ;;  %5623 = vmatpush.bf16.msrb.mxu3 %v5612_v32  ;;  %vm4543_vm8 = vweird.f32 %v8415_v9  ;;  %v5610_v29 = vld [vmem:[%s8966_s4 + $0x8] sm:$0xff] }
 0xb0e   :  { %v8427_v0 = vmul.f32 %v8221_v62, %v4280_v49  ;;  %5566 = vmatmul.msk.bf16.gmra.mxu1 %vm90_vm0, %v4677_v54  ;;  %5925 = vrsqrt.f32 %v8433_v28  ;;  %v8476_v49 = vadd.f32 %v8294_v52, %v4647_v14  ;;  %vm4544_vm12 = vmor %vm4542_vm11, %vm4543_vm8  ;;  %vm4552_vm2 = vweird.f32 %v8433_v28 }
 0xb0f   :  { %v4519_v38 = vmul.f32 0.5, %v4518_v37  ;;  %v4538_v48 = vmul.f32 %v8415_v9, %v4537_v4  ;;  %v5611_v4 = vld [vmem:[%s8966_s4 + $0x10] sm:$0xff] }
 0xb10   :  { %v4367_v43 = vpop.xlane.xlu2 %4366  ;;  %v4411_v24 = vmul.f32 %v8427_v0, %v8427_v0  ;;  %4868 = vmatpush.bf16.msra.mxu2 %v5611_v4 }
 0xb11   :  { %v4520_v47 = vsub.f32 1.5, %v4519_v38  ;;  %v4395_v41 = vmul.f32 %v4367_v43, %v8221_v62  ;;  %v4539_v16 = vmul.f32 0.5, %v4538_v48  ;;  %5624 = vmatpush.bf16.msrb.mxu3 %v5611_v4 }
 0xb12   :  { %v8442_v5 = vpop.eup %5923 }
 0xb13   :  { %v4521_v27 = vmul.f32 %v5920_v30, %v4520_v47  ;;  %v4527_v26 = vmul.f32 %v8442_v5, %v8400_v25  ;;  %v4427_v60 = vsub.f32 %v4395_v41, %v4411_v24  ;;  %v4540_v34 = vsub.f32 1.5, %v4539_v16 }
 0xb14   :  { %v8469_v56 = vpop.eup %5925  ;;  %vm4533_vm7 = vweird.f32 %v8442_v5  ;;  %4869 = vmatpush.bf16.msra.mxu2 %v5610_v29 }
 0xb15   :  { %v4525_v15 = vsel %vm4524_vm6, %v5920_v30, %v4521_v27  ;;  %v4528_v39 = vmul.f32 %v8442_v5, %v4527_v26  ;;  %v4283_v6 = vpop.xlane.xlu1 %4282  ;;  %v8457_v17 = vadd.f32 1e-05, %v4427_v60  ;;  %v4541_v8 = vmul.f32 %v8415_v9, %v4540_v34  ;;  %vm8491_vm10 = vmor %vm4532_vm9, %vm4533_vm7  ;;  %5625 = vmatpush.bf16.msrb.mxu3 %v5610_v29 }
 0xb16   :  { %v4631_v57 = vmul.f32 %v4525_v15, %v4439_v36  ;;  %v8460_v31 = vmul.f32 %v8221_v62, %v4283_v6  ;;  %v4547_v38 = vmul.f32 %v8469_v56, %v8433_v28  ;;  %vm4553_vm14 = vweird.f32 %v8469_v56 }
 0xb17   :  { %v4529_v12 = vmul.f32 0.5, %v4528_v39  ;;  %5927 = vrsqrt.f32 %v8457_v17  ;;  %vm4562_vm15 = vweird.f32 %v8457_v17  ;;  %vm4554_vm3 = vmor %vm4552_vm2, %vm4553_vm14  ;;  %v4442_v28 = vsub.f32 %v8218_v53, %v8389_v35 }
 0xb18   :  { %v4412_v7 = vmul.f32 %v8460_v31, %v8460_v31  ;;  %v4370_v13 = vpop.xlane.xlu2 %4369  ;;  %v4648_v20 = vmul.f32 %v8281_v21, %v4631_v57  ;;  %v4548_v60 = vmul.f32 %v8469_v56, %v4547_v38 }
 0xb19   :  { %v4530_v30 = vsub.f32 1.5, %v4529_v12  ;;  %v4396_v10 = vmul.f32 %v4370_v13, %v8221_v62 }
 0xb1a   :  { %v8479_v54 = vadd.f32 %v8294_v52, %v4648_v20  ;;  %v4549_v39 = vmul.f32 0.5, %v4548_v60 }
 0xb1b   :  { %v4531_v46 = vmul.f32 %v8442_v5, %v4530_v30  ;;  %v4428_v37 = vsub.f32 %v4396_v10, %v4412_v7 }
 0xb1c   :  { %v4678_v48 = vpack.c.bf16 %v8479_v54, %v8476_v49  ;;  %v4550_v7 = vsub.f32 1.5, %v4549_v39 }
 0xb1d   :  { %v4286_v23 = vpop.xlane.xlu0 %4285  ;;  %v8489_v43 = vpop.eup %5927  ;;  %v4535_v25 = vsel %vm8491_vm10, %v8442_v5, %v4531_v46  ;;  %v8510_v27 = vadd.f32 1e-05, %v4428_v37  ;;  %v4545_v5 = vsel %vm4544_vm12, %v8415_v9, %v4541_v8  ;;  %v5609_v9 = vld [vmem:[%s8966_s4] sm:$0xff] }
 0xb1e   :  { %v8496_v47 = vmul.f32 %v8221_v62, %v4286_v23  ;;  %v4557_v24 = vmul.f32 %v8489_v43, %v8457_v17  ;;  %5567 = vmatmul.msk.bf16.gmra.mxu1 %vm90_vm0, %v4678_v48  ;;  %v4632_v36 = vmul.f32 %v4535_v25, %v4440_v18  ;;  %v4633_v16 = vmul.f32 %v4545_v5, %v4441_v40 }
 0xb1f   :  { %v4373_v41 = vpop.xlane.xlu1 %4372  ;;  %5929 = vrsqrt.f32 %v8510_v27  ;;  %4870 = vmatpush.bf16.msra.mxu2 %v5609_v9  ;;  %5626 = vmatpush.bf16.msrb.mxu3 %v5609_v9  ;;  %vm4563_vm13 = vweird.f32 %v8489_v43  ;;  %v4551_v4 = vmul.f32 %v8469_v56, %v4550_v7  ;;  %v4443_v25 = vsub.f32 %v8236_v33, %v8427_v0 }
 0xb20   :  { %v4413_v26 = vmul.f32 %v8496_v47, %v8496_v47  ;;  %v4558_v2 = vmul.f32 %v8489_v43, %v4557_v24  ;;  %v4397_v44 = vmul.f32 %v4373_v41, %v8221_v62  ;;  %v4649_v57 = vmul.f32 %v8281_v21, %v4632_v36  ;;  %vm4564_vm1 = vmor %vm4562_vm15, %vm4563_vm13 }
 0xb21   :  { %v4650_v12 = vmul.f32 %v8281_v21, %v4633_v16  ;;  %v4555_v18 = vsel %vm4554_vm3, %v8469_v56, %v4551_v4  ;;  %vm4572_vm8 = vweird.f32 %v8510_v27 }
 0xb22   :  { %v4559_v42 = vmul.f32 0.5, %v4558_v2  ;;  %v4429_v15 = vsub.f32 %v4397_v44, %v4413_v26  ;;  %v8539_v34 = vadd.f32 %v8294_v52, %v4649_v57  ;;  %v4634_v2 = vmul.f32 %v4555_v18, %v4442_v28  ;;  %v8583_v57 = vld [vmem:[%s8967_s5 + $0x2] ss:$0 sm:$0xff] }
 0xb23   :  { %v8548_v46 = vadd.f32 %v8294_v52, %v4650_v12 }
 0xb24   :  { %v8528_v6 = vadd.f32 1e-05, %v4429_v15  ;;  %v4560_v61 = vsub.f32 1.5, %v4559_v42  ;;  %v4651_v15 = vmul.f32 %v8281_v21, %v4634_v2 }
 0xb25   :  { %v8536_v14 = vpop.eup %5929  ;;  %v4679_v11 = vpack.c.bf16 %v8548_v46, %v8539_v34 }
 0xb26   :  { %5931 = vrsqrt.f32 %v8528_v6  ;;  %v4561_v30 = vmul.f32 %v8489_v43, %v4560_v61  ;;  %v4567_v8 = vmul.f32 %v8536_v14, %v8510_v27  ;;  %v8586_v61 = vadd.f32 %v8294_v52, %v4651_v15 }
 0xb27   :  { %vm4573_vm5 = vweird.f32 %v8536_v14  ;;  %vm4582_vm6 = vweird.f32 %v8528_v6 }
 0xb28   :  { %v4289_v45 = vpop.xlane.xlu0 %4288  ;;  %v4565_v48 = vsel %vm4564_vm1, %v8489_v43, %v4561_v30  ;;  %v4568_v26 = vmul.f32 %v8536_v14, %v4567_v8  ;;  %vm4574_vm9 = vmor %vm4572_vm8, %vm4573_vm5 }
 0xb29   :  { %v8534_v13 = vmul.f32 %v8221_v62, %v4289_v45  ;;  %v4635_v43 = vmul.f32 %v4565_v48, %v4443_v25 }
 0xb2a   :  { %v4376_v32 = vpop.xlane.xlu1 %4375  ;;  %v4569_v56 = vmul.f32 0.5, %v4568_v26 }
 0xb2b   :  { %v4414_v10 = vmul.f32 %v8534_v13, %v8534_v13  ;;  %v4398_v20 = vmul.f32 %v4376_v32, %v8221_v62  ;;  %v4652_v40 = vmul.f32 %v8281_v21, %v4635_v43 }
 0xb2c   :  { %v5932_v37 = vpop.eup %5931  ;;  %v4570_v53 = vsub.f32 1.5, %v4569_v56  ;;  %v4446_v56 = vsub.f32 %v8288_v58, %v8534_v13 }
 0xb2d   :  { %v4430_v38 = vsub.f32 %v4398_v20, %v4414_v10  ;;  %v4577_v23 = vmul.f32 %v5932_v37, %v8528_v6  ;;  %v8578_v9 = vadd.f32 %v8294_v52, %v4652_v40  ;;  %vm4583_vm4 = vweird.f32 %v5932_v37 }
 0xb2e   :  { %5568 = vmatmul.msk.bf16.gmra.mxu1 %vm90_vm0, %v4679_v11  ;;  %v4571_v45 = vmul.f32 %v8536_v14, %v4570_v53  ;;  %vm4584_vm7 = vmor %vm4582_vm6, %vm4583_vm4  ;;  %v4445_v10 = vsub.f32 %v8268_v51, %v8496_v47 }
 0xb2f   :  { %v4578_v24 = vmul.f32 %v5932_v37, %v4577_v23  ;;  %v8561_v17 = vadd.f32 1e-05, %v4430_v38  ;;  %v4680_v7 = vpack.c.bf16 %v8578_v9, %v8586_v61  ;;  %v4444_v23 = vsub.f32 %v8259_v63, %v8460_v31 }
 0xb30   :  { %v4292_v41 = vpop.xlane.xlu2 %4291  ;;  %v4575_v6 = vsel %vm4574_vm9, %v8536_v14, %v4571_v45 }
 0xb31   :  { %v8567_v29 = vmul.f32 %v8221_v62, %v4292_v41  ;;  %v4579_v60 = vmul.f32 0.5, %v4578_v24  ;;  %5933 = vrsqrt.f32 %v8561_v17  ;;  %vm4592_vm14 = vweird.f32 %v8561_v17 }
 0xb32   :  { %v4379_v5 = vpop.xlane.xlu0 %4378 }
 0xb33   :  { %v4415_v33 = vmul.f32 %v8567_v29, %v8567_v29  ;;  %v4399_v0 = vmul.f32 %v4379_v5, %v8221_v62  ;;  %v4580_v36 = vsub.f32 1.5, %v4579_v60 }
 0xb35   :  { %v4431_v44 = vsub.f32 %v4399_v0, %v4415_v33  ;;  %v4581_v39 = vmul.f32 %v5932_v37, %v4580_v36  ;;  %v4447_v0 = vsub.f32 %v8310_v59, %v8567_v29 }
 0xb37   :  { %v4463_v42 = vadd.f32 1e-05, %v4431_v44  ;;  %v5934_v16 = vpop.eup %5933  ;;  %v4585_v30 = vsel %vm4584_vm7, %v5932_v37, %v4581_v39  ;;  %v4636_v37 = vmul.f32 %v4575_v6, %v4444_v23 }
 0xb38   :  { %v4734_v35 = vpop.f32.mrf.mxu1  ;;  %v4587_v12 = vmul.f32 %v5934_v16, %v8561_v17  ;;  %v4637_v11 = vmul.f32 %v4585_v30, %v4445_v10  ;;  %vm4593_vm11 = vweird.f32 %v5934_v16 }
 0xb39   :  { %5935 = vrsqrt.f32 %v4463_v42  ;;  %v4735_v4 = vadd.f32 %v8583_v57, %v4734_v35  ;;  %v4653_v14 = vmul.f32 %v8281_v21, %v4636_v37  ;;  %vm4602_vm12 = vweird.f32 %v4463_v42  ;;  %vm4594_vm15 = vmor %vm4592_vm14, %vm4593_vm11 }
 0xb3a   :  { %v4588_v8 = vmul.f32 %v5934_v16, %v4587_v12  ;;  %v4654_v18 = vmul.f32 %v8281_v21, %v4637_v11 }
 0xb3b   :  { %v4774_v24 = vmax.f32 %v4735_v4, 0.0  ;;  %v8609_v31 = vadd.f32 %v8294_v52, %v4653_v14 }
 0xb3c   :  { %v4589_v47 = vmul.f32 0.5, %v4588_v8  ;;  %v8606_v43 = vadd.f32 %v8294_v52, %v4654_v18 }
 0xb3e   :  { %5569 = vmatmul.msk.bf16.gmra.mxu1 %vm90_vm0, %v4680_v7  ;;  %v4590_v28 = vsub.f32 1.5, %v4589_v47  ;;  %v4681_v60 = vpack.c.bf16 %v8606_v43, %v8609_v31 }
 0xb3f   :  { %v5936_v32 = vpop.eup %5935 }
 0xb40   :  { %v4597_v20 = vmul.f32 %v5936_v32, %v4463_v42  ;;  %v4736_v38 = vpop.f32.mrf.mxu1  ;;  %vm4603_vm10 = vweird.f32 %v5936_v32  ;;  %v4591_v5 = vmul.f32 %v5934_v16, %v4590_v28 }
 0xb41   :  { %v4737_v27 = vadd.f32 %v8583_v57, %v4736_v38  ;;  %vm4604_vm13 = vmor %vm4602_vm12, %vm4603_vm10 }
 0xb42   :  { %v4598_v48 = vmul.f32 %v5936_v32, %v4597_v20  ;;  %v4595_v2 = vsel %vm4594_vm15, %v5934_v16, %v4591_v5 }
 0xb43   :  { %v4775_v51 = vmax.f32 %v4737_v27, 0.0  ;;  %v4638_v36 = vmul.f32 %v4595_v2, %v4446_v56 }
 0xb44   :  { %v4599_v25 = vmul.f32 0.5, %v4598_v48 }
 0xb45   :  { %v4790_v41 = vpack.c.bf16 %v4775_v51, %v4774_v24  ;;  %v4655_v59 = vmul.f32 %v8281_v21, %v4638_v36 }
 0xb46   :  { %v4600_v26 = vsub.f32 1.5, %v4599_v25 }
 0xb47   :  { %4871 = vmatmul.bf16.vlgmr.msra.gmra.mxu2 %v4790_v41  ;;  %v8628_v13 = vadd.f32 %v8294_v52, %v4655_v59 }
 0xb48   :  { %v4601_v63 = vmul.f32 %v5936_v32, %v4600_v26 }
 0xb4a   :  { %v4605_v33 = vsel %vm4604_vm13, %v5936_v32, %v4601_v63 }
 0xb4b   :  { %v4639_v44 = vmul.f32 %v4605_v33, %v4447_v0 }
 0xb4d   :  { %v4656_v35 = vmul.f32 %v8281_v21, %v4639_v44 }
 0xb4e   :  { %5570 = vmatmul.msk.bf16.gmra.mxu1 %vm90_vm0, %v4681_v60 }
 0xb4f   :  { %v8624_v16 = vadd.f32 %v8294_v52, %v4656_v35 }
 0xb51   :  { %v4682_v30 = vpack.c.bf16 %v8624_v16, %v8628_v13 }
 0xb53   :  { %v4295_v40 = vpop.xlane.xlu2 %4294 }
 0xb54   :  { %v4320_v42 = vmul.f32 %v8221_v62, %v4295_v40 }
 0xb55   :  { %v4382_v15 = vpop.xlane.xlu0 %4381 }
 0xb56   :  { %v4416_v53 = vmul.f32 %v4320_v42, %v4320_v42  ;;  %v4400_v17 = vmul.f32 %v4382_v15, %v8221_v62  ;;  %v4448_v51 = vsub.f32 %v8327_v19, %v4320_v42 }
 0xb58   :  { %v4432_v39 = vsub.f32 %v4400_v17, %v4416_v53 }
 0xb5a   :  { %v4464_v29 = vadd.f32 1e-05, %v4432_v39 }
 0xb5b   :  { %v4298_v45 = vpop.xlane.xlu1 %4297 }
 0xb5c   :  { %5937 = vrsqrt.f32 %v4464_v29  ;;  %v4321_v58 = vmul.f32 %v8221_v62, %v4298_v45  ;;  %vm4612_vm2 = vweird.f32 %v4464_v29 }
 0xb5d   :  { %v4385_v12 = vpop.xlane.xlu2 %4384 }
 0xb5e   :  { %v4417_v7 = vmul.f32 %v4321_v58, %v4321_v58  ;;  %v4401_v32 = vmul.f32 %v4385_v12, %v8221_v62  ;;  %5571 = vmatmul.msk.bf16.gmra.mxu1 %vm90_vm0, %v4682_v30  ;;  %v4449_v26 = vsub.f32 %v8339_v22, %v4321_v58 }
 0xb60   :  { %v4433_v10 = vsub.f32 %v4401_v32, %v4417_v7 }
 0xb62   :  { %v5938_v20 = vpop.eup %5937  ;;  %v4465_v4 = vadd.f32 1e-05, %v4433_v10 }
 0xb63   :  { %v4607_v6 = vmul.f32 %v5938_v20, %v4464_v29  ;;  %vm4613_vm1 = vweird.f32 %v5938_v20 }
 0xb64   :  { %5939 = vrsqrt.f32 %v4465_v4  ;;  %vm4614_vm3 = vmor %vm4612_vm2, %vm4613_vm1  ;;  %vm4622_vm5 = vweird.f32 %v4465_v4 }
 0xb65   :  { %v4608_v8 = vmul.f32 %v5938_v20, %v4607_v6 }
 0xb67   :  { %v4609_v38 = vmul.f32 0.5, %v4608_v8  ;;  %v8658_v8 = vld [vmem:[%s8967_s5 + $0x3] ss:$0 sm:$0xff] }
 0xb69   :  { %v4610_v23 = vsub.f32 1.5, %v4609_v38 }
 0xb6a   :  { %v5940_v11 = vpop.eup %5939 }
 0xb6b   :  { %v4611_v48 = vmul.f32 %v5938_v20, %v4610_v23  ;;  %v4617_v27 = vmul.f32 %v5940_v11, %v4465_v4  ;;  %vm4623_vm4 = vweird.f32 %v5940_v11 }
 0xb6c   :  { %vm4624_vm6 = vmor %vm4622_vm5, %vm4623_vm4 }
 0xb6d   :  { %v4618_v37 = vmul.f32 %v5940_v11, %v4617_v27  ;;  %v4615_v25 = vsel %vm4614_vm3, %v5938_v20, %v4611_v48 }
 0xb6e   :  { %v4640_v41 = vmul.f32 %v4615_v25, %v4448_v51 }
 0xb6f   :  { %v4619_v24 = vmul.f32 0.5, %v4618_v37 }
 0xb70   :  { %v4657_v63 = vmul.f32 %v8281_v21, %v4640_v41 }
 0xb71   :  { %v4620_v47 = vsub.f32 1.5, %v4619_v24 }
 0xb72   :  { %v8639_v60 = vadd.f32 %v8294_v52, %v4657_v63 }
 0xb73   :  { %v4621_v18 = vmul.f32 %v5940_v11, %v4620_v47 }
 0xb75   :  { %v4625_v14 = vsel %vm4624_vm6, %v5940_v11, %v4621_v18 }
 0xb76   :  { %v4641_v28 = vmul.f32 %v4625_v14, %v4449_v26 }
 0xb78   :  { %v4658_v5 = vmul.f32 %v8281_v21, %v4641_v28 }
 0xb7a   :  { %v8642_v33 = vadd.f32 %v8294_v52, %v4658_v5 }
 0xb7c   :  { %v4683_v19 = vpack.c.bf16 %v8642_v33, %v8639_v60 }
 0xb7e   :  { %5572 = vmatmul.msk.bf16.gmra.mxu1 %vm90_vm0, %v4683_v19 }
 0xb8b   :  { %v4739_v0 = vpop.f32.mrf.mxu1 }
 0xb8c   :  { %v4740_v22 = vadd.f32 %v8583_v57, %v4739_v0 }
 0xb8e   :  { %v4776_v44 = vmax.f32 %v4740_v22, 0.0 }
 0xb93   :  { %v4741_v2 = vpop.f32.mrf.mxu1 }
 0xb94   :  { %v4742_v56 = vadd.f32 %v8583_v57, %v4741_v2 }
 0xb96   :  { %v4777_v40 = vmax.f32 %v4742_v56, 0.0 }
 0xb98   :  { %v4791_v21 = vpack.c.bf16 %v4777_v40, %v4776_v44 }
 0xb9a   :  { %4876 = vmatmul.bf16.gmra.mxu2 %v4791_v21 }
 0xb9b   :  { %v4744_v36 = vpop.f32.mrf.mxu1 }
 0xb9c   :  { %v4745_v42 = vadd.f32 %v8583_v57, %v4744_v36 }
 0xb9e   :  { %v4778_v53 = vmax.f32 %v4745_v42, 0.0 }
 0xba3   :  { %v4746_v52 = vpop.f32.mrf.mxu1 }
 0xba4   :  { %v4747_v15 = vadd.f32 %v8583_v57, %v4746_v52 }
 0xba6   :  { %v4779_v17 = vmax.f32 %v4747_v15, 0.0 }
 0xba8   :  { %v4792_v35 = vpack.c.bf16 %v4779_v17, %v4778_v53 }
 0xbaa   :  { %4881 = vmatmul.bf16.gmra.mxu2 %v4792_v35 }
 0xbab   :  { %v4749_v39 = vpop.f32.mrf.mxu1 }
 0xbac   :  { %v4750_v59 = vadd.f32 %v8583_v57, %v4749_v39 }
 0xbae   :  { %v4780_v58 = vmax.f32 %v4750_v59, 0.0 }
 0xbb3   :  { %v4751_v29 = vpop.f32.mrf.mxu1 }
 0xbb4   :  { %v4752_v45 = vadd.f32 %v8583_v57, %v4751_v29 }
 0xbb6   :  { %v4781_v12 = vmax.f32 %v4752_v45, 0.0 }
 0xbb8   :  { %v4793_v7 = vpack.c.bf16 %v4781_v12, %v4780_v58 }
 0xbba   :  { %4886 = vmatmul.bf16.gmra.mxu2 %v4793_v7 }
 0xbbb   :  { %v4754_v32 = vpop.f32.mrf.mxu1 }
 0xbbc   :  { %v4755_v30 = vadd.f32 %v8583_v57, %v4754_v32 }
 0xbbe   :  { %v4782_v4 = vmax.f32 %v4755_v30, 0.0 }
 0xbc3   :  { %v4756_v10 = vpop.f32.mrf.mxu1 }
 0xbc4   :  { %v4757_v20 = vadd.f32 %v8583_v57, %v4756_v10 }
 0xbc6   :  { %v4783_v6 = vmax.f32 %v4757_v20, 0.0 }
 0xbc8   :  { %v4794_v38 = vpack.c.bf16 %v4783_v6, %v4782_v4 }
 0xbca   :  { %v4872_v23 = vpop.f32.mrf.mxu2  ;;  %4891 = vmatmul.bf16.gmra.mxu2 %v4794_v38 }
 0xbcb   :  { %v4873_v11 = vadd.f32 %v8658_v8, %v4872_v23  ;;  %v4759_v48 = vpop.f32.mrf.mxu1 }
 0xbcc   :  { %v4760_v47 = vadd.f32 %v8583_v57, %v4759_v48 }
 0xbcd   :  { %v8662_v27 = vadd.f32 %v4873_v11, %v8304_v1 }
 0xbce   :  { %v4784_v14 = vmax.f32 %v4760_v47, 0.0 }
 0xbcf   :  { %v4928_v37 = vsel %vm90_vm0, %v8662_v27, 0.0  ;;  %v4992_v25 = vmul.f32 %v8662_v27, %v8662_v27 }
 0xbd0   :  { %4929 = vadd.xlane.f32.xlu1 %v4928_v37 }
 0xbd1   :  { %v5008_v24 = vsel %vm90_vm0, %v4992_v25, 0.0 }
 0xbd2   :  { %v4874_v51 = vpop.f32.mrf.mxu2  ;;  %5009 = vadd.xlane.f32.xlu0 %v5008_v24 }
 0xbd3   :  { %v4875_v41 = vadd.f32 %v8658_v8, %v4874_v51  ;;  %v4761_v18 = vpop.f32.mrf.mxu1 }
 0xbd4   :  { %v4762_v1 = vadd.f32 %v8583_v57, %v4761_v18 }
 0xbd5   :  { %v8672_v26 = vadd.f32 %v4875_v41, %v8307_v55 }
 0xbd6   :  { %v4785_v28 = vmax.f32 %v4762_v1, 0.0 }
 0xbd7   :  { %v4993_v63 = vmul.f32 %v8672_v26, %v8672_v26  ;;  %v4931_v0 = vsel %vm90_vm0, %v8672_v26, 0.0 }
 0xbd8   :  { %v4795_v5 = vpack.c.bf16 %v4785_v28, %v4784_v14 }
 0xbd9   :  { %v5011_v19 = vsel %vm90_vm0, %v4993_v63, 0.0 }
 0xbda   :  { %5012 = vadd.xlane.f32.xlu2 %v5011_v19  ;;  %4932 = vadd.xlane.f32.xlu0 %v4931_v0 }
 0xbdb   :  { %4896 = vmatmul.bf16.gmra.mxu2 %v4795_v5  ;;  %v4764_v22 = vpop.f32.mrf.mxu1 }
 0xbdc   :  { %v4765_v55 = vadd.f32 %v8583_v57, %v4764_v22 }
 0xbde   :  { %v4786_v44 = vmax.f32 %v4765_v55, 0.0 }
 0xbe3   :  { %v4766_v2 = vpop.f32.mrf.mxu1 }
 0xbe4   :  { %v4767_v56 = vadd.f32 %v8583_v57, %v4766_v2 }
 0xbe6   :  { %v4787_v40 = vmax.f32 %v4767_v56, 0.0 }
 0xbe8   :  { %v4796_v21 = vpack.c.bf16 %v4787_v40, %v4786_v44 }
 0xbea   :  { %4901 = vmatmul.bf16.vlgmr.msrb.gmra.mxu3 %v4796_v21 }
 0xbfb   :  { %v4769_v36 = vpop.f32.mrf.mxu1 }
 0xbfc   :  { %v4770_v42 = vadd.f32 %v8583_v57, %v4769_v36 }
 0xbfe   :  { %v4788_v53 = vmax.f32 %v4770_v42, 0.0 }
 0xc03   :  { %v4771_v52 = vpop.f32.mrf.mxu1 }
 0xc04   :  { %v4772_v15 = vadd.f32 %v8583_v57, %v4771_v52 }
 0xc06   :  { %v4789_v17 = vmax.f32 %v4772_v15, 0.0 }
 0xc08   :  { %v4797_v35 = vpack.c.bf16 %v4789_v17, %v4788_v53 }
 0xc0a   :  { %4906 = vmatmul.bf16.gmra.mxu3 %v4797_v35 }
 0xc1d   :  { %v4877_v39 = vpop.f32.mrf.mxu2 }
 0xc1e   :  { %v4878_v59 = vadd.f32 %v8658_v8, %v4877_v39 }
 0xc20   :  { %v8686_v29 = vadd.f32 %v4878_v59, %v8404_v50 }
 0xc22   :  { %v4934_v45 = vsel %vm90_vm0, %v8686_v29, 0.0  ;;  %v4994_v58 = vmul.f32 %v8686_v29, %v8686_v29 }
 0xc23   :  { %4935 = vadd.xlane.f32.xlu2 %v4934_v45 }
 0xc24   :  { %v5014_v12 = vsel %vm90_vm0, %v4994_v58, 0.0 }
 0xc25   :  { %v4879_v57 = vpop.f32.mrf.mxu2  ;;  %5015 = vadd.xlane.f32.xlu1 %v5014_v12 }
 0xc26   :  { %v4880_v7 = vadd.f32 %v8658_v8, %v4879_v57 }
 0xc28   :  { %v8695_v32 = vadd.f32 %v4880_v7, %v8407_v3 }
 0xc2a   :  { %v4995_v50 = vmul.f32 %v8695_v32, %v8695_v32  ;;  %v4937_v10 = vsel %vm90_vm0, %v8695_v32, 0.0 }
 0xc2c   :  { %v5017_v30 = vsel %vm90_vm0, %v4995_v50, 0.0 }
 0xc2d   :  { %5018 = vadd.xlane.f32.xlu0 %v5017_v30  ;;  %4938 = vadd.xlane.f32.xlu1 %v4937_v10  ;;  %v4882_v20 = vpop.f32.mrf.mxu2 }
 0xc2e   :  { %v4883_v4 = vadd.f32 %v8658_v8, %v4882_v20 }
 0xc30   :  { %v8704_v6 = vadd.f32 %v4883_v4, %v8476_v49 }
 0xc32   :  { %v4996_v3 = vmul.f32 %v8704_v6, %v8704_v6  ;;  %v4940_v38 = vsel %vm90_vm0, %v8704_v6, 0.0 }
 0xc34   :  { %v5020_v23 = vsel %vm90_vm0, %v4996_v3, 0.0 }
 0xc35   :  { %4941 = vadd.xlane.f32.xlu0 %v4940_v38  ;;  %v4884_v11 = vpop.f32.mrf.mxu2  ;;  %5021 = vadd.xlane.f32.xlu2 %v5020_v23 }
 0xc36   :  { %v4885_v48 = vadd.f32 %v8658_v8, %v4884_v11  ;;  %v8761_v11 = vld [vmem:[%s8967_s5 + $0x6] ss:$0 sm:$0xff] }
 0xc38   :  { %v8713_v37 = vadd.f32 %v4885_v48, %v8479_v54 }
 0xc3a   :  { %v4997_v49 = vmul.f32 %v8713_v37, %v8713_v37  ;;  %v4943_v25 = vsel %vm90_vm0, %v8713_v37, 0.0 }
 0xc3c   :  { %v5023_v24 = vsel %vm90_vm0, %v4997_v49, 0.0 }
 0xc3d   :  { %4944 = vadd.xlane.f32.xlu2 %v4943_v25  ;;  %5024 = vadd.xlane.f32.xlu1 %v5023_v24  ;;  %v4887_v51 = vpop.f32.mrf.mxu2  ;;  %v8769_v24 = vld [vmem:[%s8967_s5 + $0x7] ss:$0 sm:$0xff]  ;;  %s6056_s5 = smov [#allocation5]  }
 0xc3e   :  { %v4888_v47 = vadd.f32 %v8658_v8, %v4887_v51  ;;  %s5366_s8 = sshll.u32 %s6056_s5, 4  ;;  %s5367_s8 = int_to_ptr.vmem [resolvable:$true] %s5366_s8 }
 0xc40   :  { %v8722_v41 = vadd.f32 %v4888_v47, %v8539_v34 }
 0xc42   :  { %v4998_v54 = vmul.f32 %v8722_v41, %v8722_v41  ;;  %v4946_v28 = vsel %vm90_vm0, %v8722_v41, 0.0 }
 0xc43   :  { %v4930_v18 = vpop.xlane.xlu1 %4929 }
 0xc44   :  { %v4976_v1 = vmul.f32 %v4930_v18, %v8221_v62  ;;  %v5026_v14 = vsel %vm90_vm0, %v4998_v54, 0.0 }
 0xc45   :  { %v5010_v63 = vpop.xlane.xlu0 %5009  ;;  %v4889_v19 = vpop.f32.mrf.mxu2  ;;  %5027 = vadd.xlane.f32.xlu0 %v5026_v14  ;;  %4947 = vadd.xlane.f32.xlu1 %v4946_v28 }
 0xc46   :  { %v5072_v5 = vmul.f32 %v4976_v1, %v4976_v1  ;;  %v5056_v0 = vmul.f32 %v5010_v63, %v8221_v62  ;;  %v4890_v34 = vadd.f32 %v8658_v8, %v4889_v19  ;;  %v5104_v23 = vsub.f32 %v8662_v27, %v4976_v1 }
 0xc48   :  { %v5088_v22 = vsub.f32 %v5056_v0, %v5072_v5  ;;  %v8733_v55 = vadd.f32 %v4890_v34, %v8548_v46 }
 0xc4a   :  { %v5120_v2 = vadd.f32 1e-05, %v5088_v22  ;;  %v4999_v56 = vmul.f32 %v8733_v55, %v8733_v55  ;;  %v4949_v21 = vsel %vm90_vm0, %v8733_v55, 0.0 }
 0xc4c   :  { %5941 = vrsqrt.f32 %v5120_v2  ;;  %v5029_v40 = vsel %vm90_vm0, %v4999_v56, 0.0  ;;  %vm5142_vm8 = vweird.f32 %v5120_v2 }
 0xc4d   :  { %v5013_v44 = vpop.xlane.xlu2 %5012  ;;  %v4933_v36 = vpop.xlane.xlu0 %4932  ;;  %5030 = vadd.xlane.f32.xlu2 %v5029_v40  ;;  %4950 = vadd.xlane.f32.xlu0 %v4949_v21 }
 0xc4e   :  { %v4892_v42 = vpop.f32.mrf.mxu2  ;;  %v4977_v52 = vmul.f32 %v4933_v36, %v8221_v62  ;;  %v5057_v15 = vmul.f32 %v5013_v44, %v8221_v62 }
 0xc4f   :  { %v4893_v46 = vadd.f32 %v8658_v8, %v4892_v42 }
 0xc50   :  { %v5073_v53 = vmul.f32 %v4977_v52, %v4977_v52  ;;  %v5105_v22 = vsub.f32 %v8672_v26, %v4977_v52 }
 0xc51   :  { %v8744_v17 = vadd.f32 %v4893_v46, %v8586_v61 }
 0xc52   :  { %v5942_v35 = vpop.eup %5941  ;;  %v5089_v39 = vsub.f32 %v5057_v15, %v5073_v53 }
 0xc53   :  { %v5137_v59 = vmul.f32 %v5942_v35, %v5120_v2  ;;  %v5000_v45 = vmul.f32 %v8744_v17, %v8744_v17  ;;  %v4952_v7 = vsel %vm90_vm0, %v8744_v17, 0.0  ;;  %vm5143_vm7 = vweird.f32 %v5942_v35 }
 0xc54   :  { %v5121_v58 = vadd.f32 1e-05, %v5089_v39  ;;  %vm5144_vm9 = vmor %vm5142_vm8, %vm5143_vm7 }
 0xc55   :  { %v5138_v12 = vmul.f32 %v5942_v35, %v5137_v59  ;;  %v5032_v57 = vsel %vm90_vm0, %v5000_v45, 0.0  ;;  %4953 = vadd.xlane.f32.xlu2 %v4952_v7 }
 0xc56   :  { %5943 = vrsqrt.f32 %v5121_v58  ;;  %v4894_v50 = vpop.f32.mrf.mxu2  ;;  %5033 = vadd.xlane.f32.xlu1 %v5032_v57  ;;  %vm5152_vm11 = vweird.f32 %v5121_v58 }
 0xc57   :  { %v5139_v30 = vmul.f32 0.5, %v5138_v12  ;;  %v4895_v61 = vadd.f32 %v8658_v8, %v4894_v50 }
 0xc59   :  { %v5140_v10 = vsub.f32 1.5, %v5139_v30  ;;  %v8753_v20 = vadd.f32 %v4895_v61, %v8578_v9 }
 0xc5b   :  { %v5141_v4 = vmul.f32 %v5942_v35, %v5140_v10  ;;  %v5001_v3 = vmul.f32 %v8753_v20, %v8753_v20  ;;  %v4955_v9 = vsel %vm90_vm0, %v8753_v20, 0.0 }
 0xc5c   :  { %v5944_v38 = vpop.eup %5943 }
 0xc5d   :  { %v5145_v48 = vsel %vm5144_vm9, %v5942_v35, %v5141_v4  ;;  %v5147_v49 = vmul.f32 %v5944_v38, %v5121_v58  ;;  %v5035_v25 = vsel %vm90_vm0, %v5001_v3, 0.0  ;;  %vm5153_vm10 = vweird.f32 %v5944_v38 }
 0xc5e   :  { %v5296_v51 = vmul.f32 %v5145_v48, %v5104_v23  ;;  %5036 = vadd.xlane.f32.xlu0 %v5035_v25  ;;  %4956 = vadd.xlane.f32.xlu1 %v4955_v9  ;;  %v4897_v27 = vpop.f32.mrf.mxu2  ;;  %vm5154_vm12 = vmor %vm5152_vm11, %vm5153_vm10 }
 0xc5f   :  { %v5148_v47 = vmul.f32 %v5944_v38, %v5147_v49  ;;  %v4898_v18 = vadd.f32 %v8658_v8, %v4897_v27 }
 0xc60   :  { %v5313_v54 = vmul.f32 %v8761_v11, %v5296_v51 }
 0xc61   :  { %v5149_v1 = vmul.f32 0.5, %v5148_v47  ;;  %v8774_v14 = vadd.f32 %v4898_v18, %v8609_v31 }
 0xc62   :  { %v5330_v28 = vadd.f32 %v8769_v24, %v5313_v54 }
 0xc63   :  { %v5150_v63 = vsub.f32 1.5, %v5149_v1  ;;  %v5002_v5 = vmul.f32 %v8774_v14, %v8774_v14  ;;  %v4958_v34 = vsel %vm90_vm0, %v8774_v14, 0.0 }
 0xc64   :  { %5346 = vst.msk [vmem:[#allocation5] sm:$0xff] %vm90_vm0, %v5330_v28 }
 0xc65   :  { %v5151_v19 = vmul.f32 %v5944_v38, %v5150_v63  ;;  %v5038_v0 = vsel %vm90_vm0, %v5002_v5, 0.0 }
 0xc66   :  { %v4899_v31 = vpop.f32.mrf.mxu2  ;;  %5039 = vadd.xlane.f32.xlu2 %v5038_v0  ;;  %4959 = vadd.xlane.f32.xlu0 %v4958_v34 }
 0xc67   :  { %v5155_v2 = vsel %vm5154_vm12, %v5944_v38, %v5151_v19  ;;  %v4900_v56 = vadd.f32 %v8658_v8, %v4899_v31 }
 0xc68   :  { %v5297_v44 = vmul.f32 %v5155_v2, %v5105_v22 }
 0xc69   :  { %v8786_v40 = vadd.f32 %v4900_v56, %v8606_v43 }
 0xc6a   :  { %v5314_v21 = vmul.f32 %v8761_v11, %v5297_v44 }
 0xc6b   :  { %v5003_v36 = vmul.f32 %v8786_v40, %v8786_v40  ;;  %v4961_v52 = vsel %vm90_vm0, %v8786_v40, 0.0 }
 0xc6c   :  { %v5331_v42 = vadd.f32 %v8769_v24, %v5314_v21 }
 0xc6d   :  { %v5041_v26 = vsel %vm90_vm0, %v5003_v36, 0.0  ;;  %v4902_v46 = vpop.f32.mrf.mxu3 }
 0xc6e   :  { %5347 = vst.msk [vmem:[#allocation5 + $0x8] sm:$0xff] %vm90_vm0, %v5331_v42  ;;  %5042 = vadd.xlane.f32.xlu1 %v5041_v26  ;;  %4962 = vadd.xlane.f32.xlu2 %v4961_v52  ;;  %v4903_v43 = vadd.f32 %v8658_v8, %v4902_v46 }
 0xc70   :  { %v8798_v15 = vadd.f32 %v4903_v43, %v8628_v13 }
 0xc72   :  { %v5004_v53 = vmul.f32 %v8798_v15, %v8798_v15  ;;  %v4964_v39 = vsel %vm90_vm0, %v8798_v15, 0.0 }
 0xc74   :  { %v5044_v35 = vsel %vm90_vm0, %v5004_v53, 0.0 }
 0xc75   :  { %v4904_v59 = vpop.f32.mrf.mxu3  ;;  %5045 = vadd.xlane.f32.xlu0 %v5044_v35 }
 0xc76   :  { %4965 = vadd.xlane.f32.xlu1 %v4964_v39  ;;  %v4905_v45 = vadd.f32 %v8658_v8, %v4904_v59 }
 0xc78   :  { %v8807_v58 = vadd.f32 %v4905_v45, %v8624_v16 }
 0xc7a   :  { %v4967_v13 = vsel %vm90_vm0, %v8807_v58, 0.0  ;;  %v5005_v16 = vmul.f32 %v8807_v58, %v8807_v58 }
 0xc7c   :  { %v5047_v49 = vsel %vm90_vm0, %v5005_v16, 0.0 }
 0xc7d   :  { %4968 = vadd.xlane.f32.xlu0 %v4967_v13 }
 0xc8d   :  { %v4907_v12 = vpop.f32.mrf.mxu3 }
 0xc8e   :  { %v4908_v57 = vadd.f32 %v8658_v8, %v4907_v12 }
 0xc90   :  { %v8813_v7 = vadd.f32 %v4908_v57, %v8639_v60 }
 0xc92   :  { %v4970_v50 = vsel %vm90_vm0, %v8813_v7, 0.0  ;;  %v5006_v51 = vmul.f32 %v8813_v7, %v8813_v7 }
 0xc93   :  { %4971 = vadd.xlane.f32.xlu2 %v4970_v50 }
 0xc94   :  { %v5050_v54 = vsel %vm90_vm0, %v5006_v51, 0.0 }
 0xc95   :  { %v4909_v30 = vpop.f32.mrf.mxu3 }
 0xc96   :  { %v4910_v61 = vadd.f32 %v8658_v8, %v4909_v30  ;;  %v4936_v10 = vpop.xlane.xlu2 %4935 }
 0xc97   :  { %v4978_v3 = vmul.f32 %v4936_v10, %v8221_v62 }
 0xc98   :  { %v8821_v4 = vadd.f32 %v4910_v61, %v8642_v33  ;;  %v5016_v38 = vpop.xlane.xlu1 %5015 }
 0xc99   :  { %v5074_v23 = vmul.f32 %v4978_v3, %v4978_v3  ;;  %v5058_v60 = vmul.f32 %v5016_v38, %v8221_v62  ;;  %v5106_v46 = vsub.f32 %v8686_v29, %v4978_v3 }
 0xc9a   :  { %v4973_v48 = vsel %vm90_vm0, %v8821_v4, 0.0  ;;  %v5007_v8 = vmul.f32 %v8821_v4, %v8821_v4 }
 0xc9b   :  { %4974 = vadd.xlane.f32.xlu1 %v4973_v48  ;;  %5048 = vadd.xlane.f32.xlu2 %v5047_v49  ;;  %v5090_v25 = vsub.f32 %v5058_v60, %v5074_v23 }
 0xc9c   :  { %v5053_v33 = vsel %vm90_vm0, %v5007_v8, 0.0 }
 0xc9d   :  { %v5122_v9 = vadd.f32 1e-05, %v5090_v25  ;;  %5054 = vadd.xlane.f32.xlu0 %v5053_v33 }
 0xc9f   :  { %5945 = vrsqrt.f32 %v5122_v9  ;;  %vm5162_vm14 = vweird.f32 %v5122_v9 }
 0xca0   :  { %v4939_v27 = vpop.xlane.xlu1 %4938  ;;  %v5019_v47 = vpop.xlane.xlu0 %5018 }
 0xca1   :  { %v4979_v18 = vmul.f32 %v4939_v27, %v8221_v62  ;;  %v5059_v28 = vmul.f32 %v5019_v47, %v8221_v62 }
 0xca3   :  { %5051 = vadd.xlane.f32.xlu1 %v5050_v54  ;;  %v5075_v1 = vmul.f32 %v4979_v18, %v4979_v18  ;;  %v5107_v48 = vsub.f32 %v8695_v32, %v4979_v18 }
 0xca5   :  { %v5946_v63 = vpop.eup %5945  ;;  %v5091_v5 = vsub.f32 %v5059_v28, %v5075_v1 }
 0xca6   :  { %v5157_v19 = vmul.f32 %v5946_v63, %v5122_v9  ;;  %vm5163_vm13 = vweird.f32 %v5946_v63 }
 0xca7   :  { %v5123_v0 = vadd.f32 1e-05, %v5091_v5  ;;  %vm5164_vm15 = vmor %vm5162_vm14, %vm5163_vm13 }
 0xca8   :  { %v5158_v34 = vmul.f32 %v5946_v63, %v5157_v19  ;;  %v4942_v22 = vpop.xlane.xlu0 %4941  ;;  %v5022_v31 = vpop.xlane.xlu2 %5021 }
 0xca9   :  { %5947 = vrsqrt.f32 %v5123_v0  ;;  %v8837_v2 = vmul.f32 %v4942_v22, %v8221_v62  ;;  %v5060_v44 = vmul.f32 %v5022_v31, %v8221_v62  ;;  %vm5172_vm2 = vweird.f32 %v5123_v0 }
 0xcaa   :  { %v5159_v56 = vmul.f32 0.5, %v5158_v34 }
 0xcab   :  { %v5076_v21 = vmul.f32 %v8837_v2, %v8837_v2  ;;  %v5108_v19 = vsub.f32 %v8704_v6, %v8837_v2 }
 0xcac   :  { %v5160_v36 = vsub.f32 1.5, %v5159_v56 }
 0xcad   :  { %v5092_v42 = vsub.f32 %v5060_v44, %v5076_v21 }
 0xcae   :  { %v5161_v26 = vmul.f32 %v5946_v63, %v5160_v36 }
 0xcaf   :  { %v5948_v52 = vpop.eup %5947  ;;  %v5124_v43 = vadd.f32 1e-05, %v5092_v42 }
 0xcb0   :  { %v5165_v53 = vsel %vm5164_vm15, %v5946_v63, %v5161_v26  ;;  %v5167_v35 = vmul.f32 %v5948_v52, %v5123_v0  ;;  %v4945_v59 = vpop.xlane.xlu2 %4944  ;;  %v5025_v45 = vpop.xlane.xlu1 %5024  ;;  %vm5173_vm1 = vweird.f32 %v5948_v52 }
 0xcb1   :  { %v5298_v39 = vmul.f32 %v5165_v53, %v5106_v46  ;;  %5949 = vrsqrt.f32 %v5124_v43  ;;  %v8844_v12 = vmul.f32 %v4945_v59, %v8221_v62  ;;  %v5061_v29 = vmul.f32 %v5025_v45, %v8221_v62  ;;  %vm5174_vm3 = vmor %vm5172_vm2, %vm5173_vm1 }
 0xcb2   :  { %v5168_v13 = vmul.f32 %v5948_v52, %v5167_v35  ;;  %vm5182_vm5 = vweird.f32 %v5124_v43 }
 0xcb3   :  { %v5315_v57 = vmul.f32 %v8761_v11, %v5298_v39  ;;  %v5077_v30 = vmul.f32 %v8844_v12, %v8844_v12 }
 0xcb4   :  { %v5169_v50 = vmul.f32 0.5, %v5168_v13  ;;  %v5109_v13 = vsub.f32 %v8713_v37, %v8844_v12 }
 0xcb5   :  { %v5332_v61 = vadd.f32 %v8769_v24, %v5315_v57  ;;  %v5093_v10 = vsub.f32 %v5061_v29, %v5077_v30 }
 0xcb6   :  { %v5170_v16 = vsub.f32 1.5, %v5169_v50 }
 0xcb7   :  { %v5950_v3 = vpop.eup %5949  ;;  %5348 = vst.msk [vmem:[#allocation5 + $0x10] sm:$0xff] %vm90_vm0, %v5332_v61  ;;  %v5125_v60 = vadd.f32 1e-05, %v5093_v10 }
 0xcb8   :  { %v5171_v38 = vmul.f32 %v5948_v52, %v5170_v16  ;;  %v5177_v23 = vmul.f32 %v5950_v3, %v5124_v43  ;;  %v4948_v49 = vpop.xlane.xlu1 %4947  ;;  %v5028_v8 = vpop.xlane.xlu0 %5027  ;;  %vm5183_vm4 = vweird.f32 %v5950_v3 }
 0xcb9   :  { %5951 = vrsqrt.f32 %v5125_v60  ;;  %v8854_v51 = vmul.f32 %v4948_v49, %v8221_v62  ;;  %v5062_v1 = vmul.f32 %v5028_v8, %v8221_v62  ;;  %vm5184_vm6 = vmor %vm5182_vm5, %vm5183_vm4  ;;  %vm5192_vm8 = vweird.f32 %v5125_v60 }
 0xcba   :  { %v5175_v25 = vsel %vm5174_vm3, %v5948_v52, %v5171_v38  ;;  %v5178_v33 = vmul.f32 %v5950_v3, %v5177_v23 }
 0xcbb   :  { %v5299_v9 = vmul.f32 %v5175_v25, %v5107_v48  ;;  %v5078_v54 = vmul.f32 %v8854_v51, %v8854_v51 }
 0xcbc   :  { %v5179_v27 = vmul.f32 0.5, %v5178_v33 }
 0xcbd   :  { %v5316_v47 = vmul.f32 %v8761_v11, %v5299_v9  ;;  %v5094_v18 = vsub.f32 %v5062_v1, %v5078_v54 }
 0xcbe   :  { %v5180_v28 = vsub.f32 1.5, %v5179_v27  ;;  %v5110_v27 = vsub.f32 %v8722_v41, %v8854_v51 }
 0xcbf   :  { %v5333_v32 = vadd.f32 %v8769_v24, %v5316_v47  ;;  %v5952_v63 = vpop.eup %5951  ;;  %v5126_v34 = vadd.f32 1e-05, %v5094_v18 }
 0xcc0   :  { %v5181_v5 = vmul.f32 %v5950_v3, %v5180_v28  ;;  %v5187_v0 = vmul.f32 %v5952_v63, %v5125_v60  ;;  %v5031_v22 = vpop.xlane.xlu2 %5030  ;;  %v4951_v31 = vpop.xlane.xlu0 %4950  ;;  %vm5193_vm7 = vweird.f32 %v5952_v63 }
 0xcc1   :  { %5349 = vst.msk [vmem:[#allocation5 + $0x18] sm:$0xff] %vm90_vm0, %v5333_v32  ;;  %v8865_v44 = vmul.f32 %v4951_v31, %v8221_v62  ;;  %5953 = vrsqrt.f32 %v5126_v34  ;;  %v5063_v42 = vmul.f32 %v5031_v22, %v8221_v62  ;;  %vm5194_vm9 = vmor %vm5192_vm8, %vm5193_vm7  ;;  %vm5202_vm11 = vweird.f32 %v5126_v34 }
 0xcc2   :  { %v5185_v56 = vsel %vm5184_vm6, %v5950_v3, %v5181_v5  ;;  %v5188_v36 = vmul.f32 %v5952_v63, %v5187_v0 }
 0xcc3   :  { %v5300_v21 = vmul.f32 %v5185_v56, %v5108_v19  ;;  %v5079_v26 = vmul.f32 %v8865_v44, %v8865_v44  ;;  %v5111_v56 = vsub.f32 %v8733_v55, %v8865_v44 }
 0xcc4   :  { %v5189_v6 = vmul.f32 0.5, %v5188_v36 }
 0xcc5   :  { %v5317_v52 = vmul.f32 %v8761_v11, %v5300_v21  ;;  %v5095_v2 = vsub.f32 %v5063_v42, %v5079_v26 }
 0xcc6   :  { %v5190_v43 = vsub.f32 1.5, %v5189_v6 }
 0xcc7   :  { %v5334_v46 = vadd.f32 %v8769_v24, %v5317_v52  ;;  %v5127_v53 = vadd.f32 1e-05, %v5095_v2  ;;  %v5954_v35 = vpop.eup %5953 }
 0xcc8   :  { %v5191_v39 = vmul.f32 %v5952_v63, %v5190_v43  ;;  %v4954_v45 = vpop.xlane.xlu2 %4953  ;;  %v5197_v57 = vmul.f32 %v5954_v35, %v5126_v34  ;;  %vm5203_vm10 = vweird.f32 %v5954_v35 }
 0xcc9   :  { %5350 = vst.msk [vmem:[#allocation5 + $0x20] sm:$0xff] %vm90_vm0, %v5334_v46  ;;  %v5034_v59 = vpop.xlane.xlu1 %5033  ;;  %5955 = vrsqrt.f32 %v5127_v53  ;;  %v8876_v30 = vmul.f32 %v4954_v45, %v8221_v62  ;;  %vm5204_vm12 = vmor %vm5202_vm11, %vm5203_vm10  ;;  %vm5212_vm14 = vweird.f32 %v5127_v53 }
 0xcca   :  { %v5195_v50 = vsel %vm5194_vm9, %v5952_v63, %v5191_v39  ;;  %v5198_v61 = vmul.f32 %v5954_v35, %v5197_v57  ;;  %v5064_v16 = vmul.f32 %v5034_v59, %v8221_v62 }
 0xccb   :  { %v5301_v29 = vmul.f32 %v5195_v50, %v5109_v13  ;;  %v5080_v10 = vmul.f32 %v8876_v30, %v8876_v30 }
 0xccc   :  { %v5199_v38 = vmul.f32 0.5, %v5198_v61 }
 0xccd   :  { %v5318_v3 = vmul.f32 %v8761_v11, %v5301_v29  ;;  %v5096_v23 = vsub.f32 %v5064_v16, %v5080_v10  ;;  %v5112_v29 = vsub.f32 %v8744_v17, %v8876_v30 }
 0xcce   :  { %v5200_v12 = vsub.f32 1.5, %v5199_v38 }
 0xccf   :  { %v5956_v60 = vpop.eup %5955  ;;  %v5335_v37 = vadd.f32 %v8769_v24, %v5318_v3  ;;  %v5128_v49 = vadd.f32 1e-05, %v5096_v23 }
 0xcd0   :  { %v5207_v48 = vmul.f32 %v5956_v60, %v5127_v53  ;;  %v5201_v33 = vmul.f32 %v5954_v35, %v5200_v12  ;;  %vm5213_vm13 = vweird.f32 %v5956_v60 }
 0xcd1   :  { %v4957_v8 = vpop.xlane.xlu1 %4956  ;;  %v5037_v25 = vpop.xlane.xlu0 %5036  ;;  %5351 = vst.msk [vmem:[#allocation5 + $0x28] sm:$0xff] %vm90_vm0, %v5335_v37  ;;  %5957 = vrsqrt.f32 %v5128_v49  ;;  %vm5214_vm15 = vmor %vm5212_vm14, %vm5213_vm13  ;;  %vm5222_vm2 = vweird.f32 %v5128_v49 }
 0xcd2   :  { %v8885_v9 = vmul.f32 %v4957_v8, %v8221_v62  ;;  %v5208_v47 = vmul.f32 %v5956_v60, %v5207_v48  ;;  %v5205_v54 = vsel %vm5204_vm12, %v5954_v35, %v5201_v33  ;;  %v5065_v28 = vmul.f32 %v5037_v25, %v8221_v62 }
 0xcd3   :  { %v5302_v32 = vmul.f32 %v5205_v54, %v5110_v27 }
 0xcd4   :  { %v5081_v1 = vmul.f32 %v8885_v9, %v8885_v9  ;;  %v5209_v18 = vmul.f32 0.5, %v5208_v47  ;;  %v5113_v25 = vsub.f32 %v8753_v20, %v8885_v9 }
 0xcd5   :  { %v5319_v5 = vmul.f32 %v8761_v11, %v5302_v32 }
 0xcd6   :  { %v5097_v63 = vsub.f32 %v5065_v28, %v5081_v1  ;;  %v5210_v19 = vsub.f32 1.5, %v5209_v18 }
 0xcd7   :  { %v5958_v34 = vpop.eup %5957  ;;  %v5336_v41 = vadd.f32 %v8769_v24, %v5319_v5 }
 0xcd8   :  { %v5129_v0 = vadd.f32 1e-05, %v5097_v63  ;;  %v5211_v51 = vmul.f32 %v5956_v60, %v5210_v19  ;;  %v5217_v21 = vmul.f32 %v5958_v34, %v5128_v49  ;;  %vm5223_vm1 = vweird.f32 %v5958_v34 }
 0xcd9   :  { %v5040_v22 = vpop.xlane.xlu2 %5039  ;;  %v4960_v31 = vpop.xlane.xlu0 %4959  ;;  %5352 = vst.msk [vmem:[#allocation5 + $0x30] sm:$0xff] %vm90_vm0, %v5336_v41  ;;  %vm5224_vm3 = vmor %vm5222_vm2, %vm5223_vm1 }
 0xcda   :  { %5959 = vrsqrt.f32 %v5129_v0  ;;  %v5215_v36 = vsel %vm5214_vm15, %v5956_v60, %v5211_v51  ;;  %v8898_v42 = vmul.f32 %v4960_v31, %v8221_v62  ;;  %v5218_v52 = vmul.f32 %v5958_v34, %v5217_v21 }
 0xcdb   :  { %v5303_v26 = vmul.f32 %v5215_v36, %v5111_v56  ;;  %v5066_v6 = vmul.f32 %v5040_v22, %v8221_v62  ;;  %vm5232_vm5 = vweird.f32 %v5129_v0 }
 0xcdc   :  { %v5082_v2 = vmul.f32 %v8898_v42, %v8898_v42  ;;  %v5219_v43 = vmul.f32 0.5, %v5218_v52  ;;  %v5114_v22 = vsub.f32 %v8774_v14, %v8898_v42 }
 0xcdd   :  { %v5320_v46 = vmul.f32 %v8761_v11, %v5303_v26 }
 0xcde   :  { %v5098_v55 = vsub.f32 %v5066_v6, %v5082_v2  ;;  %v5220_v35 = vsub.f32 1.5, %v5219_v43 }
 0xcdf   :  { %v5337_v53 = vadd.f32 %v8769_v24, %v5320_v46 }
 0xce0   :  { %v5960_v44 = vpop.eup %5959  ;;  %v5130_v59 = vadd.f32 1e-05, %v5098_v55  ;;  %v5221_v57 = vmul.f32 %v5958_v34, %v5220_v35 }
 0xce1   :  { %v5227_v39 = vmul.f32 %v5960_v44, %v5129_v0  ;;  %v5043_v45 = vpop.xlane.xlu1 %5042  ;;  %v4963_v13 = vpop.xlane.xlu2 %4962  ;;  %5353 = vst.msk [vmem:[#allocation5 + $0x38] sm:$0xff] %vm90_vm0, %v5337_v53  ;;  %vm5233_vm4 = vweird.f32 %v5960_v44 }
 0xce2   :  { %v8907_v50 = vmul.f32 %v4963_v13, %v8221_v62  ;;  %5961 = vrsqrt.f32 %v5130_v59  ;;  %v5225_v16 = vsel %vm5224_vm3, %v5958_v34, %v5221_v57  ;;  %v5067_v10 = vmul.f32 %v5043_v45, %v8221_v62  ;;  %vm5234_vm6 = vmor %vm5232_vm5, %vm5233_vm4 }
 0xce3   :  { %v5228_v61 = vmul.f32 %v5960_v44, %v5227_v39  ;;  %v5304_v38 = vmul.f32 %v5225_v16, %v5112_v29  ;;  %vm5242_vm8 = vweird.f32 %v5130_v59 }
 0xce4   :  { %v5083_v3 = vmul.f32 %v8907_v50, %v8907_v50  ;;  %v5115_v43 = vsub.f32 %v8786_v40, %v8907_v50 }
 0xce5   :  { %v5229_v23 = vmul.f32 0.5, %v5228_v61  ;;  %v5321_v37 = vmul.f32 %v8761_v11, %v5304_v38 }
 0xce6   :  { %v5099_v60 = vsub.f32 %v5067_v10, %v5083_v3 }
 0xce7   :  { %v5230_v12 = vsub.f32 1.5, %v5229_v23  ;;  %v5338_v17 = vadd.f32 %v8769_v24, %v5321_v37 }
 0xce8   :  { %v5131_v48 = vadd.f32 1e-05, %v5099_v60  ;;  %v5962_v49 = vpop.eup %5961  ;;  %v5046_v27 = vpop.xlane.xlu0 %5045 }
 0xce9   :  { %v5231_v30 = vmul.f32 %v5960_v44, %v5230_v12  ;;  %v4966_v8 = vpop.xlane.xlu1 %4965  ;;  %v5237_v33 = vmul.f32 %v5962_v49, %v5130_v59  ;;  %5354 = vst.msk [vmem:[#allocation5 + $0x40] sm:$0xff] %vm90_vm0, %v5338_v17  ;;  %v5068_v18 = vmul.f32 %v5046_v27, %v8221_v62  ;;  %vm5243_vm7 = vweird.f32 %v5962_v49 }
 0xcea   :  { %5963 = vrsqrt.f32 %v5131_v48  ;;  %v4988_v54 = vmul.f32 %v4966_v8, %v8221_v62  ;;  %vm5244_vm9 = vmor %vm5242_vm8, %vm5243_vm7  ;;  %vm5252_vm11 = vweird.f32 %v5131_v48 }
 0xceb   :  { %v5235_v47 = vsel %vm5234_vm6, %v5960_v44, %v5231_v30  ;;  %v5238_v28 = vmul.f32 %v5962_v49, %v5237_v33 }
 0xcec   :  { %v5305_v1 = vmul.f32 %v5235_v47, %v5113_v25  ;;  %v5084_v32 = vmul.f32 %v4988_v54, %v4988_v54  ;;  %v5116_v40 = vsub.f32 %v8798_v15, %v4988_v54 }
 0xced   :  { %v5239_v5 = vmul.f32 0.5, %v5238_v28 }
 0xcee   :  { %v5322_v63 = vmul.f32 %v8761_v11, %v5305_v1  ;;  %v5100_v19 = vsub.f32 %v5068_v18, %v5084_v32 }
 0xcef   :  { %v5240_v9 = vsub.f32 1.5, %v5239_v5 }
 0xcf0   :  { %v5964_v0 = vpop.eup %5963  ;;  %v5339_v20 = vadd.f32 %v8769_v24, %v5322_v63  ;;  %v5132_v41 = vadd.f32 1e-05, %v5100_v19  ;;  %v4969_v61 = vpop.xlane.xlu0 %4968 }
 0xcf1   :  { %v5247_v34 = vmul.f32 %v5964_v0, %v5131_v48  ;;  %v5241_v51 = vmul.f32 %v5962_v49, %v5240_v9  ;;  %vm5253_vm10 = vweird.f32 %v5964_v0  ;;  %v4989_v10 = vmul.f32 %v4969_v61, %v8221_v62 }
 0xcf2   :  { %5355 = vst.msk [vmem:[#allocation5 + $0x48] sm:$0xff] %vm90_vm0, %v5339_v20  ;;  %5965 = vrsqrt.f32 %v5132_v41  ;;  %vm5254_vm12 = vmor %vm5252_vm11, %vm5253_vm10  ;;  %vm5262_vm14 = vweird.f32 %v5132_v41 }
 0xcf3   :  { %v5248_v31 = vmul.f32 %v5964_v0, %v5247_v34  ;;  %v5245_v56 = vsel %vm5244_vm9, %v5962_v49, %v5241_v51  ;;  %v5085_v23 = vmul.f32 %v4989_v10, %v4989_v10 }
 0xcf4   :  { %v5306_v21 = vmul.f32 %v5245_v56, %v5114_v22 }
 0xcf5   :  { %v5249_v36 = vmul.f32 0.5, %v5248_v31 }
 0xcf6   :  { %v5323_v26 = vmul.f32 %v8761_v11, %v5306_v21 }
 0xcf7   :  { %v5250_v52 = vsub.f32 1.5, %v5249_v36 }
 0xcf8   :  { %v5966_v6 = vpop.eup %5965  ;;  %v5340_v2 = vadd.f32 %v8769_v24, %v5323_v26 }
 0xcf9   :  { %v5251_v46 = vmul.f32 %v5964_v0, %v5250_v52  ;;  %v5257_v14 = vmul.f32 %v5966_v6, %v5132_v41  ;;  %vm5263_vm13 = vweird.f32 %v5966_v6 }
 0xcfa   :  { %5356 = vst.msk [vmem:[#allocation5 + $0x50] sm:$0xff] %vm90_vm0, %v5340_v2  ;;  %vm5264_vm15 = vmor %vm5262_vm14, %vm5263_vm13 }
 0xcfb   :  { %v5255_v42 = vsel %vm5254_vm12, %v5964_v0, %v5251_v46  ;;  %v5258_v44 = vmul.f32 %v5966_v6, %v5257_v14 }
 0xcfc   :  { %v5307_v55 = vmul.f32 %v5255_v42, %v5115_v43 }
 0xcfd   :  { %v5259_v35 = vmul.f32 0.5, %v5258_v44 }
 0xcfe   :  { %v5324_v53 = vmul.f32 %v8761_v11, %v5307_v55 }
 0xcff   :  { %v5260_v59 = vsub.f32 1.5, %v5259_v35 }
 0xd00   :  { %v5341_v39 = vadd.f32 %v8769_v24, %v5324_v53 }
 0xd01   :  { %v5261_v45 = vmul.f32 %v5966_v6, %v5260_v59 }
 0xd02   :  { %5357 = vst.msk [vmem:[#allocation5 + $0x58] sm:$0xff] %vm90_vm0, %v5341_v39 }
 0xd03   :  { %v5265_v13 = vsel %vm5264_vm15, %v5966_v6, %v5261_v45 }
 0xd04   :  { %v5308_v57 = vmul.f32 %v5265_v13, %v5116_v40 }
 0xd06   :  { %v4972_v50 = vpop.xlane.xlu2 %4971  ;;  %v5325_v29 = vmul.f32 %v8761_v11, %v5308_v57 }
 0xd07   :  { %v4990_v17 = vmul.f32 %v4972_v50, %v8221_v62 }
 0xd08   :  { %v5342_v16 = vadd.f32 %v8769_v24, %v5325_v29 }
 0xd09   :  { %v5086_v27 = vmul.f32 %v4990_v17, %v4990_v17  ;;  %v5118_v55 = vsub.f32 %v8813_v7, %v4990_v17 }
 0xd0a   :  { %5358 = vst.msk [vmem:[#allocation5 + $0x60] sm:$0xff] %vm90_vm0, %v5342_v16 }
 0xd0e   :  { %v4975_v3 = vpop.xlane.xlu1 %4974  ;;  %v5049_v38 = vpop.xlane.xlu2 %5048 }
 0xd0f   :  { %v4991_v60 = vmul.f32 %v4975_v3, %v8221_v62  ;;  %v5069_v15 = vmul.f32 %v5049_v38, %v8221_v62 }
 0xd10   :  { %v5055_v48 = vpop.xlane.xlu0 %5054 }
 0xd11   :  { %v5087_v37 = vmul.f32 %v4991_v60, %v4991_v60  ;;  %v5101_v12 = vsub.f32 %v5069_v15, %v5085_v23  ;;  %v5071_v49 = vmul.f32 %v5055_v48, %v8221_v62  ;;  %v5119_v26 = vsub.f32 %v8821_v4, %v4991_v60 }
 0xd13   :  { %v5133_v30 = vadd.f32 1e-05, %v5101_v12  ;;  %v5103_v8 = vsub.f32 %v5071_v49, %v5087_v37 }
 0xd15   :  { %5967 = vrsqrt.f32 %v5133_v30  ;;  %v5135_v25 = vadd.f32 1e-05, %v5103_v8  ;;  %vm5272_vm2 = vweird.f32 %v5133_v30 }
 0xd16   :  { %v5052_v33 = vpop.xlane.xlu1 %5051 }
 0xd17   :  { %v5070_v47 = vmul.f32 %v5052_v33, %v8221_v62  ;;  %5969 = vrsqrt.f32 %v5135_v25  ;;  %v5117_v62 = vsub.f32 %v8807_v58, %v4989_v10  ;;  %vm5292_vm5 = vweird.f32 %v5135_v25 }
 0xd19   :  { %v5102_v54 = vsub.f32 %v5070_v47, %v5086_v27 }
 0xd1b   :  { %v5968_v1 = vpop.eup %5967  ;;  %v5134_v28 = vadd.f32 1e-05, %v5102_v54 }
 0xd1c   :  { %v5267_v32 = vmul.f32 %v5968_v1, %v5133_v30  ;;  %vm5273_vm1 = vweird.f32 %v5968_v1 }
 0xd1d   :  { %5971 = vrsqrt.f32 %v5134_v28  ;;  %v5970_v18 = vpop.eup %5969  ;;  %vm5274_vm3 = vmor %vm5272_vm2, %vm5273_vm1  ;;  %vm5282_vm8 = vweird.f32 %v5134_v28 }
 0xd1e   :  { %v5268_v63 = vmul.f32 %v5968_v1, %v5267_v32  ;;  %v5287_v5 = vmul.f32 %v5970_v18, %v5135_v25  ;;  %vm5293_vm4 = vweird.f32 %v5970_v18 }
 0xd1f   :  { %vm5294_vm6 = vmor %vm5292_vm5, %vm5293_vm4 }
 0xd20   :  { %v5269_v19 = vmul.f32 0.5, %v5268_v63  ;;  %v5288_v0 = vmul.f32 %v5970_v18, %v5287_v5 }
 0xd22   :  { %v5270_v20 = vsub.f32 1.5, %v5269_v19  ;;  %v5289_v34 = vmul.f32 0.5, %v5288_v0 }
 0xd23   :  { %v5972_v9 = vpop.eup %5971 }
 0xd24   :  { %v5271_v41 = vmul.f32 %v5968_v1, %v5270_v20  ;;  %v5277_v51 = vmul.f32 %v5972_v9, %v5134_v28  ;;  %v5290_v22 = vsub.f32 1.5, %v5289_v34  ;;  %vm5283_vm7 = vweird.f32 %v5972_v9 }
 0xd25   :  { %vm5284_vm9 = vmor %vm5282_vm8, %vm5283_vm7 }
 0xd26   :  { %v5275_v31 = vsel %vm5274_vm3, %v5968_v1, %v5271_v41  ;;  %v5278_v56 = vmul.f32 %v5972_v9, %v5277_v51  ;;  %v5291_v36 = vmul.f32 %v5970_v18, %v5290_v22 }
 0xd27   :  { %v5309_v21 = vmul.f32 %v5275_v31, %v5117_v62 }
 0xd28   :  { %v5279_v52 = vmul.f32 0.5, %v5278_v56  ;;  %v5295_v2 = vsel %vm5294_vm6, %v5970_v18, %v5291_v36 }
 0xd29   :  { %v5326_v6 = vmul.f32 %v8761_v11, %v5309_v21  ;;  %v5311_v46 = vmul.f32 %v5295_v2, %v5119_v26 }
 0xd2a   :  { %v5280_v43 = vsub.f32 1.5, %v5279_v52 }
 0xd2b   :  { %v5343_v58 = vadd.f32 %v8769_v24, %v5326_v6  ;;  %v5328_v14 = vmul.f32 %v8761_v11, %v5311_v46 }
 0xd2c   :  { %v5281_v42 = vmul.f32 %v5972_v9, %v5280_v43 }
 0xd2d   :  { %5359 = vst.msk [vmem:[#allocation5 + $0x68] sm:$0xff] %vm90_vm0, %v5343_v58  ;;  %v5345_v4 = vadd.f32 %v8769_v24, %v5328_v14 }
 0xd2e   :  { %v5285_v44 = vsel %vm5284_vm9, %v5972_v9, %v5281_v42 }
 0xd2f   :  { %v5310_v53 = vmul.f32 %v5285_v44, %v5118_v55  ;;  %5361 = vst.msk [vmem:[#allocation5 + $0x78] sm:$0xff] %vm90_vm0, %v5345_v4 }
 0xd31   :  { %v5327_v35 = vmul.f32 %v8761_v11, %v5310_v53 }
 0xd33   :  { %v5344_v39 = vadd.f32 %v8769_v24, %v5327_v35 }
 0xd35   :  { %5360 = vst.msk [vmem:[#allocation5 + $0x70] sm:$0xff] %vm90_vm0, %v5344_v39 }
 0xd36   :  { %5374 = dma.vmem_to_hbm [thread:$0]  %s5367_s8, 2048, %s5369_s11, [#allocation4], %s6042_s26, %s6042_s26, %s6043_s27  }
 0xd37   :  { %6039 = dma.done.wait [#allocation4], 2048  }
 0xd38   :  { %6040 = vsyncadd [#allocation4], 4294965248 }
 0xd39   :  { %5379 = vsyncpa [#allocation3], 1 }
 0xd3a   :  { %5380 = vsyncpa [#allocation4], 1 }

</bundles_post_ra>
